<compile_context>
chip_gen: v5e
topology: v5e:2x2
jax: 0.10.0
libtpu: 0.0.40
codegen_flags: <defaults>
</compile_context>

<pallas_src>
import functools

import jax
import jax.numpy as jnp
from jax import lax
from jax.experimental import pallas as pl
from jax.experimental.pallas import tpu as pltpu


def autopad(k, p=None, d=1):
    """Pad to 'same' shape outputs (mirror of the PyTorch helper)."""
    if d > 1:
        k = d * (k - 1) + 1 if isinstance(k, int) else [d * (x - 1) + 1 for x in k]
    if p is None:
        p = k // 2 if isinstance(k, int) else [x // 2 for x in k]
    return p


def _round_up(x, m):
    return ((x + m - 1) // m) * m


def _largest_divisor_leq(n, cap):
    for c in range(min(n, cap), 0, -1):
        if n % c == 0:
            return c
    return 1


# ---------------------------------------------------------------------------
# Pallas kernel: fused shifted-matmul conv + BatchNorm (scale/shift) + SiLU
# ---------------------------------------------------------------------------
def _make_kernel(K, TH, W_out, stride):
    TH_in = (TH - 1) * stride + K   # padded-input rows consumed per grid step

    def kernel(*refs):
        # refs[:TH_in]    : TH_in views of the padded input, each (TN,1,Wp,C1) bf16
        #                   (view r holds padded-input row hb*TH*s + r)
        # refs[TH_in + 0] : (K, K, C1, C2p) bf16   conv weight, C2 zero-padded
        # refs[TH_in + 1] : (1, C2p) f32           gamma / sqrt(var + eps)
        # refs[TH_in + 2] : (1, C2p) f32           beta - mean * scale
        # refs[TH_in + 3] : (TN, TH, W_out, C2p) f32 output block
        # refs[TH_in + 4] : (TN, TH_in, Wp, C1) bf16 VMEM staging buffer
        # refs[TH_in + 5] : (TN*TH*W_out, C2p) f32 VMEM accumulator
        x_refs = refs[:TH_in]
        w_ref, scale_ref, shift_ref, o_ref, stage_ref, acc_ref = refs[TH_in:]

        TN = o_ref.shape[0]
        C2p = o_ref.shape[-1]
        C1 = stage_ref.shape[-1]
        M = TN * TH * W_out

        scale = scale_ref[...]   # (1, C2p)
        shift = shift_ref[...]   # (1, C2p)

        # Stage each needed padded-input row exactly once into a contiguous
        # VMEM buffer so every (kh, kw) tap is a single fat M-row matmul.
        for r in range(TH_in):
            stage_ref[:, r] = x_refs[r][:, 0]          # (TN, Wp, C1)

        def rows(kh):
            return pl.ds(kh, TH) if stride == 1 else pl.ds(kh, TH, stride=stride)

        def cols(kw):
            return pl.ds(kw, W_out) if stride == 1 else pl.ds(kw, W_out, stride=stride)

        first = True
        for kh in range(K):
            for kw in range(K):
                # Shifted window loaded straight off the staged ref.
                lhs = stage_ref[:, rows(kh), cols(kw), :]    # (TN, TH, W_out, C1)
                lhs = lhs.reshape(M, C1)
                contrib = jnp.dot(lhs, w_ref[kh, kw],
                                  preferred_element_type=jnp.float32)
                if first:
                    acc_ref[...] = contrib
                    first = False
                else:
                    acc_ref[...] += contrib              # VMEM-scratch accumulation

        # Fused inference BatchNorm (per-channel affine) + SiLU.
        y = acc_ref[...] * scale + shift
        sig = 0.5 * (jnp.tanh(0.5 * y) + 1.0)            # exact sigmoid, 1 EUP op
        y = y * sig
        o_ref[...] = y.reshape(TN, TH, W_out, C2p).astype(o_ref.dtype)

    return kernel


def conv_bn_silu(x, weight, gamma, beta, running_mean, running_var,
                 *, stride=1, padding=None, dilation=1, groups=1, eps=1e-5,
                 max_batch_tile=8, max_row_tile=8):
    """Forward of Conv(c1, c2, k, s): Conv2d(no bias) -> BatchNorm2d -> SiLU.

    x:      (N, C1, H, W)            float32, NCHW
    weight: (C2, C1, K, K)           float32, OIHW
    returns (N, C2, H_out, W_out)    float32, NCHW
    """
    N, C1, H, W = x.shape
    C2, C1w, K, K2 = weight.shape
    assert C1 == C1w and K == K2
    assert groups == 1 and dilation == 1, "groups/dilation > 1 not implemented"
    s = stride
    p = autopad(K, padding, dilation)

    H_out = (H + 2 * p - K) // s + 1
    W_out = (W + 2 * p - K) // s + 1
    Hp, Wp = H + 2 * p, W + 2 * p

    LANE = 128
    C2p = _round_up(C2, LANE)   # lane-dense output stores

    # ---- layout glue (single pass each, no im2col materialization) ----
    # NCHW -> NHWC, spatial zero-pad, bf16 for the MXU.
    xh = jnp.transpose(x, (0, 2, 3, 1))
    xp = jnp.pad(xh, ((0, 0), (p, p), (p, p), (0, 0))).astype(jnp.bfloat16)

    # OIHW -> (K, K, C1, C2p) bf16, output channels zero-padded to 128.
    wm = jnp.transpose(weight, (2, 3, 1, 0))
    wm = jnp.pad(wm, ((0, 0), (0, 0), (0, 0), (0, C2p - C2))).astype(jnp.bfloat16)

    # Fold BN into per-channel scale/shift (inference mode). Padded channels
    # get scale=shift=0 -> output 0 (harmless, sliced off later).
    scale = gamma / jnp.sqrt(running_var + eps)
    shift = beta - running_mean * scale
    scale_p = jnp.pad(scale, (0, C2p - C2)).reshape(1, C2p).astype(jnp.float32)
    shift_p = jnp.pad(shift, (0, C2p - C2)).reshape(1, C2p).astype(jnp.float32)

    # Tile sizes: TN images x TH output rows per grid step.  Bigger tiles ->
    # bigger matmul M, amortized halo and per-step overhead.
    TN = _largest_divisor_leq(N, max_batch_tile)
    TH = _largest_divisor_leq(H_out, max_row_tile)
    TH_in = (TH - 1) * s + K

    kernel = _make_kernel(K, TH, W_out, s)
    grid = (N // TN, H_out // TH)

    def row_spec(r):
        # Row-block of height 1 along padded-H; block index == element row.
        return pl.BlockSpec((TN, 1, Wp, C1),
                            lambda nb, hb, _r=r: (nb, hb * TH * s + _r, 0, 0))

    in_specs = [row_spec(r) for r in range(TH_in)] + [
        pl.BlockSpec((K, K, C1, C2p), lambda nb, hb: (0, 0, 0, 0)),
        pl.BlockSpec((1, C2p), lambda nb, hb: (0, 0)),
        pl.BlockSpec((1, C2p), lambda nb, hb: (0, 0)),
    ]
    out_spec = pl.BlockSpec((TN, TH, W_out, C2p), lambda nb, hb: (nb, hb, 0, 0))

    out_p = pl.pallas_call(
        kernel,
        out_shape=jax.ShapeDtypeStruct((N, H_out, W_out, C2p), jnp.float32),
        grid=grid,
        in_specs=in_specs,
        out_specs=out_spec,
        scratch_shapes=[
            pltpu.VMEM((TN, TH_in, Wp, C1), jnp.bfloat16),        # staged rows
            pltpu.VMEM((TN * TH * W_out, C2p), jnp.float32),      # accumulator
        ],
        compiler_params=pltpu.CompilerParams(
            dimension_semantics=("parallel", "parallel"),
            vmem_limit_bytes=64 * 1024 * 1024),
    )(*([xp] * TH_in), wm, scale_p, shift_p)

    # Slice channel padding and restore NCHW for PyTorch API parity.
    # (A consumer that accepts NHWC could skip this extra pass entirely.)
    out = out_p[..., :C2]
    return jnp.transpose(out, (0, 3, 1, 2))


# ---------------------------------------------------------------------------
# Reference (pure JAX) for correctness check
# ---------------------------------------------------------------------------
def _reference(x, weight, gamma, beta, running_mean, running_var,
               *, stride=1, padding=None, eps=1e-5):
    K = weight.shape[-1]
    p = autopad(K, padding, 1)
    conv = lax.conv_general_dilated(
        x, weight, window_strides=(stride, stride),
        padding=[(p, p), (p, p)],
        dimension_numbers=("NCHW", "OIHW", "NCHW"))
    sc = (gamma / jnp.sqrt(running_var + eps))[None, :, None, None]
    sh = (beta - running_mean * gamma / jnp.sqrt(running_var + eps))[None, :, None, None]
    y = conv * sc + sh
    return y * jax.nn.sigmoid(y)


if __name__ == "__main__":
    # Conv(c1=4, c2=8, k=3, s=1)  ->  'same' padding = 1
    N, C1, C2, K, S = 2, 4, 8, 3, 1
    H = W = 16

    key = jax.random.PRNGKey(0)
    kx, kw, kg, kb, km, kv = jax.random.split(key, 6)

    x = jax.random.normal(kx, (N, C1, H, W), dtype=jnp.float32)
    weight = jax.random.normal(kw, (C2, C1, K, K), dtype=jnp.float32) * 0.1
    gamma = 1.0 + 0.1 * jax.random.normal(kg, (C2,), dtype=jnp.float32)
    beta = 0.1 * jax.random.normal(kb, (C2,), dtype=jnp.float32)
    running_mean = 0.1 * jax.random.normal(km, (C2,), dtype=jnp.float32)
    running_var = jnp.abs(1.0 + 0.1 * jax.random.normal(kv, (C2,), dtype=jnp.float32))

    fwd = jax.jit(functools.partial(conv_bn_silu, stride=S))
    out = fwd(x, weight, gamma, beta, running_mean, running_var)
    out = jax.block_until_ready(out)

    ref = _reference(x, weight, gamma, beta, running_mean, running_var, stride=S)
    assert out.shape == (N, C2, H, W), out.shape
    # bf16 MXU inputs -> relaxed tolerance vs f32 reference.
    max_err = float(jnp.max(jnp.abs(out - ref)))
    assert jnp.allclose(out, ref, atol=3e-2, rtol=3e-2), max_err

    print("KERNEL_OK")
</pallas_src>

<mosaic_0001>
module attributes {stable_mosaic.version = 11 : i64} {
  func.func @kernel(%arg0: i32, %arg1: i32, %arg2: memref<2x1x18x4xbf16, #tpu.memory_space<vmem>>, %arg3: memref<2x1x18x4xbf16, #tpu.memory_space<vmem>>, %arg4: memref<2x1x18x4xbf16, #tpu.memory_space<vmem>>, %arg5: memref<2x1x18x4xbf16, #tpu.memory_space<vmem>>, %arg6: memref<2x1x18x4xbf16, #tpu.memory_space<vmem>>, %arg7: memref<2x1x18x4xbf16, #tpu.memory_space<vmem>>, %arg8: memref<2x1x18x4xbf16, #tpu.memory_space<vmem>>, %arg9: memref<2x1x18x4xbf16, #tpu.memory_space<vmem>>, %arg10: memref<2x1x18x4xbf16, #tpu.memory_space<vmem>>, %arg11: memref<2x1x18x4xbf16, #tpu.memory_space<vmem>>, %arg12: memref<3x3x4x128xbf16, #tpu.memory_space<vmem>>, %arg13: memref<1x128xf32, #tpu.memory_space<vmem>>, %arg14: memref<1x128xf32, #tpu.memory_space<vmem>>, %arg15: memref<2x8x16x128xf32, #tpu.memory_space<vmem>>, %arg16: memref<2x10x18x4xbf16, #tpu.memory_space<vmem>>, %arg17: memref<256x128xf32, #tpu.memory_space<vmem>>) attributes {dimension_semantics = [#tpu.dimension_semantics<parallel>, #tpu.dimension_semantics<parallel>], iteration_bounds = array<i64: 1, 2>, scalar_prefetch = 0 : i64, scratch_operands = 2 : i64, tpu.core_type = #tpu.core_type<tc>, window_params = [{transform_indices = @transform_0, window_bounds = array<i64: 2, 1, 18, 4>}, {transform_indices = @transform_1, window_bounds = array<i64: 2, 1, 18, 4>}, {transform_indices = @transform_2, window_bounds = array<i64: 2, 1, 18, 4>}, {transform_indices = @transform_3, window_bounds = array<i64: 2, 1, 18, 4>}, {transform_indices = @transform_4, window_bounds = array<i64: 2, 1, 18, 4>}, {transform_indices = @transform_5, window_bounds = array<i64: 2, 1, 18, 4>}, {transform_indices = @transform_6, window_bounds = array<i64: 2, 1, 18, 4>}, {transform_indices = @transform_7, window_bounds = array<i64: 2, 1, 18, 4>}, {transform_indices = @transform_8, window_bounds = array<i64: 2, 1, 18, 4>}, {transform_indices = @transform_9, window_bounds = array<i64: 2, 1, 18, 4>}, {pipeline_mode = #tpu.pipeline_mode<synchronous>, transform_indices = @transform_10, window_bounds = array<i64: 3, 3, 4, 128>}, {pipeline_mode = #tpu.pipeline_mode<synchronous>, transform_indices = @transform_11, window_bounds = array<i64: 1, 128>}, {pipeline_mode = #tpu.pipeline_mode<synchronous>, transform_indices = @transform_12, window_bounds = array<i64: 1, 128>}, {transform_indices = @transform_13, window_bounds = array<i64: 2, 8, 16, 128>}]} {
    %c0 = arith.constant 0 : index
    %c0_0 = arith.constant 0 : index
    %0 = vector.load %arg13[%c0, %c0_0] : memref<1x128xf32, #tpu.memory_space<vmem>>, vector<1x128xf32>
    %c0_1 = arith.constant 0 : index
    %c0_2 = arith.constant 0 : index
    %1 = vector.load %arg14[%c0_1, %c0_2] : memref<1x128xf32, #tpu.memory_space<vmem>>, vector<1x128xf32>
    %c0_3 = arith.constant 0 : index
    %c0_4 = arith.constant 0 : index
    %c0_5 = arith.constant 0 : index
    %c0_6 = arith.constant 0 : index
    %2 = vector.load %arg2[%c0_3, %c0_4, %c0_5, %c0_6] : memref<2x1x18x4xbf16, #tpu.memory_space<vmem>>, vector<2x1x18x4xbf16>
    %3 = vector.shape_cast %2 : vector<2x1x18x4xbf16> to vector<2x18x4xbf16>
    %c0_7 = arith.constant 0 : index
    %c0_8 = arith.constant 0 : index
    %c0_9 = arith.constant 0 : index
    %c0_10 = arith.constant 0 : index
    %4 = vector.load %arg16[%c0_7, %c0_8, %c0_9, %c0_10] : memref<2x10x18x4xbf16, #tpu.memory_space<vmem>>, vector<2x1x18x4xbf16>
    %5 = vector.shape_cast %4 : vector<2x1x18x4xbf16> to vector<2x18x4xbf16>
    %6 = vector.shape_cast %3 : vector<2x18x4xbf16> to vector<2x1x18x4xbf16>
    tpu.vector_store %arg16[%c0_7, %c0_8, %c0_9, %c0_10], %6 {strides = array<i32>} : memref<2x10x18x4xbf16, #tpu.memory_space<vmem>>, vector<2x1x18x4xbf16>,
    %c0_11 = arith.constant 0 : index
    %c0_12 = arith.constant 0 : index
    %c0_13 = arith.constant 0 : index
    %c0_14 = arith.constant 0 : index
    %7 = vector.load %arg3[%c0_11, %c0_12, %c0_13, %c0_14] : memref<2x1x18x4xbf16, #tpu.memory_space<vmem>>, vector<2x1x18x4xbf16>
    %8 = vector.shape_cast %7 : vector<2x1x18x4xbf16> to vector<2x18x4xbf16>
    %c0_15 = arith.constant 0 : index
    %c1 = arith.constant 1 : index
    %c0_16 = arith.constant 0 : index
    %c0_17 = arith.constant 0 : index
    %9 = vector.load %arg16[%c0_15, %c1, %c0_16, %c0_17] : memref<2x10x18x4xbf16, #tpu.memory_space<vmem>>, vector<2x1x18x4xbf16>
    %10 = vector.shape_cast %9 : vector<2x1x18x4xbf16> to vector<2x18x4xbf16>
    %11 = vector.shape_cast %8 : vector<2x18x4xbf16> to vector<2x1x18x4xbf16>
    tpu.vector_store %arg16[%c0_15, %c1, %c0_16, %c0_17], %11 {strides = array<i32>} : memref<2x10x18x4xbf16, #tpu.memory_space<vmem>>, vector<2x1x18x4xbf16>,
    %c0_18 = arith.constant 0 : index
    %c0_19 = arith.constant 0 : index
    %c0_20 = arith.constant 0 : index
    %c0_21 = arith.constant 0 : index
    %12 = vector.load %arg4[%c0_18, %c0_19, %c0_20, %c0_21] : memref<2x1x18x4xbf16, #tpu.memory_space<vmem>>, vector<2x1x18x4xbf16>
    %13 = vector.shape_cast %12 : vector<2x1x18x4xbf16> to vector<2x18x4xbf16>
    %c0_22 = arith.constant 0 : index
    %c2 = arith.constant 2 : index
    %c0_23 = arith.constant 0 : index
    %c0_24 = arith.constant 0 : index
    %14 = vector.load %arg16[%c0_22, %c2, %c0_23, %c0_24] : memref<2x10x18x4xbf16, #tpu.memory_space<vmem>>, vector<2x1x18x4xbf16>
    %15 = vector.shape_cast %14 : vector<2x1x18x4xbf16> to vector<2x18x4xbf16>
    %16 = vector.shape_cast %13 : vector<2x18x4xbf16> to vector<2x1x18x4xbf16>
    tpu.vector_store %arg16[%c0_22, %c2, %c0_23, %c0_24], %16 {strides = array<i32>} : memref<2x10x18x4xbf16, #tpu.memory_space<vmem>>, vector<2x1x18x4xbf16>,
    %c0_25 = arith.constant 0 : index
    %c0_26 = arith.constant 0 : index
    %c0_27 = arith.constant 0 : index
    %c0_28 = arith.constant 0 : index
    %17 = vector.load %arg5[%c0_25, %c0_26, %c0_27, %c0_28] : memref<2x1x18x4xbf16, #tpu.memory_space<vmem>>, vector<2x1x18x4xbf16>
    %18 = vector.shape_cast %17 : vector<2x1x18x4xbf16> to vector<2x18x4xbf16>
    %c0_29 = arith.constant 0 : index
    %c3 = arith.constant 3 : index
    %c0_30 = arith.constant 0 : index
    %c0_31 = arith.constant 0 : index
    %19 = vector.load %arg16[%c0_29, %c3, %c0_30, %c0_31] : memref<2x10x18x4xbf16, #tpu.memory_space<vmem>>, vector<2x1x18x4xbf16>
    %20 = vector.shape_cast %19 : vector<2x1x18x4xbf16> to vector<2x18x4xbf16>
    %21 = vector.shape_cast %18 : vector<2x18x4xbf16> to vector<2x1x18x4xbf16>
    tpu.vector_store %arg16[%c0_29, %c3, %c0_30, %c0_31], %21 {strides = array<i32>} : memref<2x10x18x4xbf16, #tpu.memory_space<vmem>>, vector<2x1x18x4xbf16>,
    %c0_32 = arith.constant 0 : index
    %c0_33 = arith.constant 0 : index
    %c0_34 = arith.constant 0 : index
    %c0_35 = arith.constant 0 : index
    %22 = vector.load %arg6[%c0_32, %c0_33, %c0_34, %c0_35] : memref<2x1x18x4xbf16, #tpu.memory_space<vmem>>, vector<2x1x18x4xbf16>
    %23 = vector.shape_cast %22 : vector<2x1x18x4xbf16> to vector<2x18x4xbf16>
    %c0_36 = arith.constant 0 : index
    %c4 = arith.constant 4 : index
    %c0_37 = arith.constant 0 : index
    %c0_38 = arith.constant 0 : index
    %24 = vector.load %arg16[%c0_36, %c4, %c0_37, %c0_38] : memref<2x10x18x4xbf16, #tpu.memory_space<vmem>>, vector<2x1x18x4xbf16>
    %25 = vector.shape_cast %24 : vector<2x1x18x4xbf16> to vector<2x18x4xbf16>
    %26 = vector.shape_cast %23 : vector<2x18x4xbf16> to vector<2x1x18x4xbf16>
    tpu.vector_store %arg16[%c0_36, %c4, %c0_37, %c0_38], %26 {strides = array<i32>} : memref<2x10x18x4xbf16, #tpu.memory_space<vmem>>, vector<2x1x18x4xbf16>,
    %c0_39 = arith.constant 0 : index
    %c0_40 = arith.constant 0 : index
    %c0_41 = arith.constant 0 : index
    %c0_42 = arith.constant 0 : index
    %27 = vector.load %arg7[%c0_39, %c0_40, %c0_41, %c0_42] : memref<2x1x18x4xbf16, #tpu.memory_space<vmem>>, vector<2x1x18x4xbf16>
    %28 = vector.shape_cast %27 : vector<2x1x18x4xbf16> to vector<2x18x4xbf16>
    %c0_43 = arith.constant 0 : index
    %c5 = arith.constant 5 : index
    %c0_44 = arith.constant 0 : index
    %c0_45 = arith.constant 0 : index
    %29 = vector.load %arg16[%c0_43, %c5, %c0_44, %c0_45] : memref<2x10x18x4xbf16, #tpu.memory_space<vmem>>, vector<2x1x18x4xbf16>
    %30 = vector.shape_cast %29 : vector<2x1x18x4xbf16> to vector<2x18x4xbf16>
    %31 = vector.shape_cast %28 : vector<2x18x4xbf16> to vector<2x1x18x4xbf16>
    tpu.vector_store %arg16[%c0_43, %c5, %c0_44, %c0_45], %31 {strides = array<i32>} : memref<2x10x18x4xbf16, #tpu.memory_space<vmem>>, vector<2x1x18x4xbf16>,
    %c0_46 = arith.constant 0 : index
    %c0_47 = arith.constant 0 : index
    %c0_48 = arith.constant 0 : index
    %c0_49 = arith.constant 0 : index
    %32 = vector.load %arg8[%c0_46, %c0_47, %c0_48, %c0_49] : memref<2x1x18x4xbf16, #tpu.memory_space<vmem>>, vector<2x1x18x4xbf16>
    %33 = vector.shape_cast %32 : vector<2x1x18x4xbf16> to vector<2x18x4xbf16>
    %c0_50 = arith.constant 0 : index
    %c6 = arith.constant 6 : index
    %c0_51 = arith.constant 0 : index
    %c0_52 = arith.constant 0 : index
    %34 = vector.load %arg16[%c0_50, %c6, %c0_51, %c0_52] : memref<2x10x18x4xbf16, #tpu.memory_space<vmem>>, vector<2x1x18x4xbf16>
    %35 = vector.shape_cast %34 : vector<2x1x18x4xbf16> to vector<2x18x4xbf16>
    %36 = vector.shape_cast %33 : vector<2x18x4xbf16> to vector<2x1x18x4xbf16>
    tpu.vector_store %arg16[%c0_50, %c6, %c0_51, %c0_52], %36 {strides = array<i32>} : memref<2x10x18x4xbf16, #tpu.memory_space<vmem>>, vector<2x1x18x4xbf16>,
    %c0_53 = arith.constant 0 : index
    %c0_54 = arith.constant 0 : index
    %c0_55 = arith.constant 0 : index
    %c0_56 = arith.constant 0 : index
    %37 = vector.load %arg9[%c0_53, %c0_54, %c0_55, %c0_56] : memref<2x1x18x4xbf16, #tpu.memory_space<vmem>>, vector<2x1x18x4xbf16>
    %38 = vector.shape_cast %37 : vector<2x1x18x4xbf16> to vector<2x18x4xbf16>
    %c0_57 = arith.constant 0 : index
    %c7 = arith.constant 7 : index
    %c0_58 = arith.constant 0 : index
    %c0_59 = arith.constant 0 : index
    %39 = vector.load %arg16[%c0_57, %c7, %c0_58, %c0_59] : memref<2x10x18x4xbf16, #tpu.memory_space<vmem>>, vector<2x1x18x4xbf16>
    %40 = vector.shape_cast %39 : vector<2x1x18x4xbf16> to vector<2x18x4xbf16>
    %41 = vector.shape_cast %38 : vector<2x18x4xbf16> to vector<2x1x18x4xbf16>
    tpu.vector_store %arg16[%c0_57, %c7, %c0_58, %c0_59], %41 {strides = array<i32>} : memref<2x10x18x4xbf16, #tpu.memory_space<vmem>>, vector<2x1x18x4xbf16>,
    %c0_60 = arith.constant 0 : index
    %c0_61 = arith.constant 0 : index
    %c0_62 = arith.constant 0 : index
    %c0_63 = arith.constant 0 : index
    %42 = vector.load %arg10[%c0_60, %c0_61, %c0_62, %c0_63] : memref<2x1x18x4xbf16, #tpu.memory_space<vmem>>, vector<2x1x18x4xbf16>
    %43 = vector.shape_cast %42 : vector<2x1x18x4xbf16> to vector<2x18x4xbf16>
    %c0_64 = arith.constant 0 : index
    %c8 = arith.constant 8 : index
    %c0_65 = arith.constant 0 : index
    %c0_66 = arith.constant 0 : index
    %44 = vector.load %arg16[%c0_64, %c8, %c0_65, %c0_66] : memref<2x10x18x4xbf16, #tpu.memory_space<vmem>>, vector<2x1x18x4xbf16>
    %45 = vector.shape_cast %44 : vector<2x1x18x4xbf16> to vector<2x18x4xbf16>
    %46 = vector.shape_cast %43 : vector<2x18x4xbf16> to vector<2x1x18x4xbf16>
    tpu.vector_store %arg16[%c0_64, %c8, %c0_65, %c0_66], %46 {strides = array<i32>} : memref<2x10x18x4xbf16, #tpu.memory_space<vmem>>, vector<2x1x18x4xbf16>,
    %c0_67 = arith.constant 0 : index
    %c0_68 = arith.constant 0 : index
    %c0_69 = arith.constant 0 : index
    %c0_70 = arith.constant 0 : index
    %47 = vector.load %arg11[%c0_67, %c0_68, %c0_69, %c0_70] : memref<2x1x18x4xbf16, #tpu.memory_space<vmem>>, vector<2x1x18x4xbf16>
    %48 = vector.shape_cast %47 : vector<2x1x18x4xbf16> to vector<2x18x4xbf16>
    %c0_71 = arith.constant 0 : index
    %c9 = arith.constant 9 : index
    %c0_72 = arith.constant 0 : index
    %c0_73 = arith.constant 0 : index
    %49 = vector.load %arg16[%c0_71, %c9, %c0_72, %c0_73] : memref<2x10x18x4xbf16, #tpu.memory_space<vmem>>, vector<2x1x18x4xbf16>
    %50 = vector.shape_cast %49 : vector<2x1x18x4xbf16> to vector<2x18x4xbf16>
    %51 = vector.shape_cast %48 : vector<2x18x4xbf16> to vector<2x1x18x4xbf16>
    tpu.vector_store %arg16[%c0_71, %c9, %c0_72, %c0_73], %51 {strides = array<i32>} : memref<2x10x18x4xbf16, #tpu.memory_space<vmem>>, vector<2x1x18x4xbf16>,
    %c0_74 = arith.constant 0 : index
    %c0_75 = arith.constant 0 : index
    %c0_76 = arith.constant 0 : index
    %c0_77 = arith.constant 0 : index
    %52 = vector.load %arg16[%c0_74, %c0_75, %c0_76, %c0_77] : memref<2x10x18x4xbf16, #tpu.memory_space<vmem>>, vector<2x8x16x4xbf16>
    %53 = vector.shape_cast %52 : vector<2x8x16x4xbf16> to vector<256x4xbf16>
    %c0_78 = arith.constant 0 : index
    %c0_79 = arith.constant 0 : index
    %c0_80 = arith.constant 0 : index
    %c0_81 = arith.constant 0 : index
    %54 = vector.load %arg12[%c0_78, %c0_79, %c0_80, %c0_81] : memref<3x3x4x128xbf16, #tpu.memory_space<vmem>>, vector<1x1x4x128xbf16>
    %55 = vector.shape_cast %54 : vector<1x1x4x128xbf16> to vector<4x128xbf16>
    %cst = arith.constant dense<0.000000e+00> : vector<256x128xf32>
    %56 = tpu.matmul %53, %55, %cst {dimension_numbers = #tpu.dot_dimension_numbers<[1], [0], [0], [1], [0, 0, 1, 1], [], []>} : vector<256x4xbf16>, vector<4x128xbf16>, vector<256x128xf32> -> vector<256x128xf32>
    %c0_82 = arith.constant 0 : index
    %c0_83 = arith.constant 0 : index
    %57 = vector.load %arg17[%c0_82, %c0_83] : memref<256x128xf32, #tpu.memory_space<vmem>>, vector<256x128xf32>
    tpu.vector_store %arg17[%c0_82, %c0_83], %56 {strides = array<i32>} : memref<256x128xf32, #tpu.memory_space<vmem>>, vector<256x128xf32>,
    %c0_84 = arith.constant 0 : index
    %c0_85 = arith.constant 0 : index
    %c1_86 = arith.constant 1 : index
    %c0_87 = arith.constant 0 : index
    %58 = vector.load %arg16[%c0_84, %c0_85, %c1_86, %c0_87] : memref<2x10x18x4xbf16, #tpu.memory_space<vmem>>, vector<2x8x16x4xbf16>
    %59 = vector.shape_cast %58 : vector<2x8x16x4xbf16> to vector<256x4xbf16>
    %c0_88 = arith.constant 0 : index
    %c1_89 = arith.constant 1 : index
    %c0_90 = arith.constant 0 : index
    %c0_91 = arith.constant 0 : index
    %60 = vector.load %arg12[%c0_88, %c1_89, %c0_90, %c0_91] : memref<3x3x4x128xbf16, #tpu.memory_space<vmem>>, vector<1x1x4x128xbf16>
    %61 = vector.shape_cast %60 : vector<1x1x4x128xbf16> to vector<4x128xbf16>
    %cst_92 = arith.constant dense<0.000000e+00> : vector<256x128xf32>
    %62 = tpu.matmul %59, %61, %cst_92 {dimension_numbers = #tpu.dot_dimension_numbers<[1], [0], [0], [1], [0, 0, 1, 1], [], []>} : vector<256x4xbf16>, vector<4x128xbf16>, vector<256x128xf32> -> vector<256x128xf32>
    %c0_93 = arith.constant 0 : index
    %c0_94 = arith.constant 0 : index
    %63 = vector.load %arg17[%c0_93, %c0_94] : memref<256x128xf32, #tpu.memory_space<vmem>>, vector<256x128xf32>
    %64 = arith.addf %63, %62 : vector<256x128xf32>
    %c0_95 = arith.constant 0 : index
    %c0_96 = arith.constant 0 : index
    %65 = vector.load %arg17[%c0_95, %c0_96] : memref<256x128xf32, #tpu.memory_space<vmem>>, vector<256x128xf32>
    tpu.vector_store %arg17[%c0_95, %c0_96], %64 {strides = array<i32>} : memref<256x128xf32, #tpu.memory_space<vmem>>, vector<256x128xf32>,
    %c0_97 = arith.constant 0 : index
    %c0_98 = arith.constant 0 : index
    %c2_99 = arith.constant 2 : index
    %c0_100 = arith.constant 0 : index
    %66 = vector.load %arg16[%c0_97, %c0_98, %c2_99, %c0_100] : memref<2x10x18x4xbf16, #tpu.memory_space<vmem>>, vector<2x8x16x4xbf16>
    %67 = vector.shape_cast %66 : vector<2x8x16x4xbf16> to vector<256x4xbf16>
    %c0_101 = arith.constant 0 : index
    %c2_102 = arith.constant 2 : index
    %c0_103 = arith.constant 0 : index
    %c0_104 = arith.constant 0 : index
    %68 = vector.load %arg12[%c0_101, %c2_102, %c0_103, %c0_104] : memref<3x3x4x128xbf16, #tpu.memory_space<vmem>>, vector<1x1x4x128xbf16>
    %69 = vector.shape_cast %68 : vector<1x1x4x128xbf16> to vector<4x128xbf16>
    %cst_105 = arith.constant dense<0.000000e+00> : vector<256x128xf32>
    %70 = tpu.matmul %67, %69, %cst_105 {dimension_numbers = #tpu.dot_dimension_numbers<[1], [0], [0], [1], [0, 0, 1, 1], [], []>} : vector<256x4xbf16>, vector<4x128xbf16>, vector<256x128xf32> -> vector<256x128xf32>
    %c0_106 = arith.constant 0 : index
    %c0_107 = arith.constant 0 : index
    %71 = vector.load %arg17[%c0_106, %c0_107] : memref<256x128xf32, #tpu.memory_space<vmem>>, vector<256x128xf32>
    %72 = arith.addf %71, %70 : vector<256x128xf32>
    %c0_108 = arith.constant 0 : index
    %c0_109 = arith.constant 0 : index
    %73 = vector.load %arg17[%c0_108, %c0_109] : memref<256x128xf32, #tpu.memory_space<vmem>>, vector<256x128xf32>
    tpu.vector_store %arg17[%c0_108, %c0_109], %72 {strides = array<i32>} : memref<256x128xf32, #tpu.memory_space<vmem>>, vector<256x128xf32>,
    %c0_110 = arith.constant 0 : index
    %c1_111 = arith.constant 1 : index
    %c0_112 = arith.constant 0 : index
    %c0_113 = arith.constant 0 : index
    %74 = vector.load %arg16[%c0_110, %c1_111, %c0_112, %c0_113] : memref<2x10x18x4xbf16, #tpu.memory_space<vmem>>, vector<2x8x16x4xbf16>
    %75 = vector.shape_cast %74 : vector<2x8x16x4xbf16> to vector<256x4xbf16>
    %c1_114 = arith.constant 1 : index
    %c0_115 = arith.constant 0 : index
    %c0_116 = arith.constant 0 : index
    %c0_117 = arith.constant 0 : index
    %76 = vector.load %arg12[%c1_114, %c0_115, %c0_116, %c0_117] : memref<3x3x4x128xbf16, #tpu.memory_space<vmem>>, vector<1x1x4x128xbf16>
    %77 = vector.shape_cast %76 : vector<1x1x4x128xbf16> to vector<4x128xbf16>
    %cst_118 = arith.constant dense<0.000000e+00> : vector<256x128xf32>
    %78 = tpu.matmul %75, %77, %cst_118 {dimension_numbers = #tpu.dot_dimension_numbers<[1], [0], [0], [1], [0, 0, 1, 1], [], []>} : vector<256x4xbf16>, vector<4x128xbf16>, vector<256x128xf32> -> vector<256x128xf32>
    %c0_119 = arith.constant 0 : index
    %c0_120 = arith.constant 0 : index
    %79 = vector.load %arg17[%c0_119, %c0_120] : memref<256x128xf32, #tpu.memory_space<vmem>>, vector<256x128xf32>
    %80 = arith.addf %79, %78 : vector<256x128xf32>
    %c0_121 = arith.constant 0 : index
    %c0_122 = arith.constant 0 : index
    %81 = vector.load %arg17[%c0_121, %c0_122] : memref<256x128xf32, #tpu.memory_space<vmem>>, vector<256x128xf32>
    tpu.vector_store %arg17[%c0_121, %c0_122], %80 {strides = array<i32>} : memref<256x128xf32, #tpu.memory_space<vmem>>, vector<256x128xf32>,
    %c0_123 = arith.constant 0 : index
    %c1_124 = arith.constant 1 : index
    %c1_125 = arith.constant 1 : index
    %c0_126 = arith.constant 0 : index
    %82 = vector.load %arg16[%c0_123, %c1_124, %c1_125, %c0_126] : memref<2x10x18x4xbf16, #tpu.memory_space<vmem>>, vector<2x8x16x4xbf16>
    %83 = vector.shape_cast %82 : vector<2x8x16x4xbf16> to vector<256x4xbf16>
    %c1_127 = arith.constant 1 : index
    %c1_128 = arith.constant 1 : index
    %c0_129 = arith.constant 0 : index
    %c0_130 = arith.constant 0 : index
    %84 = vector.load %arg12[%c1_127, %c1_128, %c0_129, %c0_130] : memref<3x3x4x128xbf16, #tpu.memory_space<vmem>>, vector<1x1x4x128xbf16>
    %85 = vector.shape_cast %84 : vector<1x1x4x128xbf16> to vector<4x128xbf16>
    %cst_131 = arith.constant dense<0.000000e+00> : vector<256x128xf32>
    %86 = tpu.matmul %83, %85, %cst_131 {dimension_numbers = #tpu.dot_dimension_numbers<[1], [0], [0], [1], [0, 0, 1, 1], [], []>} : vector<256x4xbf16>, vector<4x128xbf16>, vector<256x128xf32> -> vector<256x128xf32>
    %c0_132 = arith.constant 0 : index
    %c0_133 = arith.constant 0 : index
    %87 = vector.load %arg17[%c0_132, %c0_133] : memref<256x128xf32, #tpu.memory_space<vmem>>, vector<256x128xf32>
    %88 = arith.addf %87, %86 : vector<256x128xf32>
    %c0_134 = arith.constant 0 : index
    %c0_135 = arith.constant 0 : index
    %89 = vector.load %arg17[%c0_134, %c0_135] : memref<256x128xf32, #tpu.memory_space<vmem>>, vector<256x128xf32>
    tpu.vector_store %arg17[%c0_134, %c0_135], %88 {strides = array<i32>} : memref<256x128xf32, #tpu.memory_space<vmem>>, vector<256x128xf32>,
    %c0_136 = arith.constant 0 : index
    %c1_137 = arith.constant 1 : index
    %c2_138 = arith.constant 2 : index
    %c0_139 = arith.constant 0 : index
    %90 = vector.load %arg16[%c0_136, %c1_137, %c2_138, %c0_139] : memref<2x10x18x4xbf16, #tpu.memory_space<vmem>>, vector<2x8x16x4xbf16>
    %91 = vector.shape_cast %90 : vector<2x8x16x4xbf16> to vector<256x4xbf16>
    %c1_140 = arith.constant 1 : index
    %c2_141 = arith.constant 2 : index
    %c0_142 = arith.constant 0 : index
    %c0_143 = arith.constant 0 : index
    %92 = vector.load %arg12[%c1_140, %c2_141, %c0_142, %c0_143] : memref<3x3x4x128xbf16, #tpu.memory_space<vmem>>, vector<1x1x4x128xbf16>
    %93 = vector.shape_cast %92 : vector<1x1x4x128xbf16> to vector<4x128xbf16>
    %cst_144 = arith.constant dense<0.000000e+00> : vector<256x128xf32>
    %94 = tpu.matmul %91, %93, %cst_144 {dimension_numbers = #tpu.dot_dimension_numbers<[1], [0], [0], [1], [0, 0, 1, 1], [], []>} : vector<256x4xbf16>, vector<4x128xbf16>, vector<256x128xf32> -> vector<256x128xf32>
    %c0_145 = arith.constant 0 : index
    %c0_146 = arith.constant 0 : index
    %95 = vector.load %arg17[%c0_145, %c0_146] : memref<256x128xf32, #tpu.memory_space<vmem>>, vector<256x128xf32>
    %96 = arith.addf %95, %94 : vector<256x128xf32>
    %c0_147 = arith.constant 0 : index
    %c0_148 = arith.constant 0 : index
    %97 = vector.load %arg17[%c0_147, %c0_148] : memref<256x128xf32, #tpu.memory_space<vmem>>, vector<256x128xf32>
    tpu.vector_store %arg17[%c0_147, %c0_148], %96 {strides = array<i32>} : memref<256x128xf32, #tpu.memory_space<vmem>>, vector<256x128xf32>,
    %c0_149 = arith.constant 0 : index
    %c2_150 = arith.constant 2 : index
    %c0_151 = arith.constant 0 : index
    %c0_152 = arith.constant 0 : index
    %98 = vector.load %arg16[%c0_149, %c2_150, %c0_151, %c0_152] : memref<2x10x18x4xbf16, #tpu.memory_space<vmem>>, vector<2x8x16x4xbf16>
    %99 = vector.shape_cast %98 : vector<2x8x16x4xbf16> to vector<256x4xbf16>
    %c2_153 = arith.constant 2 : index
    %c0_154 = arith.constant 0 : index
    %c0_155 = arith.constant 0 : index
    %c0_156 = arith.constant 0 : index
    %100 = vector.load %arg12[%c2_153, %c0_154, %c0_155, %c0_156] : memref<3x3x4x128xbf16, #tpu.memory_space<vmem>>, vector<1x1x4x128xbf16>
    %101 = vector.shape_cast %100 : vector<1x1x4x128xbf16> to vector<4x128xbf16>
    %cst_157 = arith.constant dense<0.000000e+00> : vector<256x128xf32>
    %102 = tpu.matmul %99, %101, %cst_157 {dimension_numbers = #tpu.dot_dimension_numbers<[1], [0], [0], [1], [0, 0, 1, 1], [], []>} : vector<256x4xbf16>, vector<4x128xbf16>, vector<256x128xf32> -> vector<256x128xf32>
    %c0_158 = arith.constant 0 : index
    %c0_159 = arith.constant 0 : index
    %103 = vector.load %arg17[%c0_158, %c0_159] : memref<256x128xf32, #tpu.memory_space<vmem>>, vector<256x128xf32>
    %104 = arith.addf %103, %102 : vector<256x128xf32>
    %c0_160 = arith.constant 0 : index
    %c0_161 = arith.constant 0 : index
    %105 = vector.load %arg17[%c0_160, %c0_161] : memref<256x128xf32, #tpu.memory_space<vmem>>, vector<256x128xf32>
    tpu.vector_store %arg17[%c0_160, %c0_161], %104 {strides = array<i32>} : memref<256x128xf32, #tpu.memory_space<vmem>>, vector<256x128xf32>,
    %c0_162 = arith.constant 0 : index
    %c2_163 = arith.constant 2 : index
    %c1_164 = arith.constant 1 : index
    %c0_165 = arith.constant 0 : index
    %106 = vector.load %arg16[%c0_162, %c2_163, %c1_164, %c0_165] : memref<2x10x18x4xbf16, #tpu.memory_space<vmem>>, vector<2x8x16x4xbf16>
    %107 = vector.shape_cast %106 : vector<2x8x16x4xbf16> to vector<256x4xbf16>
    %c2_166 = arith.constant 2 : index
    %c1_167 = arith.constant 1 : index
    %c0_168 = arith.constant 0 : index
    %c0_169 = arith.constant 0 : index
    %108 = vector.load %arg12[%c2_166, %c1_167, %c0_168, %c0_169] : memref<3x3x4x128xbf16, #tpu.memory_space<vmem>>, vector<1x1x4x128xbf16>
    %109 = vector.shape_cast %108 : vector<1x1x4x128xbf16> to vector<4x128xbf16>
    %cst_170 = arith.constant dense<0.000000e+00> : vector<256x128xf32>
    %110 = tpu.matmul %107, %109, %cst_170 {dimension_numbers = #tpu.dot_dimension_numbers<[1], [0], [0], [1], [0, 0, 1, 1], [], []>} : vector<256x4xbf16>, vector<4x128xbf16>, vector<256x128xf32> -> vector<256x128xf32>
    %c0_171 = arith.constant 0 : index
    %c0_172 = arith.constant 0 : index
    %111 = vector.load %arg17[%c0_171, %c0_172] : memref<256x128xf32, #tpu.memory_space<vmem>>, vector<256x128xf32>
    %112 = arith.addf %111, %110 : vector<256x128xf32>
    %c0_173 = arith.constant 0 : index
    %c0_174 = arith.constant 0 : index
    %113 = vector.load %arg17[%c0_173, %c0_174] : memref<256x128xf32, #tpu.memory_space<vmem>>, vector<256x128xf32>
    tpu.vector_store %arg17[%c0_173, %c0_174], %112 {strides = array<i32>} : memref<256x128xf32, #tpu.memory_space<vmem>>, vector<256x128xf32>,
    %c0_175 = arith.constant 0 : index
    %c2_176 = arith.constant 2 : index
    %c2_177 = arith.constant 2 : index
    %c0_178 = arith.constant 0 : index
    %114 = vector.load %arg16[%c0_175, %c2_176, %c2_177, %c0_178] : memref<2x10x18x4xbf16, #tpu.memory_space<vmem>>, vector<2x8x16x4xbf16>
    %115 = vector.shape_cast %114 : vector<2x8x16x4xbf16> to vector<256x4xbf16>
    %c2_179 = arith.constant 2 : index
    %c2_180 = arith.constant 2 : index
    %c0_181 = arith.constant 0 : index
    %c0_182 = arith.constant 0 : index
    %116 = vector.load %arg12[%c2_179, %c2_180, %c0_181, %c0_182] : memref<3x3x4x128xbf16, #tpu.memory_space<vmem>>, vector<1x1x4x128xbf16>
    %117 = vector.shape_cast %116 : vector<1x1x4x128xbf16> to vector<4x128xbf16>
    %cst_183 = arith.constant dense<0.000000e+00> : vector<256x128xf32>
    %118 = tpu.matmul %115, %117, %cst_183 {dimension_numbers = #tpu.dot_dimension_numbers<[1], [0], [0], [1], [0, 0, 1, 1], [], []>} : vector<256x4xbf16>, vector<4x128xbf16>, vector<256x128xf32> -> vector<256x128xf32>
    %c0_184 = arith.constant 0 : index
    %c0_185 = arith.constant 0 : index
    %119 = vector.load %arg17[%c0_184, %c0_185] : memref<256x128xf32, #tpu.memory_space<vmem>>, vector<256x128xf32>
    %120 = arith.addf %119, %118 : vector<256x128xf32>
    %c0_186 = arith.constant 0 : index
    %c0_187 = arith.constant 0 : index
    %121 = vector.load %arg17[%c0_186, %c0_187] : memref<256x128xf32, #tpu.memory_space<vmem>>, vector<256x128xf32>
    tpu.vector_store %arg17[%c0_186, %c0_187], %120 {strides = array<i32>} : memref<256x128xf32, #tpu.memory_space<vmem>>, vector<256x128xf32>,
    %c0_188 = arith.constant 0 : index
    %c0_189 = arith.constant 0 : index
    %122 = vector.load %arg17[%c0_188, %c0_189] : memref<256x128xf32, #tpu.memory_space<vmem>>, vector<256x128xf32>
    %123 = vector.broadcast %0 : vector<1x128xf32> to vector<256x128xf32>
    %124 = arith.mulf %122, %123 : vector<256x128xf32>
    %125 = vector.broadcast %1 : vector<1x128xf32> to vector<256x128xf32>
    %126 = arith.addf %124, %125 : vector<256x128xf32>
    %cst_190 = arith.constant 5.000000e-01 : f32
    %127 = vector.broadcast %cst_190 : f32 to vector<256x128xf32>
    %128 = arith.mulf %127, %126 : vector<256x128xf32>
    %129 = math.tanh %128 : vector<256x128xf32>
    %cst_191 = arith.constant 1.000000e+00 : f32
    %130 = vector.broadcast %cst_191 : f32 to vector<256x128xf32>
    %131 = arith.addf %129, %130 : vector<256x128xf32>
    %cst_192 = arith.constant 5.000000e-01 : f32
    %132 = vector.broadcast %cst_192 : f32 to vector<256x128xf32>
    %133 = arith.mulf %132, %131 : vector<256x128xf32>
    %134 = arith.mulf %126, %133 : vector<256x128xf32>
    %135 = vector.shape_cast %134 : vector<256x128xf32> to vector<2x8x16x128xf32>
    %c0_193 = arith.constant 0 : index
    %c0_194 = arith.constant 0 : index
    %c0_195 = arith.constant 0 : index
    %c0_196 = arith.constant 0 : index
    %136 = vector.load %arg15[%c0_193, %c0_194, %c0_195, %c0_196] : memref<2x8x16x128xf32, #tpu.memory_space<vmem>>, vector<2x8x16x128xf32>
    tpu.vector_store %arg15[%c0_193, %c0_194, %c0_195, %c0_196], %135 {strides = array<i32>} : memref<2x8x16x128xf32, #tpu.memory_space<vmem>>, vector<2x8x16x128xf32>,
    return
  }
  func.func @transform_0(%arg0: i32, %arg1: i32) -> (i32, i32, i32, i32) {
    %c8_i32 = arith.constant 8 : i32
    %0 = arith.muli %arg1, %c8_i32 : i32
    %c1_i32 = arith.constant 1 : i32
    %1 = arith.muli %0, %c1_i32 : i32
    %c0_i32 = arith.constant 0 : i32
    %2 = arith.addi %1, %c0_i32 : i32
    %c0_i32_0 = arith.constant 0 : i32
    %c0_i32_1 = arith.constant 0 : i32
    %c0_i32_2 = arith.constant 0 : i32
    return %arg0, %2, %c0_i32_0, %c0_i32_1 : i32, i32, i32, i32
  }
  func.func @transform_1(%arg0: i32, %arg1: i32) -> (i32, i32, i32, i32) {
    %c8_i32 = arith.constant 8 : i32
    %0 = arith.muli %arg1, %c8_i32 : i32
    %c1_i32 = arith.constant 1 : i32
    %1 = arith.muli %0, %c1_i32 : i32
    %c1_i32_0 = arith.constant 1 : i32
    %2 = arith.addi %1, %c1_i32_0 : i32
    %c0_i32 = arith.constant 0 : i32
    %c0_i32_1 = arith.constant 0 : i32
    %c0_i32_2 = arith.constant 0 : i32
    return %arg0, %2, %c0_i32, %c0_i32_1 : i32, i32, i32, i32
  }
  func.func @transform_2(%arg0: i32, %arg1: i32) -> (i32, i32, i32, i32) {
    %c8_i32 = arith.constant 8 : i32
    %0 = arith.muli %arg1, %c8_i32 : i32
    %c1_i32 = arith.constant 1 : i32
    %1 = arith.muli %0, %c1_i32 : i32
    %c2_i32 = arith.constant 2 : i32
    %2 = arith.addi %1, %c2_i32 : i32
    %c0_i32 = arith.constant 0 : i32
    %c0_i32_0 = arith.constant 0 : i32
    %c0_i32_1 = arith.constant 0 : i32
    return %arg0, %2, %c0_i32, %c0_i32_0 : i32, i32, i32, i32
  }
  func.func @transform_3(%arg0: i32, %arg1: i32) -> (i32, i32, i32, i32) {
    %c8_i32 = arith.constant 8 : i32
    %0 = arith.muli %arg1, %c8_i32 : i32
    %c1_i32 = arith.constant 1 : i32
    %1 = arith.muli %0, %c1_i32 : i32
    %c3_i32 = arith.constant 3 : i32
    %2 = arith.addi %1, %c3_i32 : i32
    %c0_i32 = arith.constant 0 : i32
    %c0_i32_0 = arith.constant 0 : i32
    %c0_i32_1 = arith.constant 0 : i32
    return %arg0, %2, %c0_i32, %c0_i32_0 : i32, i32, i32, i32
  }
  func.func @transform_4(%arg0: i32, %arg1: i32) -> (i32, i32, i32, i32) {
    %c8_i32 = arith.constant 8 : i32
    %0 = arith.muli %arg1, %c8_i32 : i32
    %c1_i32 = arith.constant 1 : i32
    %1 = arith.muli %0, %c1_i32 : i32
    %c4_i32 = arith.constant 4 : i32
    %2 = arith.addi %1, %c4_i32 : i32
    %c0_i32 = arith.constant 0 : i32
    %c0_i32_0 = arith.constant 0 : i32
    %c0_i32_1 = arith.constant 0 : i32
    return %arg0, %2, %c0_i32, %c0_i32_0 : i32, i32, i32, i32
  }
  func.func @transform_5(%arg0: i32, %arg1: i32) -> (i32, i32, i32, i32) {
    %c8_i32 = arith.constant 8 : i32
    %0 = arith.muli %arg1, %c8_i32 : i32
    %c1_i32 = arith.constant 1 : i32
    %1 = arith.muli %0, %c1_i32 : i32
    %c5_i32 = arith.constant 5 : i32
    %2 = arith.addi %1, %c5_i32 : i32
    %c0_i32 = arith.constant 0 : i32
    %c0_i32_0 = arith.constant 0 : i32
    %c0_i32_1 = arith.constant 0 : i32
    return %arg0, %2, %c0_i32, %c0_i32_0 : i32, i32, i32, i32
  }
  func.func @transform_6(%arg0: i32, %arg1: i32) -> (i32, i32, i32, i32) {
    %c8_i32 = arith.constant 8 : i32
    %0 = arith.muli %arg1, %c8_i32 : i32
    %c1_i32 = arith.constant 1 : i32
    %1 = arith.muli %0, %c1_i32 : i32
    %c6_i32 = arith.constant 6 : i32
    %2 = arith.addi %1, %c6_i32 : i32
    %c0_i32 = arith.constant 0 : i32
    %c0_i32_0 = arith.constant 0 : i32
    %c0_i32_1 = arith.constant 0 : i32
    return %arg0, %2, %c0_i32, %c0_i32_0 : i32, i32, i32, i32
  }
  func.func @transform_7(%arg0: i32, %arg1: i32) -> (i32, i32, i32, i32) {
    %c8_i32 = arith.constant 8 : i32
    %0 = arith.muli %arg1, %c8_i32 : i32
    %c1_i32 = arith.constant 1 : i32
    %1 = arith.muli %0, %c1_i32 : i32
    %c7_i32 = arith.constant 7 : i32
    %2 = arith.addi %1, %c7_i32 : i32
    %c0_i32 = arith.constant 0 : i32
    %c0_i32_0 = arith.constant 0 : i32
    %c0_i32_1 = arith.constant 0 : i32
    return %arg0, %2, %c0_i32, %c0_i32_0 : i32, i32, i32, i32
  }
  func.func @transform_8(%arg0: i32, %arg1: i32) -> (i32, i32, i32, i32) {
    %c8_i32 = arith.constant 8 : i32
    %0 = arith.muli %arg1, %c8_i32 : i32
    %c1_i32 = arith.constant 1 : i32
    %1 = arith.muli %0, %c1_i32 : i32
    %c8_i32_0 = arith.constant 8 : i32
    %2 = arith.addi %1, %c8_i32_0 : i32
    %c0_i32 = arith.constant 0 : i32
    %c0_i32_1 = arith.constant 0 : i32
    %c0_i32_2 = arith.constant 0 : i32
    return %arg0, %2, %c0_i32, %c0_i32_1 : i32, i32, i32, i32
  }
  func.func @transform_9(%arg0: i32, %arg1: i32) -> (i32, i32, i32, i32) {
    %c8_i32 = arith.constant 8 : i32
    %0 = arith.muli %arg1, %c8_i32 : i32
    %c1_i32 = arith.constant 1 : i32
    %1 = arith.muli %0, %c1_i32 : i32
    %c9_i32 = arith.constant 9 : i32
    %2 = arith.addi %1, %c9_i32 : i32
    %c0_i32 = arith.constant 0 : i32
    %c0_i32_0 = arith.constant 0 : i32
    %c0_i32_1 = arith.constant 0 : i32
    return %arg0, %2, %c0_i32, %c0_i32_0 : i32, i32, i32, i32
  }
  func.func @transform_10(%arg0: i32, %arg1: i32) -> (i32, i32, i32, i32) {
    %c0_i32 = arith.constant 0 : i32
    %c0_i32_0 = arith.constant 0 : i32
    %c0_i32_1 = arith.constant 0 : i32
    %c0_i32_2 = arith.constant 0 : i32
    %c0_i32_3 = arith.constant 0 : i32
    return %c0_i32, %c0_i32_0, %c0_i32_1, %c0_i32_2 : i32, i32, i32, i32
  }
  func.func @transform_11(%arg0: i32, %arg1: i32) -> (i32, i32) {
    %c0_i32 = arith.constant 0 : i32
    %c0_i32_0 = arith.constant 0 : i32
    %c0_i32_1 = arith.constant 0 : i32
    return %c0_i32, %c0_i32_0 : i32, i32
  }
  func.func @transform_12(%arg0: i32, %arg1: i32) -> (i32, i32) {
    %c0_i32 = arith.constant 0 : i32
    %c0_i32_0 = arith.constant 0 : i32
    %c0_i32_1 = arith.constant 0 : i32
    return %c0_i32, %c0_i32_0 : i32, i32
  }
  func.func @transform_13(%arg0: i32, %arg1: i32) -> (i32, i32, i32, i32) {
    %c0_i32 = arith.constant 0 : i32
    %c0_i32_0 = arith.constant 0 : i32
    %c0_i32_1 = arith.constant 0 : i32
    return %arg0, %arg1, %c0_i32, %c0_i32_0 : i32, i32, i32, i32
  }
}

</mosaic_0001>

<bundles_post_ra>
// kernel: conv_bn_silu.1
= control target key start
LH: loop header
LB: loop body
LE: loop exit
PB: predicated region body
PF: predicated region fallthrough
CT: control target
= control target key end

     0   :  { %s9776_s0 = inlined_call_operand.vmem [shape: bf16[2,18,18,4], index: 0, kind: input, shape index: {}, may-alias: {0,1,2,3,4,5,6,7,8,9}]   ;;  %s9777_s1 = inlined_call_operand.vmem [shape: bf16[2,18,18,4], index: 1, kind: input, shape index: {}, may-alias: {0,1,2,3,4,5,6,7,8,9}]   ;;  %s9778_s2 = inlined_call_operand.vmem [shape: bf16[2,18,18,4], index: 2, kind: input, shape index: {}, may-alias: {0,1,2,3,4,5,6,7,8,9}]   ;;  %s9779_s3 = inlined_call_operand.vmem [shape: bf16[2,18,18,4], index: 3, kind: input, shape index: {}, may-alias: {0,1,2,3,4,5,6,7,8,9}]   ;;  %s9780_s4 = inlined_call_operand.vmem [shape: bf16[2,18,18,4], index: 4, kind: input, shape index: {}, may-alias: {0,1,2,3,4,5,6,7,8,9}]   ;;  %s9781_s5 = inlined_call_operand.vmem [shape: bf16[2,18,18,4], index: 5, kind: input, shape index: {}, may-alias: {0,1,2,3,4,5,6,7,8,9}]   ;;  %s9782_s6 = inlined_call_operand.vmem [shape: bf16[2,18,18,4], index: 6, kind: input, shape index: {}, may-alias: {0,1,2,3,4,5,6,7,8,9}]   ;;  %s9783_s7 = inlined_call_operand.vmem [shape: bf16[2,18,18,4], index: 7, kind: input, shape index: {}, may-alias: {0,1,2,3,4,5,6,7,8,9}]   ;;  %s9784_s8 = inlined_call_operand.vmem [shape: bf16[2,18,18,4], index: 8, kind: input, shape index: {}, may-alias: {0,1,2,3,4,5,6,7,8,9}]   ;;  %s9785_s9 = inlined_call_operand.vmem [shape: bf16[2,18,18,4], index: 9, kind: input, shape index: {}, may-alias: {0,1,2,3,4,5,6,7,8,9}]   ;;  %s9786_s10 = inlined_call_operand.vmem [shape: bf16[3,3,4,128], index: 10, kind: input, shape index: {}]   ;;  %s9787_s11 = inlined_call_operand.vmem [shape: f32[1,128], index: 11, kind: input, shape index: {}]   ;;  %s9788_s12 = inlined_call_operand.vmem [shape: f32[1,128], index: 12, kind: input, shape index: {}]   ;;  %s9789_s13 = inlined_call_operand.vmem [shape: f32[2,16,16,128], index: 13, kind: output, shape index: {}]  }
   0x1   :  { %9812 = sst [smem:[#allocation51_spill]] %s9776_s0 }
   0x2   :  { %9813 = sst [smem:[#allocation52_spill]] %s9777_s1 }
   0x3   :  { %9814 = sst [smem:[#allocation53_spill]] %s9778_s2 }
   0x4   :  { %9815 = sst [smem:[#allocation54_spill]] %s9779_s3 }
   0x5   :  { %9816 = sst [smem:[#allocation55_spill]] %s9780_s4 }
   0x6   :  { %9817 = sst [smem:[#allocation56_spill]] %s9781_s5 }
   0x7   :  { %9818 = sst [smem:[#allocation57_spill]] %s9782_s6 }
   0x8   :  { %9819 = sst [smem:[#allocation58_spill]] %s9783_s7 }
   0x9   :  { %9820 = sst [smem:[#allocation59_spill]] %s9784_s8 }
   0xa   :  { %9821 = sst [smem:[#allocation60_spill]] %s9785_s9 }
   0xb   :  { %9822 = sst [smem:[#allocation61_spill]] %s9786_s10 }
   0xc   :  { %9823 = sst [smem:[#allocation62_spill]] %s9787_s11 }
   0xd   :  { %9824 = sst [smem:[#allocation63_spill]] %s9788_s12 }
   0xe   :  { %9825 = sst [smem:[#allocation64_spill]] %s9789_s13 }
   0xf   :  { %s8033_s25 = smov 0   ;;  %s8035_s26 = smov 0  }
  0x10   :  { %s8037_s27 = smov 0   ;;  %s8039_s28 = smov 0  }
  0x11   :  { %s8041_s29 = smov 0   ;;  %s8043_s30 = smov 0  }
  0x12   :  { %s8045_s14 = smov 0   ;;  %s8047_s15 = smov 0  }
  0x13   :  { %s8049_s16 = smov 0   ;;  %s8051_s17 = smov 0  }
  0x14   :  { %s8053_s18 = smov 0   ;;  %s8055_s19 = smov 0  }
  0x15   :  { %s8057_s20 = smov 0   ;;  %s8059_s21 = smov 0  }
  0x16   :  { %s8061_s22 = smov 0   ;;  %s8063_s23 = smov 0  }
  0x17   :  { %s8065_s24 = smov 0   ;;  %s8067_s13 = smov 0  }
  0x18   :  { %s8069_s12 = smov 0   ;;  %s8071_s11 = smov 0  }
  0x19   :  { %s8073_s10 = smov 0   ;;  %s8075_s9 = smov 0  }
  0x1a   :  { %s8077_s8 = smov 0   ;;  %s8079_s7 = smov 0  }
  0x1b   :  { %s8081_s6 = smov 0  }
  0x1c LB: > { %9826 = sst [smem:[#allocation15_spill]] %s7865_s25  ;;  %s32_s4 = sadd.s32 1, %s7957_s7  ;;  %s7961_s6 = sphi %s8081_s6, %s23_s6   ;;  %s7957_s7 = sphi %s8079_s7, %s9979_s7   ;;  %s7953_s8 = sphi %s8077_s8, %s9964_s8   ;;  %s7949_s9 = sphi %s8075_s9, %s9978_s9   ;;  %s7945_s10 = sphi %s8073_s10, %s9977_s10   ;;  %s7941_s11 = sphi %s8071_s11, %s9976_s11   ;;  %s7937_s12 = sphi %s8069_s12, %s9975_s12   ;;  %s7933_s13 = sphi %s8067_s13, %s9974_s13   ;;  %s7929_s24 = sphi %s8065_s24, %s9973_s24   ;;  %s7925_s23 = sphi %s8063_s23, %s9972_s23   ;;  %s7921_s22 = sphi %s8061_s22, %s9971_s22   ;;  %s7917_s21 = sphi %s8059_s21, %s9970_s21   ;;  %s7913_s20 = sphi %s8057_s20, %s9969_s20   ;;  %s7909_s19 = sphi %s8055_s19, %s9968_s19   ;;  %s7905_s18 = sphi %s8053_s18, %s9967_s18   ;;  %s7901_s17 = sphi %s8051_s17, %s9951_s17   ;;  %s7897_s16 = sphi %s8049_s16, %s9950_s16   ;;  %s7893_s15 = sphi %s8047_s15, %s9949_s15   ;;  %s7889_s14 = sphi %s8045_s14, %s9948_s14   ;;  %s7885_s30 = sphi %s8043_s30, %s9962_s30   ;;  %s7881_s29 = sphi %s8041_s29, %s9961_s29   ;;  %s7877_s28 = sphi %s8039_s28, %s9959_s28   ;;  %s7873_s27 = sphi %s8037_s27, %s9958_s27   ;;  %s7869_s26 = sphi %s8035_s26, %s9956_s26   ;;  %s7865_s25 = sphi %s8033_s25, %s9947_s25  }
  0x1d   : > { %9827 = sst [smem:[#allocation16_spill]] %s7869_s26  ;;  %p33_p0 = scmp.ge.s32.totalorder %s32_s4, 2 }
  0x1e   : > { %9828 = sst [smem:[#allocation17_spill]] %s7873_s27  ;;  %s8161_s3 = sshll.u32 %s7957_s7, 3 }
  0x1f   : > { %9829 = sst [smem:[#allocation18_spill]] %s7881_s29  ;;  %p53_p1 = scmp.ne.s32.totalorder %s7949_s9, %s7945_s10 }
  0x20   : > { %9830 = sst [smem:[#allocation19_spill]] %s7889_s14  ;;  %s9981_s4 = smov (%p33_p0, %s32_s4), 0 }
  0x21   : > { %9831 = sst [smem:[#allocation20_spill]] %s7893_s15  ;;  %p54_p2 = scmp.eq.s32.totalorder %s7961_s6, 0 }
  0x22   : > { %9832 = sst [smem:[#allocation21_spill]] %s7897_s16  ;;  %s70_s2 = sadd.s32 1, %s8161_s3 }
  0x23   : > { %9833 = sst [smem:[#allocation22_spill]] %s7901_s17  ;;  %s8171_s5 = sshll.u32 %s9981_s4, 3 }
  0x24   : > { %9834 = sst [smem:[#allocation23_spill]] %s7905_s18  ;;  %s78_s1 = sadd.s32 1, %s7941_s11 }
  0x25   : > { %9835 = sst [smem:[#allocation24_spill]] %s7909_s19  ;;  %s42_s0 = ssub.s32 %s8161_s3, %s8171_s5 }
  0x26   : > { %9836 = sst [smem:[#allocation25_spill]] %s7913_s20  ;;  %p8178_p3 = por %p54_p2, %p53_p1 }
  0x27   : > { %9837 = sst [smem:[#allocation26_spill]] %s7921_s22  ;;  %p44_p4 = scmp.eq.s32.totalorder %s42_s0, 0 }
  0x28   : > { %9838 = sst [smem:[#allocation27_spill]] %s7929_s24  ;;  %s72_s25 = sadd.s32 1, %s8171_s5 }
  0x29   : > { %9839 = sst [smem:[#allocation28_spill]] %s7937_s12  ;;  %s74_s26 = ssub.s32 %s70_s2, %s72_s25 }
  0x2a   : > { %9840 = sst [smem:[#allocation29_spill]] %s7945_s10  ;;  %p85_p5 = scmp.ne.s32.totalorder %s7941_s11, %s7937_s12 }
  0x2b   : > { %9841 = sst [smem:[#allocation30_spill]] %s7953_s8  ;;  %s46_s8 = sadd.s32 1, %s7949_s9 }
  0x2c   : > { %9842 = sst [smem:[#allocation31_spill]] %s7957_s7  ;;  %p76_p6 = scmp.eq.s32.totalorder %s74_s26, 0 }
  0x2d   : > { %9843 = sst [smem:[#allocation32_spill]] %s9981_s4  ;;  %p8190_p7 = por %p85_p5, %p54_p2 }
  0x2e   : > { %s9844_s10 = scalar_select %p8178_p3, 1, 0 }
  0x2f   : > { %s8186_s7 = scalar_select %p44_p4, %s7949_s9, %s46_s8  }
  0x30   : > { %9845 = sst [smem:[#allocation33_spill]] %s9844_s10  ;;  %s102_s10 = sadd.s32 2, %s8161_s3 }
  0x31   : > { %9846 = sst [smem:[#allocation34_spill]] %s8186_s7  ;;  %s104_s0 = sadd.s32 2, %s8171_s5 }
  0x32   : > { %s8197_s27 = scalar_select %p76_p6, %s7941_s11, %s78_s1  }
  0x33   : > { %s106_s2 = ssub.s32 %s102_s10, %s104_s0  ;;  %s110_s8 = sadd.s32 1, %s7933_s13 }
  0x34   : > { %9848 = sst [smem:[#allocation35_spill]] %s8197_s27  ;;  %p108_p8 = scmp.eq.s32.totalorder %s106_s2, 0 }
  0x35   : > { %p117_p9 = scmp.ne.s32.totalorder %s7933_s13, %s7929_s24  ;;  %s134_s25 = sadd.s32 3, %s8161_s3 }
  0x36   : > { %s136_s26 = sadd.s32 3, %s8171_s5  ;;  %s142_s10 = sadd.s32 1, %s7925_s23 }
  0x37   : > { %s8205_s7 = scalar_select %p108_p8, %s7933_s13, %s110_s8  }
  0x38   : > { %p8209_p10 = por %p117_p9, %p54_p2  ;;  %s138_s1 = ssub.s32 %s134_s25, %s136_s26 }
  0x39   : > { %9849 = sst [smem:[#allocation36_spill]] %s8205_s7  ;;  %p140_p11 = scmp.eq.s32.totalorder %s138_s1, 0 }
  0x3a   : > { %p149_p12 = scmp.ne.s32.totalorder %s7925_s23, %s7921_s22  ;;  %s166_s27 = sadd.s32 4, %s8161_s3 }
  0x3b   : > { %s8218_s0 = scalar_select %p140_p11, %s7925_s23, %s142_s10  }
  0x3c   : > { %p8222_p13 = por %p149_p12, %p54_p2  ;;  %s168_s8 = sadd.s32 4, %s8171_s5 }
  0x3d   : > { %9851 = sst [smem:[#allocation37_spill]] %s8218_s0  ;;  %s170_s25 = ssub.s32 %s166_s27, %s168_s8 }
  0x3e   : > { %s174_s26 = sadd.s32 1, %s7917_s21  ;;  %p172_p0 = scmp.eq.s32.totalorder %s170_s25, 0 }
  0x3f   : > { %p181_p1 = scmp.ne.s32.totalorder %s7917_s21, %s7913_s20  ;;  %s198_s1 = sadd.s32 5, %s8161_s3 }
  0x40   : > { %s200_s10 = sadd.s32 5, %s8171_s5  ;;  %s206_s8 = sadd.s32 1, %s7909_s19 }
  0x41   : > { %s8233_s29 = scalar_select %p172_p0, %s7917_s21, %s174_s26  }
  0x42   : > { %p8237_p4 = por %p181_p1, %p54_p2  ;;  %s202_s27 = ssub.s32 %s198_s1, %s200_s10 }
  0x43   : > { %9853 = sst [smem:[#allocation38_spill]] %s8233_s29  ;;  %p204_p5 = scmp.eq.s32.totalorder %s202_s27, 0 }
  0x44   : > { %p213_p6 = scmp.ne.s32.totalorder %s7909_s19, %s7905_s18  ;;  %s230_s25 = sadd.s32 6, %s8161_s3 }
  0x45   : > { %s8246_s0 = scalar_select %p204_p5, %s7909_s19, %s206_s8  }
  0x46   : > { %p8250_p8 = por %p213_p6, %p54_p2  ;;  %s232_s29 = sadd.s32 6, %s8171_s5 }
  0x47   : > { %9855 = sst [smem:[#allocation39_spill]] %s8246_s0  ;;  %s234_s1 = ssub.s32 %s230_s25, %s232_s29 }
  0x48   : > { %s9856_s26 = scalar_select %p8250_p8, 1, 0 }
  0x49   : > { %s238_s10 = sadd.s32 1, %s7901_s17  ;;  %p236_p9 = scmp.eq.s32.totalorder %s234_s1, 0 }
  0x4a   : > { %p245_p11 = scmp.ne.s32.totalorder %s7901_s17, %s7897_s16  ;;  %s9857_s27 = sld [smem:[#allocation18_spill]] }
  0x4b   : > { %s262_s22 = sadd.s32 7, %s8161_s3  ;;  %s264_s8 = sadd.s32 7, %s8171_s5 }
  0x4c   : > { %s8261_s0 = scalar_select %p236_p9, %s7901_s17, %s238_s10  }
  0x4d   : > { %p8265_p12 = por %p245_p11, %p54_p2  ;;  %s266_s29 = ssub.s32 %s262_s22, %s264_s8 }
  0x4e   : > { %9858 = sst [smem:[#allocation40_spill]] %s8261_s0  ;;  %p268_p0 = scmp.eq.s32.totalorder %s266_s29, 0 }
  0x4f   : > { %s9859_s24 = scalar_select %p8265_p12, 1, 0 }
  0x50   : > { %s270_s25 = sadd.s32 1, %s7893_s15  ;;  %p277_p1 = scmp.ne.s32.totalorder %s7893_s15, %s7889_s14 }
  0x51   : > { %9860 = sst [smem:[#allocation41_spill]] %s9859_s24  ;;  %s294_s16 = sadd.s32 8, %s8161_s3 }
  0x52   : > { %s9861_s1 = sld [smem:[#allocation17_spill]]  ;;  %p8278_p5 = por %p277_p1, %p54_p2 }
  0x53   : > { %s9862_s18 = sld [smem:[#allocation32_spill]]  ;;  %s296_s0 = sadd.s32 8, %s8171_s5 }
  0x54   : > { %s9863_s20 = sld [smem:[#allocation31_spill]]  ;;  %s298_s22 = ssub.s32 %s294_s16, %s296_s0 }
  0x55   : > { %s8274_s19 = scalar_select %p268_p0, %s7893_s15, %s270_s25  }
  0x56   : > { %s9865_s10 = scalar_select %p8278_p5, 1, 0 }
  0x57   : > { %9864 = sst [smem:[#allocation42_spill]] %s8274_s19  ;;  %s302_s29 = sadd.s32 1, %s7885_s30 }
  0x58   : > { %9866 = sst [smem:[#allocation43_spill]] %s9865_s10  ;;  %p300_p6 = scmp.eq.s32.totalorder %s298_s22, 0 }
  0x59   : > { %s9867_s8 = sld [smem:[#allocation16_spill]]  ;;  %p309_p9 = scmp.ne.s32.totalorder %s7885_s30, %s9857_s27 }
  0x5a   : > { %s9868_s17 = sld [smem:[#allocation15_spill]]  ;;  %s326_s14 = sadd.s32 9, %s8161_s3 }
  0x5b   : > { %s328_s25 = sadd.s32 9, %s8171_s5  ;;  %p8293_p11 = por %p309_p9, %p54_p2 }
  0x5c   : > { %s8289_s19 = scalar_select %p300_p6, %s7885_s30, %s302_s29  }
  0x5d   : > { %s9869_s15 = scalar_select %p8293_p11, 1, 0 }
  0x5e   : > { %s330_s10 = ssub.s32 %s326_s14, %s328_s25  ;;  %s334_s16 = sadd.s32 1, %s7877_s28 }
  0x5f   : > { %p332_p0 = scmp.eq.s32.totalorder %s330_s10, 0  ;;  %p341_p1 = scmp.ne.s32.totalorder %s7877_s28, %s9861_s1 }
  0x60   : > { %s421_s0 = ssub.s32 %s9863_s20, %s9862_s18  ;;  %s425_s3 = sadd.s32 1, %s9867_s8 }
  0x61   : > { %s8303_s24 = scalar_select %p332_p0, %s7877_s28, %s334_s16  }
  0x62   : > { %p8307_p5 = por %p341_p1, %p54_p2  ;;  %p423_p12 = scmp.eq.s32.totalorder %s421_s0, 0 }
  0x63   : > { %p435_p6 = scmp.ne.s32.totalorder %s9867_s8, %s9868_s17  ;;  %s9871_s5 = sadd.s32 4294967295, %s7961_s6  }
  0x64   : > { %s9983_s8 = smov (!%p423_p12, %s9867_s8), %s425_s3  ;;  %p436_p9 = scmp.eq.s32.totalorder %s9871_s5, 1 }
  0x65   : > { %p6936_p8 = scmp.ge.s32.totalorder %s7961_s6, 2 }
  0x66   : > { %p8319_p11 = por %p436_p9, %p435_p6 }
  0x67   : > { %467 = sbr.rel (%p6936_p8) target bundleno = 267 (0x10b), region = 28 }
  0x6c   : > { %470 = sbr.rel (!%p8178_p3) target bundleno = 122 (0x7a), region = 32  ;;  %s9874_s20 = sld [smem:[#allocation31_spill]] (%p8178_p3) }
  0x6d   : > { %s472_s1 = sand.u32 (%p8178_p3), 1, %s7949_s9   ;;  %s9875_s25 = sld [smem:[#allocation51_spill]] (%p8178_p3) }
  0x6e   : > { %s7474_s22 = smul.u32 (%p8178_p3), 24, %s472_s1 }
  0x70   : > { %s474_s0 = scalar_lea.vmem (%p8178_p3), [#allocation4], %s7474_s22 }
  0x72   : > { %s7475_s10 = smul.u32 96, %s9874_s20 }
  0x74   : > { %s481_s16 = scalar_lea.vmem %s9875_s25, %s7475_s10 }
  0x75   : > { %v498_v0 = vld [vmem:[%s481_s16] sm:$0xff]   ;;  %v502_v1 = vld [vmem:[%s481_s16 + $0x8] sm:$0xf]  ;;  %v504_v2 = vld [vmem:[%s481_s16 + $0xd8] sm:$0xff]  }
  0x76   : > { %499 = vst [vmem:[%s474_s0] sm:$0xff] %v498_v0   ;;  %v508_v3 = vld [vmem:[%s481_s16 + $0xe0] sm:$0xf] }
  0x77   : > { %503 = vst [vmem:[%s474_s0 + $0x8] sm:$0xf] %v502_v1 }
  0x78   : > { %505 = vst [vmem:[%s474_s0 + $0xc] sm:$0xff] %v504_v2  }
  0x79   : > { %509 = vst [vmem:[%s474_s0 + $0x14] sm:$0xf] %v508_v3 }
  0x7a PF: > { %545 = sbr.rel (!%p8190_p7) target bundleno = 136 (0x88), region = 73  ;;  %s9876_s3 = sld [smem:[#allocation31_spill]] (%p8190_p7) }
  0x7b   : > { %s547_s5 = sand.u32 (%p8190_p7), 1, %s7941_s11   ;;  %s9877_s17 = sld [smem:[#allocation52_spill]] (%p8190_p7) }
  0x7c   : > { %s7476_s20 = smul.u32 (%p8190_p7), 24, %s547_s5 }
  0x7e   : > { %s549_s22 = scalar_lea.vmem (%p8190_p7), [#allocation5], %s7476_s20 }
  0x80   : > { %s6942_s18 = smul.u32 96, %s9876_s3 }
  0x82   : > { %s6661_s29 = scalar_lea.vmem %s9877_s17, %s6942_s18 }
  0x83   : > { %v6943_v4 = vld [vmem:[%s6661_s29 + $0xc] sm:$0xff]   ;;  %v6945_v5 = vld [vmem:[%s6661_s29 + $0x14] sm:$0xf]  ;;  %v6946_v6 = vld [vmem:[%s6661_s29 + $0xe4] sm:$0xff]  }
  0x84   : > { %575 = vst [vmem:[%s549_s22] sm:$0xff] %v6943_v4   ;;  %v6948_v7 = vld [vmem:[%s6661_s29 + $0xec] sm:$0xf] }
  0x85   : > { %579 = vst [vmem:[%s549_s22 + $0x8] sm:$0xf] %v6945_v5 }
  0x86   : > { %581 = vst [vmem:[%s549_s22 + $0xc] sm:$0xff] %v6946_v6  }
  0x87   : > { %585 = vst [vmem:[%s549_s22 + $0x14] sm:$0xf] %v6948_v7 }
  0x88 PF: > { %621 = sbr.rel (!%p8209_p10) target bundleno = 150 (0x96), region = 114  ;;  %s9878_s4 = sld [smem:[#allocation31_spill]] (%p8209_p10) }
  0x89   : > { %s623_s25 = sand.u32 (%p8209_p10), 1, %s7933_s13   ;;  %s9879_s18 = sld [smem:[#allocation53_spill]] (%p8209_p10) }
  0x8a   : > { %s7477_s0 = smul.u32 (%p8209_p10), 24, %s623_s25 }
  0x8c   : > { %s625_s20 = scalar_lea.vmem (%p8209_p10), [#allocation6], %s7477_s0 }
  0x8e   : > { %s6951_s16 = smul.u32 96, %s9878_s4 }
  0x90   : > { %s6670_s1 = scalar_lea.vmem %s9879_s18, %s6951_s16 }
  0x91   : > { %v6952_v8 = vld [vmem:[%s6670_s1 + $0x18] sm:$0xff]   ;;  %v6954_v9 = vld [vmem:[%s6670_s1 + $0x20] sm:$0xf]  ;;  %v6955_v10 = vld [vmem:[%s6670_s1 + $0xf0] sm:$0xff]  }
  0x92   : > { %651 = vst [vmem:[%s625_s20] sm:$0xff] %v6952_v8   ;;  %v6957_v11 = vld [vmem:[%s6670_s1 + $0xf8] sm:$0xf] }
  0x93   : > { %655 = vst [vmem:[%s625_s20 + $0x8] sm:$0xf] %v6954_v9 }
  0x94   : > { %657 = vst [vmem:[%s625_s20 + $0xc] sm:$0xff] %v6955_v10  }
  0x95   : > { %661 = vst [vmem:[%s625_s20 + $0x14] sm:$0xf] %v6957_v11 }
  0x96 PF: > { %697 = sbr.rel (!%p8222_p13) target bundleno = 164 (0xa4), region = 155  ;;  %s9880_s12 = sld [smem:[#allocation31_spill]] (%p8222_p13) }
  0x97   : > { %s699_s10 = sand.u32 (%p8222_p13), 1, %s7925_s23   ;;  %s9881_s25 = sld [smem:[#allocation54_spill]] (%p8222_p13) }
  0x98   : > { %s7478_s29 = smul.u32 (%p8222_p13), 24, %s699_s10 }
  0x9a   : > { %s701_s0 = scalar_lea.vmem (%p8222_p13), [#allocation7], %s7478_s29 }
  0x9c   : > { %s6960_s17 = smul.u32 96, %s9880_s12 }
  0x9e   : > { %s6679_s16 = scalar_lea.vmem %s9881_s25, %s6960_s17 }
  0x9f   : > { %v6961_v12 = vld [vmem:[%s6679_s16 + $0x24] sm:$0xff]   ;;  %v6963_v13 = vld [vmem:[%s6679_s16 + $0x2c] sm:$0xf]  ;;  %v6964_v14 = vld [vmem:[%s6679_s16 + $0xfc] sm:$0xff]  }
  0xa0   : > { %727 = vst [vmem:[%s701_s0] sm:$0xff] %v6961_v12   ;;  %v6966_v15 = vld [vmem:[%s6679_s16 + $0x104] sm:$0xf] }
  0xa1   : > { %731 = vst [vmem:[%s701_s0 + $0x8] sm:$0xf] %v6963_v13 }
  0xa2   : > { %733 = vst [vmem:[%s701_s0 + $0xc] sm:$0xff] %v6964_v14  }
  0xa3   : > { %737 = vst [vmem:[%s701_s0 + $0x14] sm:$0xf] %v6966_v15 }
  0xa4 PF: > { %773 = sbr.rel (!%p8237_p4) target bundleno = 178 (0xb2), region = 196  ;;  %s9882_s2 = sld [smem:[#allocation31_spill]] (%p8237_p4) }
  0xa5   : > { %s775_s3 = sand.u32 (%p8237_p4), 1, %s7917_s21   ;;  %s9883_s12 = sld [smem:[#allocation55_spill]] (%p8237_p4) }
  0xa6   : > { %s7479_s18 = smul.u32 (%p8237_p4), 24, %s775_s3 }
  0xa8   : > { %s777_s17 = scalar_lea.vmem (%p8237_p4), [#allocation8], %s7479_s18 }
  0xaa   : > { %s6969_s5 = smul.u32 96, %s9882_s2 }
  0xac   : > { %s6688_s10 = scalar_lea.vmem %s9883_s12, %s6969_s5 }
  0xad   : > { %v6970_v16 = vld [vmem:[%s6688_s10 + $0x30] sm:$0xff]   ;;  %v6972_v17 = vld [vmem:[%s6688_s10 + $0x38] sm:$0xf]  ;;  %v6973_v18 = vld [vmem:[%s6688_s10 + $0x108] sm:$0xff]  }
  0xae   : > { %803 = vst [vmem:[%s777_s17] sm:$0xff] %v6970_v16   ;;  %v6975_v19 = vld [vmem:[%s6688_s10 + $0x110] sm:$0xf] }
  0xaf   : > { %807 = vst [vmem:[%s777_s17 + $0x8] sm:$0xf] %v6972_v17 }
  0xb0   : > { %809 = vst [vmem:[%s777_s17 + $0xc] sm:$0xff] %v6973_v18  }
  0xb1   : > { %813 = vst [vmem:[%s777_s17 + $0x14] sm:$0xf] %v6975_v19 }
  0xb2 PF: > { %p9884_p2 = scmp.ne.s32.totalorder %s9856_s26, 0 }
  0xb3   : > { %s9885_s7 = sld [smem:[#allocation24_spill]] (%p9884_p2) }
  0xb4   : > { %849 = sbr.rel (!%p9884_p2) target bundleno = 194 (0xc2), region = 237  ;;  %s9886_s29 = sld [smem:[#allocation31_spill]] (%p9884_p2) }
  0xb5   : > { %s9887_s2 = sld [smem:[#allocation56_spill]] (%p9884_p2) }
  0xb9   : > { %s851_s22 = sand.u32 1, %s9885_s7  }
  0xba   : > { %s6978_s4 = smul.u32 96, %s9886_s29 }
  0xbb   : > { %s7480_s25 = smul.u32 24, %s851_s22 }
  0xbc   : > { %s6697_s3 = scalar_lea.vmem %s9887_s2, %s6978_s4 }
  0xbd   : > { %v6979_v20 = vld [vmem:[%s6697_s3 + $0x3c] sm:$0xff]   ;;  %v6981_v21 = vld [vmem:[%s6697_s3 + $0x44] sm:$0xf]  ;;  %v6982_v22 = vld [vmem:[%s6697_s3 + $0x114] sm:$0xff]   ;;  %s853_s5 = scalar_lea.vmem [#allocation9], %s7480_s25 }
  0xbe   : > { %879 = vst [vmem:[%s853_s5] sm:$0xff] %v6979_v20   ;;  %v6984_v23 = vld [vmem:[%s6697_s3 + $0x11c] sm:$0xf] }
  0xbf   : > { %883 = vst [vmem:[%s853_s5 + $0x8] sm:$0xf] %v6981_v21 }
  0xc0   : > { %885 = vst [vmem:[%s853_s5 + $0xc] sm:$0xff] %v6982_v22  }
  0xc1   : > { %889 = vst [vmem:[%s853_s5 + $0x14] sm:$0xf] %v6984_v23 }
  0xc2 PF: > { %s9888_s26 = sld [smem:[#allocation41_spill]] }
  0xc8   : > { %p9889_p3 = scmp.ne.s32.totalorder %s9888_s26, 0 }
  0xc9   : > { %s9890_s18 = sld [smem:[#allocation22_spill]] (%p9889_p3) }
  0xca   : > { %925 = sbr.rel (!%p9889_p3) target bundleno = 216 (0xd8), region = 278  ;;  %s9891_s1 = sld [smem:[#allocation31_spill]] (%p9889_p3) }
  0xcb   : > { %s9892_s29 = sld [smem:[#allocation57_spill]] (%p9889_p3) }
  0xcf   : > { %s927_s20 = sand.u32 1, %s9890_s18  }
  0xd0   : > { %s6987_s12 = smul.u32 96, %s9891_s1 }
  0xd1   : > { %s7481_s10 = smul.u32 24, %s927_s20 }
  0xd2   : > { %s6706_s22 = scalar_lea.vmem %s9892_s29, %s6987_s12 }
  0xd3   : > { %v6988_v24 = vld [vmem:[%s6706_s22 + $0x48] sm:$0xff]   ;;  %v6990_v25 = vld [vmem:[%s6706_s22 + $0x50] sm:$0xf]  ;;  %v6991_v26 = vld [vmem:[%s6706_s22 + $0x120] sm:$0xff]   ;;  %s929_s4 = scalar_lea.vmem [#allocation10], %s7481_s10 }
  0xd4   : > { %955 = vst [vmem:[%s929_s4] sm:$0xff] %v6988_v24   ;;  %v6993_v27 = vld [vmem:[%s6706_s22 + $0x128] sm:$0xf] }
  0xd5   : > { %959 = vst [vmem:[%s929_s4 + $0x8] sm:$0xf] %v6990_v25 }
  0xd6   : > { %961 = vst [vmem:[%s929_s4 + $0xc] sm:$0xff] %v6991_v26  }
  0xd7   : > { %965 = vst [vmem:[%s929_s4 + $0x14] sm:$0xf] %v6993_v27 }
  0xd8 PF: > { %s9893_s25 = sld [smem:[#allocation43_spill]] }
  0xde   : > { %p9894_p7 = scmp.ne.s32.totalorder %s9893_s25, 0 }
  0xdf   : > { %s9895_s16 = sld [smem:[#allocation20_spill]] (%p9894_p7) }
  0xe0   : > { %1001 = sbr.rel (!%p9894_p7) target bundleno = 238 (0xee), region = 319  ;;  %s9896_s0 = sld [smem:[#allocation31_spill]] (%p9894_p7) }
  0xe1   : > { %s9897_s1 = sld [smem:[#allocation58_spill]] (%p9894_p7) }
  0xe5   : > { %s1003_s2 = sand.u32 1, %s9895_s16  }
  0xe6   : > { %s6996_s3 = smul.u32 96, %s9896_s0 }
  0xe7   : > { %s7482_s5 = smul.u32 24, %s1003_s2 }
  0xe8   : > { %s6715_s20 = scalar_lea.vmem %s9897_s1, %s6996_s3 }
  0xe9   : > { %v6997_v28 = vld [vmem:[%s6715_s20 + $0x54] sm:$0xff]   ;;  %v6999_v29 = vld [vmem:[%s6715_s20 + $0x5c] sm:$0xf]  ;;  %v7000_v30 = vld [vmem:[%s6715_s20 + $0x12c] sm:$0xff]   ;;  %s1005_s12 = scalar_lea.vmem [#allocation11], %s7482_s5 }
  0xea   : > { %1031 = vst [vmem:[%s1005_s12] sm:$0xff] %v6997_v28   ;;  %v7002_v31 = vld [vmem:[%s6715_s20 + $0x134] sm:$0xf] }
  0xeb   : > { %1035 = vst [vmem:[%s1005_s12 + $0x8] sm:$0xf] %v6999_v29 }
  0xec   : > { %1037 = vst [vmem:[%s1005_s12 + $0xc] sm:$0xff] %v7000_v30  }
  0xed   : > { %1041 = vst [vmem:[%s1005_s12 + $0x14] sm:$0xf] %v7002_v31 }
  0xee PF: > { %p9898_p10 = scmp.ne.s32.totalorder %s9869_s15, 0 }
  0xef   : > { %s9899_s10 = sld [smem:[#allocation31_spill]] (%p9898_p10)  ;;  %s1079_s17 = sand.u32 (%p9898_p10), 1, %s7885_s30  }
  0xf0   : > { %1077 = sbr.rel (!%p9898_p10) target bundleno = 253 (0xfd), region = 360  ;;  %s9900_s25 = sld [smem:[#allocation59_spill]] (%p9898_p10) }
  0xf1   : > { %s7483_s29 = smul.u32 (%p9898_p10), 24, %s1079_s17 }
  0xf3   : > { %s1081_s0 = scalar_lea.vmem (%p9898_p10), [#allocation12], %s7483_s29 }
  0xf5   : > { %s7005_s7 = smul.u32 96, %s9899_s10 }
  0xf7   : > { %s6724_s16 = scalar_lea.vmem %s9900_s25, %s7005_s7 }
  0xf8   : > { %v7006_v32 = vld [vmem:[%s6724_s16 + $0x60] sm:$0xff]   ;;  %v7008_v33 = vld [vmem:[%s6724_s16 + $0x68] sm:$0xf]  ;;  %v7009_v34 = vld [vmem:[%s6724_s16 + $0x138] sm:$0xff]  }
  0xf9   : > { %1107 = vst [vmem:[%s1081_s0] sm:$0xff] %v7006_v32   ;;  %v7011_v35 = vld [vmem:[%s6724_s16 + $0x140] sm:$0xf] }
  0xfa   : > { %1111 = vst [vmem:[%s1081_s0 + $0x8] sm:$0xf] %v7008_v33 }
  0xfb   : > { %1113 = vst [vmem:[%s1081_s0 + $0xc] sm:$0xff] %v7009_v34  }
  0xfc   : > { %1117 = vst [vmem:[%s1081_s0 + $0x14] sm:$0xf] %v7011_v35 }
  0xfd PF: > { %1153 = sbr.rel (!%p8307_p5) target bundleno = 267 (0x10b), region = 401  ;;  %s9901_s15 = sld [smem:[#allocation31_spill]] (%p8307_p5) }
  0xfe   : > { %s1155_s2 = sand.u32 (%p8307_p5), 1, %s7877_s28   ;;  %s9902_s1 = sld [smem:[#allocation60_spill]] (%p8307_p5) }
  0xff   : > { %s7484_s5 = smul.u32 (%p8307_p5), 24, %s1155_s2 }
 0x101   : > { %s1157_s12 = scalar_lea.vmem (%p8307_p5), [#allocation13], %s7484_s5 }
 0x103   : > { %s7014_s3 = smul.u32 96, %s9901_s15 }
 0x105   : > { %s6733_s20 = scalar_lea.vmem %s9902_s1, %s7014_s3 }
 0x106   : > { %v7015_v36 = vld [vmem:[%s6733_s20 + $0x6c] sm:$0xff]   ;;  %v7017_v37 = vld [vmem:[%s6733_s20 + $0x74] sm:$0xf]  ;;  %v7018_v38 = vld [vmem:[%s6733_s20 + $0x144] sm:$0xff]  }
 0x107   : > { %1183 = vst [vmem:[%s1157_s12] sm:$0xff] %v7015_v36   ;;  %v7020_v39 = vld [vmem:[%s6733_s20 + $0x14c] sm:$0xf] }
 0x108   : > { %1187 = vst [vmem:[%s1157_s12 + $0x8] sm:$0xf] %v7017_v37 }
 0x109   : > { %1189 = vst [vmem:[%s1157_s12 + $0xc] sm:$0xff] %v7018_v38  }
 0x10a   : > { %1193 = vst [vmem:[%s1157_s12 + $0x14] sm:$0xf] %v7020_v39 }
 0x10b PF: > { %p7021_p13 = scmp.ge.s32.totalorder %s7961_s6, 1  ;;  %p1228_p4 = scmp.lt.s32.totalorder %s7961_s6, 3 }
 0x10d   : > { %p1229_p8 = pnand %p7021_p13, %p1228_p4 }
 0x10f   : > { %1232 = sbr.rel (%p1229_p8) target bundleno = 1033 (0x409), region = 442 }
 0x114   : > { %s9903_s17 = sld [smem:[#allocation61_spill]]  ;;  %vm1703_vm0 = vcmask 1041408   ;;  %vm1416_vm1 = vcmask 27648   ;;  %vm1654_vm2 = vcmask 31744   ;;  %vm1419_vm3 = vcmask 24576  }
 0x115   : > { %s9905_s7 = sld [smem:[#allocation25_spill]]  ;;  %vm1876_vm4 = vsmask.f32 3328  ;;  %vm1877_vm5 = vsmask.f32 7440  ;;  %vm2645_vm7 = vcmask 1042432  }
 0x116   : > { %s9906_s29 = sld [smem:[#allocation29_spill]]  ;;  %vm8541_vm6 = vmor %vm1876_vm4, %vm1877_vm5  ;;  %vm2646_vm8 = vcmask 1046532  }
 0x117   : > { %s9907_s25 = sld [smem:[#allocation23_spill]]  ;;  %vm8554_vm9 = vmor %vm2645_vm7, %vm2646_vm8 }
 0x118   : > { %s9911_s18 = sld [smem:[#allocation19_spill]] }
 0x119   : > { %s9912_s12 = sld [smem:[#allocation26_spill]] }
 0x11a   : > { %s9904_s4 = smov %s9903_s17  ;;  %v1573_v40 = vld [vmem:[%s9903_s17] sm:$0x3]  ;;  %s9908_s17 = sld [smem:[#allocation28_spill]] }
 0x11b   : > { %s1263_s22 = sand.u32 1, %s9905_s7   ;;  %v1705_v41 = vsel %vm1703_vm0, %v1573_v40, 0  ;;  %v7136_v42 = vld [vmem:[%s9904_s4 + $0x4] sm:$0x3]  ;;  %v7153_v44 = vld [vmem:[%s9904_s4 + $0x6] sm:$0x3] }
 0x11c   : > { %s7489_s16 = smul.u32 24, %s1263_s22  ;;  %s1235_s0 = sand.u32 1, %s9906_s29   ;;  %7471 = vmatpush.bf16.msra.mxu1 %v1705_v41  ;;  %7472 = vmatpush.bf16.msra.mxu2 %v1705_v41  ;;  %v2859_v43 = vsel %vm1703_vm0, %v7136_v42, 0  ;;  %v7103_v45 = vld [vmem:[%s9904_s4 + $0x2] sm:$0x3]  ;;  %v3209_v46 = vsel %vm1703_vm0, %v7153_v44, 0 }
 0x11d   : > { %s7485_s3 = smul.u32 24, %s1235_s0  ;;  %7473 = vmatpush.bf16.msra.mxu3 %v1705_v41  ;;  %1714 = vmatpush.bf16.msra.mxu0 %v1705_v41  ;;  %v2362_v47 = vsel %vm1703_vm0, %v7103_v45, 0  ;;  %v7234_v48 = vld [vmem:[%s9904_s4 + $0x8] sm:$0x3]  ;;  %s1270_s27 = sand.u32 1, %s9907_s25  }
 0x11e   : > { %s8418_s10 = scalar_lea.vmem [#allocation8], %s7489_s16  ;;  %v3927_v51 = vsel %vm1703_vm0, %v7234_v48, 0  ;;  %s9909_s29 = sld [smem:[#allocation21_spill]]  ;;  %v7284_v39 = vld [vmem:[%s9904_s4 + $0xc] sm:$0x3] }
 0x11f   : > { %v1463_v49 = vld [vmem:[%s8418_s10] sm:$0xf]  ;;  %v1464_v50 = vld [vmem:[%s8418_s10 + $0x4] sm:$0xf]  ;;  %s8424_s7 = scalar_lea.vmem [#allocation4], %s7485_s3  ;;  %s7490_s22 = smul.u32 24, %s1270_s27 }
 0x120   : > { %2868 = vmatpush.bf16.msrb.mxu2 %v2859_v43  ;;  %1470 = vst.msk [vmem:[#allocation2 + $0x30] sm:$0xf] %vm1416_vm1, %v1463_v49  ;;  %v1413_v52 = vld [vmem:[%s8424_s7 + $0xc] sm:$0xf]  ;;  %v1414_v53 = vld [vmem:[%s8424_s7 + $0x10] sm:$0xf]  ;;  %2371 = vmatpush.bf16.msrb.mxu1 %v2362_v47 }
 0x121   : > { %3218 = vmatpush.bf16.msrb.mxu3 %v3209_v46  ;;  %3936 = vmatpush.bf16.msrb.mxu0 %v3927_v51  ;;  %1471 = vst.msk [vmem:[#allocation2 + $0x34] sm:$0xf] %vm1416_vm1, %v1464_v50  ;;  %v1466_v54 = vld [vmem:[%s8418_s10 + $0xc] sm:$0xf]  ;;  %v1467_v55 = vld [vmem:[%s8418_s10 + $0x10] sm:$0xf] }
 0x122   : > { %1421 = vst.msk [vmem:[#allocation2 + $0x78] sm:$0xf] %vm1416_vm1, %v1413_v52  ;;  %v1410_v56 = vld [vmem:[%s8424_s7] sm:$0xf]  ;;  %v1411_v57 = vld [vmem:[%s8424_s7 + $0x4] sm:$0xf] }
 0x123   : > { %1422 = vst.msk [vmem:[#allocation2 + $0x7c] sm:$0xf] %vm1416_vm1, %v1414_v53  ;;  %s1242_s25 = sand.u32 1, %s9908_s17   ;;  %s9910_s16 = sld [smem:[#allocation27_spill]]  ;;  %v1412_v26 = vld [vmem:[%s8424_s7 + $0x8] sm:$0x1] }
 0x124   : > { %1473 = vst.msk [vmem:[#allocation2 + $0xa8] sm:$0xf] %vm1416_vm1, %v1466_v54  ;;  %s7486_s0 = smul.u32 24, %s1242_s25  ;;  %s1277_s15 = sand.u32 1, %s9909_s29   ;;  %v4771_v45 = vsel %vm1703_vm0, %v7284_v39, 0 }
 0x125   : > { %1474 = vst.msk [vmem:[#allocation2 + $0xac] sm:$0xf] %vm1416_vm1, %v1467_v55  ;;  %s7491_s2 = smul.u32 24, %s1277_s15  ;;  %s8440_s3 = scalar_lea.vmem [#allocation9], %s7490_s22  ;;  %v7365_v47 = vld [vmem:[%s9904_s4 + $0xe] sm:$0x3] }
 0x126   : > { %1417 = vst.msk [vmem:[#allocation2] sm:$0xf] %vm1416_vm1, %v1410_v56  ;;  %v1476_v58 = vld [vmem:[%s8440_s3] sm:$0xf]  ;;  %v1477_v59 = vld [vmem:[%s8440_s3 + $0x4] sm:$0xf] }
 0x127   : > { %1418 = vst.msk [vmem:[#allocation2 + $0x4] sm:$0xf] %vm1416_vm1, %v1411_v57  ;;  %v1479_v60 = vld [vmem:[%s8440_s3 + $0xc] sm:$0xf]  ;;  %s8447_s5 = scalar_lea.vmem [#allocation5], %s7486_s0  ;;  %s8462_s20 = scalar_lea.vmem [#allocation10], %s7491_s2 }
 0x128   : > { %v7425_v61 = vld [vmem:[#allocation2 + $0x30] sm:$0xff]  ;;  %1483 = vst.msk [vmem:[#allocation2 + $0x3c] sm:$0xf] %vm1416_vm1, %v1476_v58  ;;  %v1427_v62 = vld [vmem:[%s8447_s5 + $0xc] sm:$0xf]  ;;  %s1284_s27 = sand.u32 1, %s9911_s18  }
 0x129   : > { %s1249_s26 = sand.u32 1, %s9910_s16   ;;  %1484 = vst.msk [vmem:[#allocation2 + $0x40] sm:$0xf] %vm1416_vm1, %v1477_v59  ;;  %v1428_v63 = vld [vmem:[%s8447_s5 + $0x10] sm:$0xf]  ;;  %7091 = vmatmul.msk.bf16.vlgmr.msra.gmra.mxu1 %vm1654_vm2, %v7425_v61  ;;  %s7492_s29 = smul.u32 24, %s1284_s27 }
 0x12a   : > { %v7429_v0 = vld [vmem:[#allocation2 + $0x78] sm:$0xff]  ;;  %1434 = vst.msk [vmem:[#allocation2 + $0x84] sm:$0xf] %vm1416_vm1, %v1427_v62  ;;  %v1480_v1 = vld [vmem:[%s8440_s3 + $0x10] sm:$0xf]  ;;  %s7487_s1 = smul.u32 24, %s1249_s26 }
 0x12b   : > { %1435 = vst.msk [vmem:[#allocation2 + $0x88] sm:$0xf] %vm1416_vm1, %v1428_v63  ;;  %v1424_v2 = vld [vmem:[%s8447_s5] sm:$0xf]  ;;  %7095 = vmatmul.msk.bf16.vlgmr.msra.gmra.mxu2 %vm1654_vm2, %v7429_v0  ;;  %v1425_v4 = vld [vmem:[%s8447_s5 + $0x4] sm:$0xf] }
 0x12c   : > { %v7433_v3 = vld [vmem:[#allocation2 + $0xa8] sm:$0xff]  ;;  %1486 = vst.msk [vmem:[#allocation2 + $0xb4] sm:$0xf] %vm1416_vm1, %v1479_v60  ;;  %s8470_s17 = scalar_lea.vmem [#allocation6], %s7487_s1  ;;  %v1492_v10 = vld [vmem:[%s8462_s20 + $0xc] sm:$0xf]  ;;  %4780 = vmatpush.bf16.msra.mxu2 %v4771_v45 }
 0x12d   : > { %1487 = vst.msk [vmem:[#allocation2 + $0xb8] sm:$0xf] %vm1416_vm1, %v1480_v1  ;;  %v1489_v5 = vld [vmem:[%s8462_s20] sm:$0xf]  ;;  %7099 = vmatmul.msk.bf16.vlgmr.msra.gmra.mxu3 %vm1654_vm2, %v7433_v3  ;;  %v1490_v7 = vld [vmem:[%s8462_s20 + $0x4] sm:$0xf] }
 0x12e   : > { %v7421_v6 = vld [vmem:[#allocation2] sm:$0xff]  ;;  %1431 = vst.msk [vmem:[#allocation2 + $0xc] sm:$0xf] %vm1416_vm1, %v1424_v2  ;;  %v1440_v8 = vld [vmem:[%s8470_s17 + $0xc] sm:$0xf]  ;;  %s1256_s22 = sand.u32 1, %s9912_s12  }
 0x12f   : > { %1432 = vst.msk [vmem:[#allocation2 + $0x10] sm:$0xf] %vm1416_vm1, %v1425_v4  ;;  %7087 = vmatmul.msk.bf16.vlgmr.msra.gmra.mxu0 %vm1654_vm2, %v7421_v6  ;;  %v1441_v9 = vld [vmem:[%s8470_s17 + $0x10] sm:$0xf]  ;;  %s7488_s25 = smul.u32 24, %s1256_s22  ;;  %s8486_s16 = scalar_lea.vmem [#allocation11], %s7492_s29 }
 0x130   : > { %1496 = vst.msk [vmem:[#allocation2 + $0x48] sm:$0xf] %vm1416_vm1, %v1489_v5  ;;  %v1493_v11 = vld [vmem:[%s8462_s20 + $0x10] sm:$0xf]  ;;  %v1437_v12 = vld [vmem:[%s8470_s17] sm:$0xf] }
 0x131   : > { %1497 = vst.msk [vmem:[#allocation2 + $0x4c] sm:$0xf] %vm1416_vm1, %v1490_v7  ;;  %v1438_v13 = vld [vmem:[%s8470_s17 + $0x4] sm:$0xf]  ;;  %v1502_v14 = vld [vmem:[%s8486_s16] sm:$0xf] }
 0x132   : > { %1447 = vst.msk [vmem:[#allocation2 + $0x90] sm:$0xf] %vm1416_vm1, %v1440_v8  ;;  %v7426_v15 = vld [vmem:[#allocation2 + $0x3c] sm:$0xff]  ;;  %s8492_s0 = scalar_lea.vmem [#allocation7], %s7488_s25  ;;  %v7430_v18 = vld [vmem:[#allocation2 + $0x84] sm:$0xff]  ;;  %v5489_v50 = vsel %vm1703_vm0, %v7365_v47, 0 }
 0x133   : > { %1448 = vst.msk [vmem:[#allocation2 + $0x94] sm:$0xf] %vm1416_vm1, %v1441_v9  ;;  %v1503_v16 = vld [vmem:[%s8486_s16 + $0x4] sm:$0xf]  ;;  %v1453_v17 = vld [vmem:[%s8492_s0 + $0xc] sm:$0xf]  ;;  %5498 = vmatpush.bf16.msra.mxu3 %v5489_v50 }
 0x134   : > { %1499 = vst.msk [vmem:[#allocation2 + $0xc0] sm:$0xf] %vm1416_vm1, %v1492_v10  ;;  %v1454_v19 = vld [vmem:[%s8492_s0 + $0x10] sm:$0xf]  ;;  %v1505_v20 = vld [vmem:[%s8486_s16 + $0xc] sm:$0xf] }
 0x135   : > { %1500 = vst.msk [vmem:[#allocation2 + $0xc4] sm:$0xf] %vm1416_vm1, %v1493_v11  ;;  %v7434_v21 = vld [vmem:[#allocation2 + $0xb4] sm:$0xff]  ;;  %v1506_v22 = vld [vmem:[%s8486_s16 + $0x10] sm:$0xf]  ;;  %s9917_s22 = sld [smem:[#allocation18_spill]] }
 0x136   : > { %1444 = vst.msk [vmem:[#allocation2 + $0x18] sm:$0xf] %vm1416_vm1, %v1437_v12  ;;  %v1450_v23 = vld [vmem:[%s8492_s0] sm:$0xf]  ;;  %v7422_v24 = vld [vmem:[#allocation2 + $0xc] sm:$0xff]  ;;  %s9937_s1 = sld [smem:[#allocation63_spill]] }
 0x137   : > { %1445 = vst.msk [vmem:[#allocation2 + $0x1c] sm:$0xf] %vm1416_vm1, %v1438_v13  ;;  %v1451_v25 = vld [vmem:[%s8492_s0 + $0x4] sm:$0xf]  ;;  %v1426_v27 = vld [vmem:[%s8447_s5 + $0x8] sm:$0x1] }
 0x138   : > { %1509 = vst.msk [vmem:[#allocation2 + $0x54] sm:$0xf] %vm1416_vm1, %v1502_v14  ;;  %v7427_v28 = vld [vmem:[#allocation2 + $0x48] sm:$0xff]  ;;  %v1828_v29 = vld [vmem:[#allocation2] sm:$0xf]  ;;  %s9938_s12 = sld [smem:[#allocation15_spill]] }
 0x139   : > { %1510 = vst.msk [vmem:[#allocation2 + $0x58] sm:$0xf] %vm1416_vm1, %v1503_v16  ;;  %7092 = vmatmul.msk.bf16.gmra.mxu1 %vm1654_vm2, %v7426_v15  ;;  %v1829_v31 = vld [vmem:[#allocation2 + $0x4] sm:$0xf]  ;;  %v1880_v33 = vshrl.u32 %v1828_v29, 16  ;;  %v1883_v34 = vshll.u32 %v1828_v29, 16 }
 0x13a   : > { %1460 = vst.msk [vmem:[#allocation2 + $0x9c] sm:$0xf] %vm1416_vm1, %v1453_v17  ;;  %v7431_v30 = vld [vmem:[#allocation2 + $0x90] sm:$0xff]  ;;  %v1889_v35 = vshll.u32 %v1829_v31, 16  ;;  %v1893_v36 = vshrl.u32 %v1829_v31, 16 }
 0x13b   : > { %1461 = vst.msk [vmem:[#allocation2 + $0xa0] sm:$0xf] %vm1416_vm1, %v1454_v19  ;;  %7096 = vmatmul.msk.bf16.gmra.mxu2 %vm1654_vm2, %v7430_v18  ;;  %v1882_v38 = vrot.slane %v1880_v33, 4  ;;  %v3396_v40 = vld [vmem:[#allocation2 + $0xc] sm:$0xf]  ;;  %v1885_v42 = vrot.slane %v1883_v34, 5 }
 0x13c   : > { %1512 = vst.msk [vmem:[#allocation2 + $0xcc] sm:$0xf] %vm1416_vm1, %v1505_v20  ;;  %v7435_v32 = vld [vmem:[#allocation2 + $0xc0] sm:$0xff]  ;;  %v1439_v41 = vld [vmem:[%s8470_s17 + $0x8] sm:$0x1]  ;;  %v8523_v43 = vrot.slane %v1889_v35, 5 }
 0x13d   : > { %1513 = vst.msk [vmem:[#allocation2 + $0xd0] sm:$0xf] %vm1416_vm1, %v1506_v22  ;;  %7100 = vmatmul.msk.bf16.gmra.mxu3 %vm1654_vm2, %v7434_v21  ;;  %v1895_v44 = vrot.slane %v1893_v36, 4  ;;  %v3397_v46 = vld [vmem:[#allocation2 + $0x10] sm:$0xf]  ;;  %v1886_v54 = vor.u32 %v1885_v42, %v1882_v38  ;;  %v3445_v56 = vshrl.u32 %v3396_v40, 16 }
 0x13e   : > { %1457 = vst.msk [vmem:[#allocation2 + $0x24] sm:$0xf] %vm1416_vm1, %v1450_v23  ;;  %v7423_v37 = vld [vmem:[#allocation2 + $0x18] sm:$0xff]  ;;  %v7267_v48 = vld [vmem:[%s9904_s4 + $0xa] sm:$0x3]  ;;  %v3448_v59 = vshll.u32 %v3396_v40, 16 }
 0x13f   : > { %1458 = vst.msk [vmem:[#allocation2 + $0x28] sm:$0xf] %vm1416_vm1, %v1451_v25  ;;  %7088 = vmatmul.msk.bf16.gmra.mxu0 %vm1654_vm2, %v7422_v24  ;;  %v4421_v51 = vsel %vm1703_vm0, %v7267_v48, 0  ;;  %v7398_v52 = vld [vmem:[%s9904_s4 + $0x10] sm:$0x3]  ;;  %v1896_v55 = vor.u32 %v1895_v44, %v8523_v43  ;;  %v3454_v60 = vshll.u32 %v3397_v46, 16 }
 0x140   : > { %1420 = vst.msk [vmem:[#allocation2 + $0x8] sm:$0x1] %vm1419_vm3, %v1412_v26  ;;  %4430 = vmatpush.bf16.msra.mxu1 %v4421_v51  ;;  %v5983_v53 = vsel %vm1703_vm0, %v7398_v52, 0  ;;  %v2550_v58 = vld [vmem:[#allocation2 + $0x4] sm:$0xf]  ;;  %v3458_v61 = vshrl.u32 %v3397_v46, 16 }
 0x141   : > { %1433 = vst.msk [vmem:[#allocation2 + $0x14] sm:$0x1] %vm1419_vm3, %v1426_v27  ;;  %5992 = vmatpush.bf16.msra.mxu0 %v5983_v53  ;;  %v7428_v62 = vld [vmem:[#allocation2 + $0x54] sm:$0xff]  ;;  %v1887_v0 = vrot.slane %v1886_v54, 4  ;;  %v1897_v1 = vrot.slane %v1896_v55, 4  ;;  %v2650_v3 = vrot.slane %v2550_v58, 5 }
 0x142   : > { %1446 = vst.msk [vmem:[#allocation2 + $0x20] sm:$0x1] %vm1419_vm3, %v1439_v41  ;;  %v7432_v63 = vld [vmem:[#allocation2 + $0x9c] sm:$0xff]  ;;  %v3447_v4 = vrot.slane %v3445_v56, 4  ;;  %v3450_v8 = vrot.slane %v3448_v59, 5  ;;  %v8545_v9 = vrot.slane %v3454_v60, 5 }
 0x143   : > { %v2549_v2 = vld [vmem:[#allocation2] sm:$0xe]  ;;  %v3460_v10 = vrot.slane %v3458_v61, 4  ;;  %v1831_v13 = vld [vmem:[#allocation2 + $0xc] sm:$0xf]  ;;  %v1892_v15 = vsel %vm8541_vm6, %v1887_v0, %v8523_v43  ;;  %v2652_v17 = vrot.slane %v2650_v3, 4 }
 0x144   : > { %v7436_v12 = vld [vmem:[#allocation2 + $0xcc] sm:$0xff]  ;;  %v7120_v16 = vrot.slane %v2549_v2, 9  ;;  %v3451_v22 = vor.u32 %v3450_v8, %v3447_v4  ;;  %v1904_v25 = vshrl.u32 %v1831_v13, 16  ;;  %v1907_v26 = vshll.u32 %v1831_v13, 16  ;;  %v1452_v29 = vld [vmem:[%s8492_s0 + $0x8] sm:$0x1] }
 0x145   : > { %v1832_v14 = vld [vmem:[#allocation2 + $0x10] sm:$0xf]  ;;  %v3461_v23 = vor.u32 %v3460_v10, %v8545_v9  ;;  %v3399_v33 = vld [vmem:[#allocation2 + $0x18] sm:$0xf]  ;;  %v3400_v34 = vld [vmem:[#allocation2 + $0x1c] sm:$0xf] }
 0x146   : > { %v7424_v19 = vld [vmem:[#allocation2 + $0x24] sm:$0xff]  ;;  %v1913_v27 = vshll.u32 %v1832_v14, 16  ;;  %v2651_v31 = vsel %vm8554_vm9, %v7120_v16, %v2650_v3  ;;  %1459 = vst.msk [vmem:[#allocation2 + $0x2c] sm:$0x1] %vm1419_vm3, %v1452_v29  ;;  %v3452_v36 = vrot.slane %v3451_v22, 4  ;;  %v1906_v40 = vrot.slane %v1904_v25, 4 }
 0x147   : > { %v1830_v49 = vld [vmem:[#allocation2 + $0x8] sm:$0x1]  ;;  %v1909_v41 = vrot.slane %v1907_v26, 5  ;;  %v2553_v44 = vld [vmem:[#allocation2 + $0x10] sm:$0xf]  ;;  %v3469_v45 = vshrl.u32 %v3399_v33, 16 }
 0x148   : > { %v1899_v57 = vshll.u32 %v1830_v49, 16  ;;  %v2551_v7 = vld [vmem:[#allocation2 + $0x8] sm:$0x1]  ;;  %v3398_v11 = vld [vmem:[#allocation2 + $0x14] sm:$0x1]  ;;  %v8567_v42 = vrot.slane %v1913_v27, 5  ;;  %v2762_v49 = vunpack.c.l.b16 %v2651_v31  ;;  %v3457_v52 = vsel %vm8541_vm6, %v3452_v36, %v8545_v9 }
 0x149   : > { %7093 = vmatmul.msk.bf16.gmra.mxu1 %vm1654_vm2, %v7427_v28  ;;  %v2653_v18 = vrot.slane %v2551_v7, 5  ;;  %v3464_v24 = vshll.u32 %v3398_v11, 16  ;;  %v1917_v28 = vshrl.u32 %v1832_v14, 16  ;;  %v1833_v39 = vld [vmem:[#allocation2 + $0x14] sm:$0x1]  ;;  %v3472_v46 = vshll.u32 %v3399_v33, 16 }
 0x14a   : > { %v1901_v6 = vrot.slane %v1899_v57, 5  ;;  %v3478_v47 = vshll.u32 %v3400_v34, 16  ;;  %v3482_v48 = vshrl.u32 %v3400_v34, 16  ;;  %v1923_v53 = vshll.u32 %v1833_v39, 16  ;;  %v2552_v57 = vld [vmem:[#allocation2 + $0xc] sm:$0xe] }
 0x14b   : > { %7097 = vmatmul.msk.bf16.gmra.mxu2 %vm1654_vm2, %v7431_v30  ;;  %v2265_v30 = vunpack.c.l.b16 %v1892_v15  ;;  %v3466_v38 = vrot.slane %v3464_v24, 5  ;;  %v1919_v43 = vrot.slane %v1917_v28, 4  ;;  %v1910_v55 = vor.u32 %v1909_v41, %v1906_v40  ;;  %v2554_v59 = vld [vmem:[#allocation2 + $0x14] sm:$0x1]  ;;  %v3401_v0 = vld [vmem:[#allocation2 + $0x20] sm:$0x1] }
 0x14c   : > { %v1902_v20 = vsel %vm8541_vm6, %v1897_v1, %v1901_v6  ;;  %v2657_v58 = vrot.slane %v2553_v44, 5  ;;  %v3471_v60 = vrot.slane %v3469_v45, 4  ;;  %v3474_v61 = vrot.slane %v3472_v46, 5  ;;  %v1834_v6 = vld [vmem:[#allocation2 + $0x18] sm:$0xf]  ;;  %s1291_s25 = sand.u32 1, %s9917_s22  }
 0x14d   : > { %7101 = vmatmul.msk.bf16.gmra.mxu3 %vm1654_vm2, %v7435_v32  ;;  %v2654_v32 = vsel %vm8554_vm9, %v2652_v17, %v2653_v18  ;;  %v2266_v35 = vunpack.c.l.b16 %v1902_v20  ;;  %v1920_v56 = vor.u32 %v1919_v43, %v8567_v42  ;;  %v3830_v2 = vunpack.c.l.b16 %v3457_v52  ;;  %v1835_v7 = vld [vmem:[#allocation2 + $0x1c] sm:$0xf]  ;;  %s8650_s15 = smul.u32 24, %s1291_s25  ;;  %s1373_s27 = sand.u32 1, %s9938_s12   ;;  %v9538_v21 = vld [vmem:[%s9937_s1] ss:$0 sm:$0xff] }
 0x14e   : > { %v2763_v51 = vunpack.c.l.b16 %v2654_v32  ;;  %v1925_v4 = vrot.slane %v1923_v53, 5  ;;  %v1911_v8 = vrot.slane %v1910_v55, 4  ;;  %v7121_v9 = vrot.slane %v2552_v57, 9  ;;  %s9332_s29 = sshll.u32 %s1373_s27, 8 }
 0x14f   : > { %7089 = vmatmul.msk.bf16.gmra.mxu0 %vm1654_vm2, %v7423_v37  ;;  %v3462_v37 = vrot.slane %v3461_v23, 4  ;;  %v2297_v50 = vpack.c.b16 %v2266_v35, %v2265_v30  ;;  %v2659_v10 = vrot.slane %v2657_v58, 4  ;;  %v2660_v11 = vrot.slane %v2554_v59, 5  ;;  %v1465_v30 = vld [vmem:[%s8418_s10 + $0x8] sm:$0x1]  ;;  %s8664_s2 = scalar_lea.vmem [#allocation12], %s8650_s15 }
 0x150   : > { %v2794_v1 = vpack.c.b16 %v2763_v51, %v2762_v49  ;;  %v1921_v13 = vrot.slane %v1920_v56, 4  ;;  %v3475_v14 = vor.u32 %v3474_v61, %v3471_v60  ;;  %v3488_v16 = vshll.u32 %v3401_v0, 16  ;;  %1472 = vst.msk [vmem:[#allocation2 + $0x38] sm:$0x1] %vm1419_vm3, %v1465_v30  ;;  %v1836_v35 = vld [vmem:[#allocation2 + $0x20] sm:$0x1] }
 0x151   : > { %v3467_v54 = vsel %vm8541_vm6, %v3462_v37, %v3466_v38  ;;  %v1928_v17 = vshrl.u32 %v1834_v6, 16  ;;  %v1931_v18 = vshll.u32 %v1834_v6, 16  ;;  %v1941_v20 = vshrl.u32 %v1835_v7, 16  ;;  %v3402_v37 = vld [vmem:[#allocation2 + $0x24] sm:$0xf]  ;;  %s9351_s22 = scalar_lea.vmem [#allocation14], %s9332_s29 }
 0x152   : > { %v3831_v3 = vunpack.c.l.b16 %v3467_v54  ;;  %v1916_v23 = vsel %vm8541_vm6, %v1911_v8, %v8567_v42  ;;  %v2658_v24 = vsel %vm8554_vm9, %v7121_v9, %v2657_v58  ;;  %v2661_v25 = vsel %vm8554_vm9, %v2659_v10, %v2660_v11  ;;  %v3403_v38 = vld [vmem:[#allocation2 + $0x28] sm:$0xf]  ;;  %v2555_v59 = vld [vmem:[#allocation2 + $0x18] sm:$0xe]  ;;  %v2557_v61 = vld [vmem:[#allocation2 + $0x20] sm:$0x1] }
 0x153   : > { %v1926_v26 = vsel %vm8541_vm6, %v1921_v13, %v1925_v4  ;;  %v3476_v27 = vrot.slane %v3475_v14, 4  ;;  %v3490_v29 = vrot.slane %v3488_v16, 5  ;;  %v1930_v31 = vrot.slane %v1928_v17, 4  ;;  %v1837_v6 = vld [vmem:[#allocation2 + $0x24] sm:$0xf] }
 0x154   : > { %v3862_v22 = vpack.c.b16 %v3831_v3, %v3830_v2  ;;  %v1933_v32 = vrot.slane %v1931_v18, 5  ;;  %v1943_v34 = vrot.slane %v1941_v20, 4  ;;  %v2764_v36 = vunpack.c.l.b16 %v2658_v24  ;;  %v3404_v2 = vld [vmem:[#allocation2 + $0x2c] sm:$0x1]  ;;  %v7438_v3 = vld [vmem:[#allocation2 + $0x18] sm:$0xff] }
 0x155   : > { %v2267_v39 = vunpack.c.l.b16 %v1916_v23  ;;  %v2268_v40 = vunpack.c.l.b16 %v1926_v26  ;;  %v2765_v41 = vunpack.c.l.b16 %v2661_v25  ;;  %v1947_v46 = vshll.u32 %v1836_v35, 16  ;;  %v1478_v20 = vld [vmem:[%s8440_s3 + $0x8] sm:$0x1]  ;;  %v3405_v25 = vld [vmem:[#allocation2 + $0x30] sm:$0xf] }
 0x156   : > { %v1934_v44 = vor.u32 %v1933_v32, %v1930_v31  ;;  %v3496_v49 = vshll.u32 %v3402_v37, 16  ;;  %v3506_v51 = vshrl.u32 %v3403_v38, 16  ;;  %v7122_v9 = vrot.slane %v2555_v59, 9  ;;  %v3406_v26 = vld [vmem:[#allocation2 + $0x34] sm:$0xf] }
 0x157   : > { %v2298_v52 = vpack.c.b16 %v2268_v40, %v2267_v39  ;;  %v2795_v53 = vpack.c.b16 %v2765_v41, %v2764_v36  ;;  %v1949_v58 = vrot.slane %v1947_v46, 5  ;;  %v2667_v11 = vrot.slane %v2557_v61, 5  ;;  %1485 = vst.msk [vmem:[#allocation2 + $0x44] sm:$0x1] %vm1419_vm3, %v1478_v20  ;;  %v1839_v35 = vld [vmem:[#allocation2 + $0x2c] sm:$0x1] }
 0x158   : > { %v1935_v56 = vrot.slane %v1934_v44, 4  ;;  %v1952_v16 = vshrl.u32 %v1837_v6, 16  ;;  %v1955_v17 = vshll.u32 %v1837_v6, 16  ;;  %v3517_v36 = vshrl.u32 %v3405_v25, 16  ;;  %v2558_v61 = vld [vmem:[#allocation2 + $0x24] sm:$0xe] }
 0x159   : > { %7094 = vmatmul.msk.bf16.gmra.mxu1 %vm1654_vm2, %v7428_v62  ;;  %v3480_v62 = vrot.slane %v3478_v47, 5  ;;  %v2556_v47 = vld [vmem:[#allocation2 + $0x1c] sm:$0xf]  ;;  %v3530_v39 = vshrl.u32 %v3406_v26, 16  ;;  %v7123_v6 = vrot.slane %v2558_v61, 9 }
 0x15a   : > { %v2664_v60 = vrot.slane %v2556_v47, 5  ;;  %v1954_v31 = vrot.slane %v1952_v16, 4  ;;  %v1957_v32 = vrot.slane %v1955_v17, 5  ;;  %v1971_v47 = vshll.u32 %v1839_v35, 16  ;;  %v1491_v17 = vld [vmem:[%s8462_s20 + $0x8] sm:$0x1] }
 0x15b   : > { %7098 = vmatmul.msk.bf16.gmra.mxu2 %vm1654_vm2, %v7432_v63  ;;  %v3484_v63 = vrot.slane %v3482_v48, 4  ;;  %v3481_v42 = vsel %vm8541_vm6, %v3476_v27, %v3480_v62  ;;  %v3493_v48 = vshrl.u32 %v3402_v37, 16  ;;  %v3520_v37 = vshll.u32 %v3405_v25, 16  ;;  %1498 = vst.msk [vmem:[#allocation2 + $0x50] sm:$0x1] %vm1419_vm3, %v1491_v17 }
 0x15c   : > { %v3832_v54 = vunpack.c.l.b16 %v3481_v42  ;;  %v2666_v10 = vrot.slane %v2664_v60, 4  ;;  %v2665_v23 = vsel %vm8554_vm9, %v7122_v9, %v2664_v60  ;;  %v1973_v60 = vrot.slane %v1971_v47, 5  ;;  %v3408_v20 = vld [vmem:[#allocation2 + $0x3c] sm:$0xf] }
 0x15d   : > { %7102 = vmatmul.msk.bf16.gmra.mxu3 %vm1654_vm2, %v7436_v12  ;;  %v7437_v12 = vld [vmem:[#allocation2 + $0xc] sm:$0xff]  ;;  %v3485_v15 = vor.u32 %v3484_v63, %v3480_v62  ;;  %v3495_v62 = vrot.slane %v3493_v48, 4  ;;  %v3498_v63 = vrot.slane %v3496_v49, 5  ;;  %v2766_v41 = vunpack.c.l.b16 %v2665_v23  ;;  %v2559_v48 = vld [vmem:[#allocation2 + $0x28] sm:$0xf] }
 0x15e   : > { %v2668_v24 = vsel %vm8554_vm9, %v2666_v10, %v2667_v11  ;;  %v3407_v49 = vld [vmem:[#allocation2 + $0x38] sm:$0x1] }
 0x15f   : > { %7090 = vmatmul.msk.bf16.gmra.mxu0 %vm1654_vm2, %v7424_v19  ;;  %v1937_v19 = vshll.u32 %v1835_v7, 16  ;;  %v3486_v28 = vrot.slane %v3485_v15, 4  ;;  %v1838_v7 = vld [vmem:[#allocation2 + $0x28] sm:$0xf]  ;;  %v3499_v13 = vor.u32 %v3498_v63, %v3495_v62  ;;  %v3512_v15 = vshll.u32 %v3404_v2, 16 }
 0x160   : > { %v1961_v18 = vshll.u32 %v1838_v7, 16  ;;  %v2767_v42 = vunpack.c.l.b16 %v2668_v24  ;;  %v3536_v62 = vshll.u32 %v3407_v49, 16  ;;  %v7439_v63 = vld [vmem:[#allocation2 + $0x24] sm:$0xff] }
 0x161   : > { %v1939_v33 = vrot.slane %v1937_v19, 5  ;;  %v3491_v43 = vsel %vm8541_vm6, %v3486_v28, %v3490_v29  ;;  %v1965_v19 = vshrl.u32 %v1838_v7, 16  ;;  %v3500_v28 = vrot.slane %v3499_v13, 4 }
 0x162   : > { %v3833_v55 = vunpack.c.l.b16 %v3491_v43  ;;  %v3514_v30 = vrot.slane %v3512_v15, 5 }
 0x163   : > { %v1944_v45 = vor.u32 %v1943_v34, %v1939_v33  ;;  %v1940_v8 = vsel %vm8541_vm6, %v1935_v56, %v1939_v33  ;;  %v1963_v33 = vrot.slane %v1961_v18, 5  ;;  %v1967_v34 = vrot.slane %v1965_v19, 4 }
 0x164   : > { %v3863_v4 = vpack.c.b16 %v3833_v55, %v3832_v54  ;;  %v2796_v54 = vpack.c.b16 %v2767_v42, %v2766_v41 }
 0x165   : > { %v1945_v57 = vrot.slane %v1944_v45, 4  ;;  %v1958_v45 = vor.u32 %v1957_v32, %v1954_v31  ;;  %v1968_v46 = vor.u32 %v1967_v34, %v1963_v33  ;;  %v3544_v34 = vshll.u32 %v3408_v20, 16 }
 0x167   : > { %v1969_v59 = vrot.slane %v1968_v46, 4 }
 0x169   : > { %7104 = vmatmul.msk.bf16.vlgmr.msrb.gmra.mxu1 %vm1654_vm2, %v2297_v50  ;;  %v3502_v50 = vshll.u32 %v3403_v38, 16  ;;  %v3526_v38 = vshll.u32 %v3406_v26, 16  ;;  %v1974_v10 = vsel %vm8541_vm6, %v1969_v59, %v1973_v60  ;;  %v3410_v59 = vld [vmem:[#allocation2 + $0x44] sm:$0x1]  ;;  %v1844_v60 = vld [vmem:[#allocation2 + $0x40] sm:$0xf] }
 0x16a   : > { %v2272_v23 = vunpack.c.l.b16 %v1974_v10  ;;  %v1504_v10 = vld [vmem:[%s8486_s16 + $0x8] sm:$0x1] }
 0x16b   : > { %7137 = vmatmul.msk.bf16.vlgmr.msrb.gmra.mxu2 %vm1654_vm2, %v2794_v1  ;;  %v3504_v0 = vrot.slane %v3502_v50, 5  ;;  %v3508_v1 = vrot.slane %v3506_v51, 4  ;;  %v3519_v50 = vrot.slane %v3517_v36, 4  ;;  %v3522_v51 = vrot.slane %v3520_v37, 5  ;;  %v1842_v37 = vld [vmem:[#allocation2 + $0x38] sm:$0x1] }
 0x16c   : > { %v1995_v46 = vshll.u32 %v1842_v37, 16  ;;  %1511 = vst.msk [vmem:[#allocation2 + $0x5c] sm:$0x1] %vm1419_vm3, %v1504_v10 }
 0x16d   : > { %7218 = vmatmul.msk.bf16.vlgmr.msrb.gmra.mxu3 %vm1654_vm2, %v7437_v12  ;;  %v1950_v12 = vsel %vm8541_vm6, %v1945_v57, %v1949_v58  ;;  %v3509_v14 = vor.u32 %v3508_v1, %v3504_v0  ;;  %v3505_v43 = vsel %vm8541_vm6, %v3500_v28, %v3504_v0  ;;  %v2671_v57 = vrot.slane %v2559_v48, 5  ;;  %v2560_v0 = vld [vmem:[#allocation2 + $0x2c] sm:$0x1] }
 0x16e   : > { %v2270_v27 = vunpack.c.l.b16 %v1950_v12  ;;  %v3834_v55 = vunpack.c.l.b16 %v3505_v43  ;;  %v1959_v58 = vrot.slane %v1958_v45, 4  ;;  %v3523_v1 = vor.u32 %v3522_v51, %v3519_v50  ;;  %v2561_v50 = vld [vmem:[#allocation2 + $0x30] sm:$0xe] }
 0x16f   : > { %7235 = vmatmul.msk.bf16.vlgmr.msrb.gmra.mxu0 %vm1654_vm2, %v3862_v22  ;;  %v2269_v22 = vunpack.c.l.b16 %v1940_v8  ;;  %v3510_v29 = vrot.slane %v3509_v14, 4  ;;  %v2673_v7 = vrot.slane %v2671_v57, 4  ;;  %v1841_v8 = vld [vmem:[#allocation2 + $0x34] sm:$0xf]  ;;  %v2674_v11 = vrot.slane %v2560_v0, 5 }
 0x170   : > { %v1964_v9 = vsel %vm8541_vm6, %v1959_v58, %v1963_v33  ;;  %v3538_v12 = vrot.slane %v3536_v62, 5  ;;  %v3524_v13 = vrot.slane %v3523_v1, 4  ;;  %v1985_v18 = vshll.u32 %v1841_v8, 16 }
 0x171   : > { %v2299_v40 = vpack.c.b16 %v2270_v27, %v2269_v22  ;;  %v3515_v44 = vsel %vm8541_vm6, %v3510_v29, %v3514_v30  ;;  %v1989_v19 = vshrl.u32 %v1841_v8, 16  ;;  %v2271_v22 = vunpack.c.l.b16 %v1964_v9  ;;  %v3409_v30 = vld [vmem:[#allocation2 + $0x40] sm:$0xf] }
 0x172   : > { %v3835_v56 = vunpack.c.l.b16 %v3515_v44  ;;  %v2672_v24 = vsel %vm8554_vm9, %v7123_v6, %v2671_v57  ;;  %v2675_v25 = vsel %vm8554_vm9, %v2673_v7, %v2674_v11  ;;  %v1987_v31 = vrot.slane %v1985_v18, 5  ;;  %v3411_v18 = vld [vmem:[#allocation2 + $0x48] sm:$0xf] }
 0x173   : > { %v1991_v32 = vrot.slane %v1989_v19, 4  ;;  %v3541_v33 = vshrl.u32 %v3408_v20, 16  ;;  %v2768_v35 = vunpack.c.l.b16 %v2672_v24  ;;  %v2769_v36 = vunpack.c.l.b16 %v2675_v25  ;;  %v3412_v19 = vld [vmem:[#allocation2 + $0x4c] sm:$0xf] }
 0x174   : > { %v2300_v41 = vpack.c.b16 %v2272_v23, %v2271_v22  ;;  %v3546_v48 = vrot.slane %v3544_v34, 5  ;;  %v1997_v62 = vrot.slane %v1995_v46, 5  ;;  %v3560_v7 = vshll.u32 %v3410_v59, 16 }
 0x175   : > { %v1992_v45 = vor.u32 %v1991_v32, %v1987_v31  ;;  %v3543_v47 = vrot.slane %v3541_v33, 4  ;;  %v2797_v49 = vpack.c.b16 %v2769_v36, %v2768_v35  ;;  %v2009_v8 = vshll.u32 %v1844_v60, 16 }
 0x176   : > { %v2013_v9 = vshrl.u32 %v1844_v60, 16  ;;  %v3562_v22 = vrot.slane %v3560_v7, 5  ;;  %v3578_v32 = vshrl.u32 %v3412_v19, 16 }
 0x177   : > { %v1993_v61 = vrot.slane %v1992_v45, 4  ;;  %v3547_v0 = vor.u32 %v3546_v48, %v3543_v47  ;;  %v8648_v23 = vrot.slane %v2009_v8, 5  ;;  %v3413_v45 = vld [vmem:[#allocation2 + $0x50] sm:$0x1] }
 0x178   : > { %v2015_v24 = vrot.slane %v2013_v9, 4  ;;  %v3584_v60 = vshll.u32 %v3413_v45, 16 }
 0x179   : > { %7105 = vmatmul.msk.bf16.gmra.mxu1 %vm1654_vm2, %v2298_v52  ;;  %v3528_v52 = vrot.slane %v3526_v38, 5  ;;  %v2562_v38 = vld [vmem:[#allocation2 + $0x34] sm:$0xf] }
 0x17a   : > { %v2678_v51 = vrot.slane %v2562_v38, 5  ;;  %v2016_v38 = vor.u32 %v2015_v24, %v8648_v23  ;;  %v3586_v10 = vrot.slane %v3584_v60, 5  ;;  %v3414_v24 = vld [vmem:[#allocation2 + $0x54] sm:$0xf]  ;;  %v7442_v60 = vld [vmem:[#allocation2 + $0x48] sm:$0xff] }
 0x17b   : > { %7138 = vmatmul.msk.bf16.gmra.mxu2 %vm1654_vm2, %v2795_v53  ;;  %v3532_v53 = vrot.slane %v3530_v39, 4  ;;  %v3529_v26 = vsel %vm8541_vm6, %v3524_v13, %v3528_v52  ;;  %v3550_v39 = vshll.u32 %v3409_v30, 16  ;;  %v3548_v13 = vrot.slane %v3547_v0, 4 }
 0x17c   : > { %v3836_v42 = vunpack.c.l.b16 %v3529_v26  ;;  %v2680_v1 = vrot.slane %v2678_v51, 4 }
 0x17d   : > { %7219 = vmatmul.msk.bf16.gmra.mxu3 %vm1654_vm2, %v7438_v3  ;;  %v3533_v2 = vor.u32 %v3532_v53, %v3528_v52  ;;  %v1840_v3 = vld [vmem:[#allocation2 + $0x30] sm:$0xf]  ;;  %v2563_v52 = vld [vmem:[#allocation2 + $0x38] sm:$0x1]  ;;  %v8630_v53 = vrot.slane %v3550_v39, 5 }
 0x17e   : > { %v1976_v15 = vshrl.u32 %v1840_v3, 16  ;;  %v1979_v16 = vshll.u32 %v1840_v3, 16 }
 0x17f   : > { %7236 = vmatmul.msk.bf16.gmra.mxu0 %vm1654_vm2, %v3863_v4  ;;  %v3864_v4 = vpack.c.b16 %v3835_v56, %v3834_v55  ;;  %v3534_v14 = vrot.slane %v3533_v2, 4  ;;  %v1843_v55 = vld [vmem:[#allocation2 + $0x3c] sm:$0xf]  ;;  %v7440_v56 = vld [vmem:[#allocation2 + $0x30] sm:$0xff]  ;;  %v2681_v2 = vrot.slane %v2563_v52, 5  ;;  %v3553_v35 = vsel %vm8541_vm6, %v3548_v13, %v8630_v53 }
 0x180   : > { %v1978_v28 = vrot.slane %v1976_v15, 4  ;;  %v1981_v29 = vrot.slane %v1979_v16, 5  ;;  %v2000_v3 = vshrl.u32 %v1843_v55, 16  ;;  %v1517_v13 = vld [vmem:[%s8664_s2 + $0x8] sm:$0x1] }
 0x181   : > { %v3539_v27 = vsel %vm8541_vm6, %v3534_v14, %v3538_v12  ;;  %v1998_v12 = vsel %vm8541_vm6, %v1993_v61, %v1997_v62  ;;  %v2682_v15 = vsel %vm8554_vm9, %v2680_v1, %v2681_v2  ;;  %v1515_v61 = vld [vmem:[%s8664_s2] sm:$0xf]  ;;  %v1516_v62 = vld [vmem:[%s8664_s2 + $0x4] sm:$0xf]  ;;  %1524 = vst.msk [vmem:[#allocation2 + $0x68] sm:$0x1] %vm1419_vm3, %v1517_v13 }
 0x182   : > { %v3837_v43 = vunpack.c.l.b16 %v3539_v27  ;;  %v1982_v44 = vor.u32 %v1981_v29, %v1978_v28  ;;  %v2002_v16 = vrot.slane %v2000_v3, 4  ;;  %v2274_v26 = vunpack.c.l.b16 %v1998_v12  ;;  %v1845_v27 = vld [vmem:[#allocation2 + $0x44] sm:$0x1]  ;;  %v2565_v28 = vld [vmem:[#allocation2 + $0x40] sm:$0xf] }
 0x183   : > { %v3565_v29 = vshrl.u32 %v3411_v18, 16  ;;  %v2771_v34 = vunpack.c.l.b16 %v2682_v15  ;;  %v2019_v39 = vshll.u32 %v1845_v27, 16  ;;  %v1846_v1 = vld [vmem:[#allocation2 + $0x48] sm:$0xf]  ;;  %1522 = vst.msk [vmem:[#allocation2 + $0x60] sm:$0xf] %vm1416_vm1, %v1515_v61 }
 0x184   : > { %v3865_v57 = vpack.c.b16 %v3837_v43, %v3836_v42  ;;  %v1983_v58 = vrot.slane %v1982_v44, 4  ;;  %v2564_v42 = vld [vmem:[#allocation2 + $0x3c] sm:$0xe]  ;;  %v2566_v43 = vld [vmem:[#allocation2 + $0x44] sm:$0x1]  ;;  %v2027_v12 = vshll.u32 %v1846_v1, 16 }
 0x185   : > { %v3567_v46 = vrot.slane %v3565_v29, 4  ;;  %v2688_v59 = vrot.slane %v2566_v43, 5  ;;  %v1847_v3 = vld [vmem:[#allocation2 + $0x4c] sm:$0xf]  ;;  %1523 = vst.msk [vmem:[#allocation2 + $0x64] sm:$0xf] %vm1416_vm1, %v1516_v62 }
 0x186   : > { %v1988_v11 = vsel %vm8541_vm6, %v1983_v58, %v1987_v31  ;;  %v3574_v31 = vshll.u32 %v3412_v19, 16  ;;  %v2037_v19 = vshrl.u32 %v1847_v3, 16  ;;  %v2029_v29 = vrot.slane %v2027_v12, 5 }
 0x187   : > { %v2273_v25 = vunpack.c.l.b16 %v1988_v11  ;;  %v2024_v11 = vshrl.u32 %v1846_v1, 16 }
 0x188   : > { %v8660_v48 = vrot.slane %v3574_v31, 5 }
 0x189   : > { %7106 = vmatmul.msk.bf16.gmra.mxu1 %vm1654_vm2, %v2299_v40  ;;  %v3554_v40 = vshrl.u32 %v3409_v30, 16  ;;  %v3568_v30 = vshll.u32 %v3411_v18, 16  ;;  %v2033_v18 = vshll.u32 %v1847_v3, 16 }
 0x18b   : > { %7139 = vmatmul.msk.bf16.gmra.mxu2 %vm1654_vm2, %v2796_v54  ;;  %v3556_v54 = vrot.slane %v3554_v40, 4  ;;  %v2685_v40 = vrot.slane %v2565_v28, 5  ;;  %v3570_v47 = vrot.slane %v3568_v30, 5  ;;  %v2026_v28 = vrot.slane %v2024_v11, 4  ;;  %v1415_v11 = vld [vmem:[%s8424_s7 + $0x14] sm:$0x1] }
 0x18c   : > { %1423 = vst.msk [vmem:[#allocation2 + $0x80] sm:$0x1] %vm1419_vm3, %v1415_v11 }
 0x18d   : > { %7220 = vmatmul.msk.bf16.gmra.mxu3 %vm1654_vm2, %v7439_v63  ;;  %v7124_v63 = vrot.slane %v2561_v50, 9  ;;  %v3557_v6 = vor.u32 %v3556_v54, %v8630_v53  ;;  %v7441_v54 = vld [vmem:[#allocation2 + $0x3c] sm:$0xff]  ;;  %v2687_v58 = vrot.slane %v2685_v40, 4  ;;  %v2030_v45 = vor.u32 %v2029_v29, %v2026_v28 }
 0x18f   : > { %7237 = vmatmul.msk.bf16.gmra.mxu0 %vm1654_vm2, %v3864_v4  ;;  %v2003_v4 = vshll.u32 %v1843_v55, 16  ;;  %v2679_v14 = vsel %vm8554_vm9, %v7124_v63, %v2678_v51  ;;  %v3558_v20 = vrot.slane %v3557_v6, 4  ;;  %v3838_v51 = vunpack.c.l.b16 %v3553_v35  ;;  %v2568_v35 = vld [vmem:[#allocation2 + $0x4c] sm:$0xf] }
 0x190   : > { %v2770_v33 = vunpack.c.l.b16 %v2679_v14  ;;  %v2017_v55 = vrot.slane %v2016_v38, 4  ;;  %v3571_v63 = vor.u32 %v3570_v47, %v3567_v46  ;;  %v2689_v9 = vsel %vm8554_vm9, %v2687_v58, %v2688_v59  ;;  %v2569_v59 = vld [vmem:[#allocation2 + $0x50] sm:$0x1] }
 0x191   : > { %v2005_v17 = vrot.slane %v2003_v4, 5  ;;  %v3563_v37 = vsel %vm8541_vm6, %v3558_v20, %v3562_v22  ;;  %v2773_v27 = vunpack.c.l.b16 %v2689_v9  ;;  %v2031_v62 = vrot.slane %v2030_v45, 4 }
 0x192   : > { %v2798_v50 = vpack.c.b16 %v2771_v34, %v2770_v33  ;;  %v3839_v52 = vunpack.c.l.b16 %v3563_v37  ;;  %v8698_v33 = vrot.slane %v2033_v18, 5  ;;  %v2039_v34 = vrot.slane %v2037_v19, 4  ;;  %v1429_v19 = vld [vmem:[%s8447_s5 + $0x14] sm:$0x1] }
 0x193   : > { %v2006_v36 = vor.u32 %v2005_v17, %v2002_v16  ;;  %v3572_v16 = vrot.slane %v3571_v63, 4  ;;  %v3592_v37 = vshll.u32 %v3414_v24, 16  ;;  %v1849_v63 = vld [vmem:[#allocation2 + $0x54] sm:$0xf]  ;;  %1436 = vst.msk [vmem:[#allocation2 + $0x8c] sm:$0x1] %vm1419_vm3, %v1429_v19 }
 0x194   : > { %v3866_v2 = vpack.c.b16 %v3839_v52, %v3838_v51  ;;  %v2567_v51 = vld [vmem:[#allocation2 + $0x48] sm:$0xe]  ;;  %v2692_v52 = vrot.slane %v2568_v35, 5  ;;  %v2048_v13 = vshrl.u32 %v1849_v63, 16  ;;  %v7443_v19 = vld [vmem:[#allocation2 + $0x54] sm:$0xff] }
 0x195   : > { %v2007_v53 = vrot.slane %v2006_v36, 4  ;;  %v3577_v30 = vsel %vm8541_vm6, %v3572_v16, %v8660_v48  ;;  %v3589_v36 = vshrl.u32 %v3414_v24, 16  ;;  %v7126_v3 = vrot.slane %v2567_v51, 9 }
 0x196   : > { %v2051_v16 = vshll.u32 %v1849_v63, 16  ;;  %v2036_v24 = vsel %vm8541_vm6, %v2031_v62, %v8698_v33  ;;  %v2572_v62 = vld [vmem:[#allocation2 + $0x5c] sm:$0x1] }
 0x197   : > { %v2012_v6 = vsel %vm8541_vm6, %v2007_v53, %v8648_v23  ;;  %v3416_v53 = vld [vmem:[#allocation2 + $0x5c] sm:$0x1] }
 0x198   : > { %v2275_v22 = vunpack.c.l.b16 %v2012_v6  ;;  %v3608_v6 = vshll.u32 %v3416_v53, 16  ;;  %v2053_v35 = vrot.slane %v2051_v16, 5 }
 0x199   : > { %7107 = vmatmul.msk.bf16.gmra.mxu1 %vm1654_vm2, %v2300_v41  ;;  %v2301_v41 = vpack.c.b16 %v2274_v26, %v2273_v25  ;;  %v3415_v25 = vld [vmem:[#allocation2 + $0x58] sm:$0xf] }
 0x19a   : > { %v3598_v38 = vshll.u32 %v3415_v25, 16 }
 0x19b   : > { %7140 = vmatmul.msk.bf16.gmra.mxu2 %vm1654_vm2, %v2797_v49  ;;  %v3580_v49 = vrot.slane %v3578_v32, 4  ;;  %v1848_v32 = vld [vmem:[#allocation2 + $0x50] sm:$0x1] }
 0x19d   : > { %7221 = vmatmul.msk.bf16.gmra.mxu3 %vm1654_vm2, %v7440_v56  ;;  %v2021_v56 = vrot.slane %v2019_v39, 5  ;;  %v3581_v0 = vor.u32 %v3580_v49, %v8660_v48  ;;  %v3602_v39 = vshrl.u32 %v3415_v25, 16  ;;  %v2040_v49 = vor.u32 %v2039_v34, %v8698_v33 }
 0x19e   : > { %v2050_v33 = vrot.slane %v2048_v13, 4 }
 0x19f   : > { %7238 = vmatmul.msk.bf16.gmra.mxu0 %vm1654_vm2, %v3865_v57  ;;  %v7125_v57 = vrot.slane %v2564_v42, 9  ;;  %v2022_v7 = vsel %vm8541_vm6, %v2017_v55, %v2021_v56  ;;  %v3582_v17 = vrot.slane %v3581_v0, 4  ;;  %v3840_v42 = vunpack.c.l.b16 %v3577_v30  ;;  %v1850_v0 = vld [vmem:[#allocation2 + $0x58] sm:$0xf] }
 0x1a0   : > { %v2276_v26 = vunpack.c.l.b16 %v2022_v7  ;;  %v3594_v55 = vrot.slane %v3592_v37, 5  ;;  %v8707_v56 = vrot.slane %v3598_v38, 5  ;;  %v2041_v1 = vrot.slane %v2040_v49, 4 }
 0x1a1   : > { %v2686_v8 = vsel %vm8554_vm9, %v7125_v57, %v2685_v40  ;;  %v3587_v31 = vsel %vm8541_vm6, %v3582_v17, %v3586_v10  ;;  %v3604_v57 = vrot.slane %v3602_v39, 4  ;;  %v2694_v7 = vrot.slane %v2692_v52, 4 }
 0x1a2   : > { %v2772_v23 = vunpack.c.l.b16 %v2686_v8  ;;  %v3841_v43 = vunpack.c.l.b16 %v3587_v31  ;;  %v2695_v8 = vrot.slane %v2569_v59, 5  ;;  %v2057_v17 = vshll.u32 %v1850_v0, 16  ;;  %v3417_v31 = vld [vmem:[#allocation2 + $0x60] sm:$0xf] }
 0x1a3   : > { %v3605_v10 = vor.u32 %v3604_v57, %v8707_v56  ;;  %v2061_v18 = vshrl.u32 %v1850_v0, 16  ;;  %v2277_v38 = vunpack.c.l.b16 %v2036_v24  ;;  %v3616_v45 = vshll.u32 %v3417_v31, 16 }
 0x1a4   : > { %v2799_v48 = vpack.c.b16 %v2773_v27, %v2772_v23  ;;  %v3867_v61 = vpack.c.b16 %v3841_v43, %v3840_v42  ;;  %v2693_v27 = vsel %vm8554_vm9, %v7126_v3, %v2692_v52  ;;  %v2696_v28 = vsel %vm8554_vm9, %v2694_v7, %v2695_v8  ;;  %v2571_v42 = vld [vmem:[#allocation2 + $0x58] sm:$0xf] }
 0x1a5   : > { %v3606_v30 = vrot.slane %v3605_v10, 4  ;;  %v2063_v37 = vrot.slane %v2061_v18, 4  ;;  %v3613_v43 = vshrl.u32 %v3417_v31, 16  ;;  %v2775_v51 = vunpack.c.l.b16 %v2696_v28  ;;  %v1853_v31 = vld [vmem:[#allocation2 + $0x7c] sm:$0xf] }
 0x1a6   : > { %v8658_v44 = vpop.f32.mrf.mxu1  ;;  %v2699_v63 = vrot.slane %v2571_v42, 5 }
 0x1a7   : > { %v3615_v3 = vrot.slane %v3613_v43, 4  ;;  %v1442_v43 = vld [vmem:[%s8470_s17 + $0x14] sm:$0x1]  ;;  %s9944_s17 = sld [smem:[#allocation64_spill]] (%p8319_p11) }
 0x1a8   : > { %v2701_v24 = vrot.slane %v2699_v63, 4  ;;  %1449 = vst.msk [vmem:[#allocation2 + $0x98] sm:$0x1] %vm1419_vm3, %v1442_v43 }
 0x1a9   : > { %7108 = vmatmul.msk.bf16.gmra.mxu1 %vm1654_vm2, %v2301_v41  ;;  %v2302_v41 = vpack.c.b16 %v2276_v26, %v2275_v22  ;;  %v3610_v26 = vrot.slane %v3608_v6, 5 }
 0x1ab   : > { %7141 = vmatmul.msk.bf16.gmra.mxu2 %vm1654_vm2, %v2798_v50  ;;  %v2043_v50 = vshll.u32 %v1848_v32, 16  ;;  %v3418_v32 = vld [vmem:[#allocation2 + $0x64] sm:$0xf] }
 0x1ac   : > { %v8672_v4 = vpop.f32.mrf.mxu0  ;;  %v3626_v49 = vshrl.u32 %v3418_v32, 16 }
 0x1ad   : > { %7222 = vmatmul.msk.bf16.gmra.mxu3 %vm1654_vm2, %v7441_v54  ;;  %v3591_v54 = vrot.slane %v3589_v36, 4  ;;  %v8737_v36 = vrot.slane %v2057_v17, 5 }
 0x1ae   : > { %v8685_v14 = vpop.f32.mrf.mxu2  ;;  %v8687_v15 = vpop.f32.mrf.mxu1  ;;  %v3628_v7 = vrot.slane %v3626_v49, 4 }
 0x1af   : > { %7239 = vmatmul.msk.bf16.gmra.mxu0 %vm1654_vm2, %v3866_v2  ;;  %v2045_v2 = vrot.slane %v2043_v50, 5  ;;  %v3595_v9 = vor.u32 %v3594_v55, %v3591_v54  ;;  %v2774_v50 = vunpack.c.l.b16 %v2693_v27  ;;  %v3611_v54 = vsel %vm8541_vm6, %v3606_v30, %v3610_v26 }
 0x1b0   : > { %v8691_v20 = vpop.f32.mrf.mxu3  ;;  %v2054_v55 = vor.u32 %v2053_v35, %v2050_v33  ;;  %v2064_v57 = vor.u32 %v2063_v37, %v8737_v36  ;;  %v3843_v10 = vunpack.c.l.b16 %v3611_v54 }
 0x1b1   : > { %v2046_v25 = vsel %vm8541_vm6, %v2041_v1, %v2045_v2  ;;  %v3596_v29 = vrot.slane %v3595_v9, 4  ;;  %v3419_v2 = vld [vmem:[#allocation2 + $0x68] sm:$0x1]  ;;  %v2800_v8 = vpack.c.b16 %v2775_v51, %v2774_v50  ;;  %v2081_v50 = vshll.u32 %v1853_v31, 16 }
 0x1b2   : > { %v2278_v39 = vunpack.c.l.b16 %v2046_v25  ;;  %v2055_v13 = vrot.slane %v2054_v55, 4  ;;  %v2065_v16 = vrot.slane %v2064_v57, 4  ;;  %v2702_v25 = vrot.slane %v2572_v62, 5  ;;  %v3420_v57 = vld [vmem:[#allocation2 + $0x84] sm:$0xf] }
 0x1b3   : > { %v3601_v52 = vsel %vm8541_vm6, %v3596_v29, %v8707_v56  ;;  %v3618_v56 = vrot.slane %v3616_v45, 5  ;;  %v3632_v26 = vshll.u32 %v3419_v2, 16  ;;  %v1852_v29 = vld [vmem:[#allocation2 + $0x78] sm:$0xf]  ;;  %v2085_v51 = vshrl.u32 %v1853_v31, 16 }
 0x1b4   : > { %v8700_v40 = vpop.f32.mrf.mxu0  ;;  %v3842_v9 = vunpack.c.l.b16 %v3601_v52  ;;  %v2060_v33 = vsel %vm8541_vm6, %v2055_v13, %v8737_v36  ;;  %v2075_v42 = vshll.u32 %v1852_v29, 16  ;;  %v3640_v13 = vshll.u32 %v3420_v57, 16  ;;  %v2573_v31 = vld [vmem:[#allocation2 + $0x78] sm:$0xe] }
 0x1b5   : > { %v3619_v27 = vor.u32 %v3618_v56, %v3615_v3  ;;  %v2279_v54 = vunpack.c.l.b16 %v2060_v33  ;;  %v1854_v56 = vld [vmem:[#allocation2 + $0x80] sm:$0x1] }
 0x1b6   : > { %v8702_v46 = vpop.f32.mrf.mxu2  ;;  %v8704_v47 = vpop.f32.mrf.mxu1  ;;  %v3868_v30 = vpack.c.b16 %v3843_v10, %v3842_v9  ;;  %v2574_v9 = vld [vmem:[#allocation2 + $0x7c] sm:$0xf]  ;;  %v3637_v10 = vshrl.u32 %v3420_v57, 16  ;;  %v2575_v33 = vld [vmem:[#allocation2 + $0x80] sm:$0x1] }
 0x1b7   : > { %v3620_v36 = vrot.slane %v3619_v27, 4  ;;  %v2091_v27 = vshll.u32 %v1854_v56, 16  ;;  %v1856_v57 = vld [vmem:[#allocation2 + $0x88] sm:$0xf] }
 0x1b8   : > { %v8709_v58 = vpop.f32.mrf.mxu3 }
 0x1b9   : > { %7109 = vmatmul.msk.bf16.gmra.mxu1 %vm1654_vm2, %v2302_v41  ;;  %v1851_v41 = vld [vmem:[#allocation2 + $0x5c] sm:$0x1] }
 0x1ba   : > { %v2067_v59 = vshll.u32 %v1851_v41, 16  ;;  %v2072_v41 = vshrl.u32 %v1852_v29, 16 }
 0x1bb   : > { %7142 = vmatmul.msk.bf16.gmra.mxu2 %vm1654_vm2, %v2799_v48  ;;  %v3622_v48 = vshll.u32 %v3418_v32, 16 }
 0x1bc   : > { %v8715_v12 = vpop.f32.mrf.mxu0  ;;  %v2069_v17 = vrot.slane %v2067_v59, 5  ;;  %v3421_v59 = vld [vmem:[#allocation2 + $0x88] sm:$0xf]  ;;  %v2074_v62 = vrot.slane %v2072_v41, 4 }
 0x1bd   : > { %7223 = vmatmul.msk.bf16.gmra.mxu3 %vm1654_vm2, %v7442_v60  ;;  %v2303_v60 = vpack.c.b16 %v2278_v39, %v2277_v38  ;;  %v3624_v6 = vrot.slane %v3622_v48, 5  ;;  %v2703_v38 = vsel %vm8554_vm9, %v2701_v24, %v2702_v25  ;;  %v3634_v39 = vrot.slane %v3632_v26, 5 }
 0x1be   : > { %v8720_v22 = vpop.f32.mrf.mxu2  ;;  %v8722_v23 = vpop.f32.mrf.mxu1  ;;  %v2070_v35 = vsel %vm8541_vm6, %v2065_v16, %v2069_v17  ;;  %v3646_v16 = vshll.u32 %v3421_v59, 16  ;;  %v3650_v17 = vshrl.u32 %v3421_v59, 16 }
 0x1bf   : > { %7240 = vmatmul.msk.bf16.gmra.mxu0 %vm1654_vm2, %v3867_v61  ;;  %v2570_v61 = vld [vmem:[#allocation2 + $0x54] sm:$0xe]  ;;  %v3629_v28 = vor.u32 %v3628_v7, %v3624_v6  ;;  %v2280_v55 = vunpack.c.l.b16 %v2070_v35  ;;  %v3625_v2 = vsel %vm8541_vm6, %v3620_v36, %v3624_v6  ;;  %v8780_v7 = vrot.slane %v2081_v50, 5  ;;  %v1855_v36 = vld [vmem:[#allocation2 + $0x84] sm:$0xf] }
 0x1c0   : > { %v8735_v34 = vpop.f32.mrf.mxu3  ;;  %v7127_v18 = vrot.slane %v2570_v61, 9  ;;  %v2777_v61 = vunpack.c.l.b16 %v2703_v38  ;;  %v3844_v24 = vunpack.c.l.b16 %v3625_v2  ;;  %v2706_v35 = vrot.slane %v2574_v9, 5 }
 0x1c1   : > { %9918 = vst [vmem:[#allocation44_spill] sm:$0xff] %v8735_v34  ;;  %v3630_v49 = vrot.slane %v3629_v28, 4  ;;  %v3639_v38 = vrot.slane %v3637_v10, 4  ;;  %v8789_v41 = vrot.slane %v3646_v16, 5  ;;  %v2099_v56 = vshll.u32 %v1855_v36, 16 }
 0x1c2   : > { %v2700_v37 = vsel %vm8554_vm9, %v7127_v18, %v2699_v63  ;;  %v2077_v63 = vrot.slane %v2075_v42, 5  ;;  %v3652_v42 = vrot.slane %v3650_v17, 4  ;;  %v2105_v9 = vshll.u32 %v1856_v57, 16  ;;  %v3423_v16 = vld [vmem:[#allocation2 + $0x90] sm:$0xf] }
 0x1c3   : > { %v3635_v3 = vsel %vm8541_vm6, %v3630_v49, %v3634_v39  ;;  %v3642_v39 = vrot.slane %v3640_v13, 5  ;;  %v7444_v49 = vld [vmem:[#allocation2 + $0x60] sm:$0xff]  ;;  %v2109_v10 = vshrl.u32 %v1856_v57, 16  ;;  %v1455_v17 = vld [vmem:[%s8492_s0 + $0x14] sm:$0x1] }
 0x1c4   : > { %v8742_v53 = vpop.f32.mrf.mxu0  ;;  %v3845_v25 = vunpack.c.l.b16 %v3635_v3  ;;  %v2078_v26 = vor.u32 %v2077_v63, %v2074_v62  ;;  %v3653_v2 = vor.u32 %v3652_v42, %v8789_v41  ;;  %v2096_v3 = vshrl.u32 %v1855_v36, 16  ;;  %1462 = vst.msk [vmem:[#allocation2 + $0xa4] sm:$0x1] %vm1419_vm3, %v1455_v17 }
 0x1c5   : > { %v3643_v63 = vor.u32 %v3642_v39, %v3639_v38  ;;  %v8817_v39 = vrot.slane %v2105_v9, 5  ;;  %v2111_v42 = vrot.slane %v2109_v10, 4  ;;  %v3661_v36 = vshrl.u32 %v3423_v16, 16 }
 0x1c6   : > { %v8747_v0 = vpop.f32.mrf.mxu2  ;;  %v8749_v1 = vpop.f32.mrf.mxu1  ;;  %v3869_v50 = vpack.c.b16 %v3845_v25, %v3844_v24 }
 0x1c7   : > { %v3663_v9 = vrot.slane %v3661_v36, 4 }
 0x1c8   : > { %v8751_v11 = vpop.f32.mrf.mxu3 }
 0x1c9   : > { %9919 = vst [vmem:[#allocation45_spill] sm:$0xff] %v8751_v11  ;;  %7110 = vmatmul.msk.bf16.gmra.mxu1 %vm1654_vm2, %v2303_v60  ;;  %v2776_v60 = vunpack.c.l.b16 %v2700_v37  ;;  %v3422_v37 = vld [vmem:[#allocation2 + $0x8c] sm:$0x1] }
 0x1ca   : > { %v3656_v62 = vshll.u32 %v3422_v37, 16  ;;  %v2101_v37 = vrot.slane %v2099_v56, 5  ;;  %v2577_v56 = vld [vmem:[#allocation2 + $0x88] sm:$0xf] }
 0x1cb   : > { %7143 = vmatmul.msk.bf16.gmra.mxu2 %vm1654_vm2, %v2800_v8  ;;  %v2087_v8 = vrot.slane %v2085_v51, 4  ;;  %v2801_v29 = vpack.c.b16 %v2777_v61, %v2776_v60  ;;  %v2079_v51 = vrot.slane %v2078_v26, 4  ;;  %v2708_v60 = vrot.slane %v2706_v35, 4 }
 0x1cc   : > { %v8755_v32 = vpop.f32.mrf.mxu0  ;;  %v2709_v61 = vrot.slane %v2575_v33, 5  ;;  %v2098_v33 = vrot.slane %v2096_v3, 4 }
 0x1cd   : > { %7224 = vmatmul.msk.bf16.gmra.mxu3 %vm1654_vm2, %v7443_v19  ;;  %v2304_v19 = vpack.c.b16 %v2280_v55, %v2279_v54  ;;  %v2093_v54 = vrot.slane %v2091_v27, 5  ;;  %v7128_v55 = vrot.slane %v2573_v31, 9  ;;  %v2084_v13 = vsel %vm8541_vm6, %v2079_v51, %v8780_v7 }
 0x1ce   : > { %v8768_v45 = vpop.f32.mrf.mxu2  ;;  %v8770_v48 = vpop.f32.mrf.mxu1  ;;  %v2710_v27 = vsel %vm8554_vm9, %v2708_v60, %v2709_v61  ;;  %v3654_v31 = vrot.slane %v3653_v2, 4  ;;  %v2112_v2 = vor.u32 %v2111_v42, %v8817_v39 }
 0x1cf   : > { %7241 = vmatmul.msk.bf16.gmra.mxu0 %vm1654_vm2, %v3868_v30  ;;  %v2088_v30 = vor.u32 %v2087_v8, %v8780_v7  ;;  %v2707_v26 = vsel %vm8554_vm9, %v7128_v55, %v2706_v35  ;;  %v3644_v7 = vrot.slane %v3643_v63, 4  ;;  %v3664_v35 = vshll.u32 %v3423_v16, 16 }
 0x1d0   : > { %v8774_v52 = vpop.f32.mrf.mxu3  ;;  %v2779_v60 = vunpack.c.l.b16 %v2710_v27  ;;  %v3425_v27 = vld [vmem:[#allocation2 + $0x98] sm:$0x1]  ;;  %v2113_v36 = vrot.slane %v2112_v2, 4 }
 0x1d1   : > { %9920 = vst [vmem:[#allocation46_spill] sm:$0xff] %v8774_v52  ;;  %v2089_v59 = vrot.slane %v2088_v30, 4  ;;  %v3424_v30 = vld [vmem:[#allocation2 + $0x94] sm:$0xf]  ;;  %v3666_v10 = vrot.slane %v3664_v35, 5 }
 0x1d2   : > { %v3670_v55 = vshll.u32 %v3424_v30, 16  ;;  %v3674_v57 = vshrl.u32 %v3424_v30, 16  ;;  %v3428_v52 = vld [vmem:[#allocation2 + $0xa4] sm:$0x1] }
 0x1d3   : > { %v2094_v25 = vsel %vm8541_vm6, %v2089_v59, %v2093_v54  ;;  %v1857_v54 = vld [vmem:[#allocation2 + $0x8c] sm:$0x1]  ;;  %v2778_v59 = vunpack.c.l.b16 %v2707_v26 }
 0x1d4   : > { %v8782_v18 = vpop.f32.mrf.mxu0  ;;  %v2282_v51 = vunpack.c.l.b16 %v2094_v25  ;;  %v2115_v3 = vshll.u32 %v1857_v54, 16  ;;  %v8827_v16 = vrot.slane %v3670_v55, 5  ;;  %v3676_v17 = vrot.slane %v3674_v57, 4  ;;  %v7445_v54 = vld [vmem:[#allocation2 + $0x84] sm:$0xff]  ;;  %v2578_v55 = vld [vmem:[#allocation2 + $0x8c] sm:$0x1] }
 0x1d6   : > { %v8784_v6 = vpop.f32.mrf.mxu2  ;;  %v8786_v28 = vpop.f32.mrf.mxu1  ;;  %v2117_v35 = vrot.slane %v2115_v3, 5  ;;  %v3677_v57 = vor.u32 %v3676_v17, %v8827_v16 }
 0x1d8   : > { %v8791_v43 = vpop.f32.mrf.mxu3  ;;  %v3678_v17 = vrot.slane %v3677_v57, 4 }
 0x1d9   : > { %9921 = vst [vmem:[#allocation47_spill] sm:$0xff] %v8791_v43  ;;  %7111 = vmatmul.msk.bf16.gmra.mxu1 %vm1654_vm2, %v2304_v19 }
 0x1db   : > { %7144 = vmatmul.msk.bf16.gmra.mxu2 %vm1654_vm2, %v2801_v29  ;;  %v3658_v29 = vrot.slane %v3656_v62, 5  ;;  %v2102_v62 = vor.u32 %v2101_v37, %v2098_v33  ;;  %v2713_v33 = vrot.slane %v2577_v56, 5 }
 0x1dc   : > { %v8796_v8 = vpop.f32.mrf.mxu0 }
 0x1dd   : > { %7225 = vmatmul.msk.bf16.gmra.mxu3 %vm1654_vm2, %v7444_v49  ;;  %v2281_v49 = vunpack.c.l.b16 %v2084_v13  ;;  %v3659_v61 = vsel %vm8541_vm6, %v3654_v31, %v3658_v29  ;;  %v2576_v31 = vld [vmem:[#allocation2 + $0x84] sm:$0xe]  ;;  %v2103_v42 = vrot.slane %v2102_v62, 4 }
 0x1de   : > { %v8803_v19 = vpop.f32.mrf.mxu2  ;;  %v8805_v24 = vpop.f32.mrf.mxu1 }
 0x1df   : > { %7242 = vmatmul.msk.bf16.gmra.mxu0 %vm1654_vm2, %v3869_v50  ;;  %v3649_v50 = vsel %vm8541_vm6, %v3644_v7, %v8789_v41  ;;  %v2305_v13 = vpack.c.b16 %v2282_v51, %v2281_v49  ;;  %v2802_v41 = vpack.c.b16 %v2779_v60, %v2778_v59  ;;  %v3847_v7 = vunpack.c.l.b16 %v3659_v61  ;;  %v1858_v51 = vld [vmem:[#allocation2 + $0x90] sm:$0xf] }
 0x1e0   : > { %v8815_v38 = vpop.f32.mrf.mxu3  ;;  %v3846_v30 = vunpack.c.l.b16 %v3649_v50  ;;  %v3667_v49 = vor.u32 %v3666_v10, %v3663_v9  ;;  %v3680_v59 = vshll.u32 %v3425_v27, 16  ;;  %v7129_v60 = vrot.slane %v2576_v31, 9 }
 0x1e1   : > { %9922 = vst [vmem:[#allocation48_spill] sm:$0xff] %v8815_v38  ;;  %v2715_v61 = vrot.slane %v2713_v33, 4  ;;  %v2120_v56 = vshrl.u32 %v1858_v51, 16  ;;  %v2123_v62 = vshll.u32 %v1858_v51, 16  ;;  %v2108_v3 = vsel %vm8541_vm6, %v2103_v42, %v8817_v39 }
 0x1e2   : > { %v3870_v50 = vpack.c.b16 %v3847_v7, %v3846_v30  ;;  %v2118_v9 = vsel %vm8541_vm6, %v2113_v36, %v2117_v35  ;;  %v2716_v10 = vrot.slane %v2578_v55, 5  ;;  %v1468_v30 = vld [vmem:[%s8418_s10 + $0x14] sm:$0x1]  ;;  %v2714_v51 = vsel %vm8554_vm9, %v7129_v60, %v2713_v33  ;;  %s9925_s10 = sld [smem:[#allocation17_spill]] }
 0x1e3   : > { %1475 = vst.msk [vmem:[#allocation2 + $0xb0] sm:$0x1] %vm1419_vm3, %v1468_v30  ;;  %v2122_v36 = vrot.slane %v2120_v56, 4  ;;  %v2125_v35 = vrot.slane %v2123_v62, 5  ;;  %v2283_v57 = vunpack.c.l.b16 %v2108_v3  ;;  %v2580_v62 = vld [vmem:[#allocation2 + $0x94] sm:$0xf] }
 0x1e4   : > { %v8824_v63 = vpop.f32.mrf.mxu0 }
 0x1e5   : > { %v2126_v38 = vor.u32 %v2125_v35, %v2122_v36 }
 0x1e6   : > { %v8829_v25 = vpop.f32.mrf.mxu2  ;;  %v2373_v26 = vpop.f32.mrf.mxu1 }
 0x1e7   : > { %v2485_v29 = vadd.f32 %v2373_v26, %v8672_v4  ;;  %v1859_v4 = vld [vmem:[#allocation2 + $0x94] sm:$0xf]  ;;  %v3682_v26 = vrot.slane %v3680_v59, 5  ;;  %v2284_v59 = vunpack.c.l.b16 %v2118_v9  ;;  %v2780_v9 = vunpack.c.l.b16 %v2714_v51 }
 0x1e8   : > { %v8832_v37 = vpop.f32.mrf.mxu3  ;;  %v2129_v27 = vshll.u32 %v1859_v4, 16  ;;  %v2127_v35 = vrot.slane %v2126_v38, 4  ;;  %s1298_s7 = sand.u32 1, %s9925_s10  }
 0x1e9   : > { %9923 = vst [vmem:[#allocation49_spill] sm:$0xff] %v8832_v37  ;;  %7112 = vmatmul.msk.bf16.gmra.mxu1 %vm1654_vm2, %v2305_v13  ;;  %v3668_v13 = vrot.slane %v3667_v49, 4  ;;  %v3426_v49 = vld [vmem:[#allocation2 + $0x9c] sm:$0xf] }
 0x1ea   : > { %v3685_v30 = vshrl.u32 %v3426_v49, 16 }
 0x1eb   : > { %7145 = vmatmul.msk.bf16.gmra.mxu2 %vm1654_vm2, %v2802_v41  ;;  %v2133_v41 = vshrl.u32 %v1859_v4, 16  ;;  %v2717_v4 = vsel %vm8554_vm9, %v2715_v61, %v2716_v10  ;;  %v3673_v33 = vsel %vm8541_vm6, %v3668_v13, %v8827_v16 }
 0x1ec   : > { %v3938_v2 = vpop.f32.mrf.mxu0  ;;  %v2781_v37 = vunpack.c.l.b16 %v2717_v4  ;;  %v3848_v43 = vunpack.c.l.b16 %v3673_v33  ;;  %v3687_v11 = vrot.slane %v3685_v30, 4  ;;  %v2581_v4 = vld [vmem:[#allocation2 + $0x98] sm:$0x1]  ;;  %v3704_v30 = vshll.u32 %v3428_v52, 16 }
 0x1ed   : > { %7226 = vmatmul.msk.bf16.gmra.mxu3 %vm1654_vm2, %v7445_v54  ;;  %v3427_v54 = vld [vmem:[#allocation2 + $0xa0] sm:$0xf]  ;;  %v2135_v56 = vrot.slane %v2133_v41, 4 }
 0x1ee   : > { %v2870_v7 = vpop.f32.mrf.mxu2  ;;  %v2375_v31 = vpop.f32.mrf.mxu1  ;;  %v3698_v3 = vshrl.u32 %v3427_v54, 16  ;;  %v2803_v36 = vpack.c.b16 %v2781_v37, %v2780_v9 }
 0x1ef   : > { %7243 = vmatmul.msk.bf16.gmra.mxu0 %vm1654_vm2, %v3870_v50  ;;  %v2982_v39 = vadd.f32 %v2870_v7, %v2485_v29  ;;  %v2486_v42 = vadd.f32 %v2375_v31, %v8700_v40  ;;  %v3683_v29 = vsel %vm8541_vm6, %v3678_v17, %v3682_v26  ;;  %v1860_v50 = vld [vmem:[#allocation2 + $0x98] sm:$0x1]  ;;  %v2131_v40 = vrot.slane %v2129_v27, 5  ;;  %v2579_v17 = vld [vmem:[#allocation2 + $0x90] sm:$0xe] }
 0x1f0   : > { %v3220_v55 = vpop.f32.mrf.mxu3  ;;  %v3688_v7 = vshll.u32 %v3426_v49, 16  ;;  %v3694_v31 = vshll.u32 %v3427_v54, 16  ;;  %v3849_v16 = vunpack.c.l.b16 %v3683_v29  ;;  %v2139_v13 = vshll.u32 %v1860_v50, 16  ;;  %v7446_v50 = vld [vmem:[#allocation2 + $0x90] sm:$0xff] }
 0x1f1   : > { %v3332_v60 = vadd.f32 %v3220_v55, %v2982_v39  ;;  %v2306_v39 = vpack.c.b16 %v2284_v59, %v2283_v57  ;;  %v2136_v55 = vor.u32 %v2135_v56, %v2131_v40  ;;  %v2720_v26 = vrot.slane %v2580_v62, 5  ;;  %v1861_v59 = vld [vmem:[#allocation2 + $0x9c] sm:$0xf] }
 0x1f2   : > { %v3690_v49 = vrot.slane %v3688_v7, 5  ;;  %v8858_v34 = vrot.slane %v3694_v31, 5  ;;  %v3700_v51 = vrot.slane %v3698_v3, 4  ;;  %v2141_v57 = vrot.slane %v2139_v13, 5  ;;  %v1862_v7 = vld [vmem:[#allocation2 + $0xa0] sm:$0xf] }
 0x1f3   : > { %v8856_v61 = vadd.f32 %v3938_v2, %v3332_v60  ;;  %v3871_v60 = vpack.c.b16 %v3849_v16, %v3848_v43  ;;  %v2137_v56 = vrot.slane %v2136_v55, 4  ;;  %v7130_v62 = vrot.slane %v2579_v17, 9  ;;  %v3429_v17 = vld [vmem:[#allocation2 + $0xa8] sm:$0xf] }
 0x1f4   : > { %v3940_v10 = vpop.f32.mrf.mxu0  ;;  %v2722_v31 = vrot.slane %v2720_v26, 4  ;;  %v2723_v3 = vrot.slane %v2581_v4, 5  ;;  %v2132_v43 = vsel %vm8541_vm6, %v2127_v35, %v2131_v40  ;;  %v2144_v38 = vshrl.u32 %v1861_v59, 16 }
 0x1f5   : > { %v2147_v37 = vshll.u32 %v1861_v59, 16  ;;  %v2153_v13 = vshll.u32 %v1862_v7, 16  ;;  %v2142_v52 = vsel %vm8541_vm6, %v2137_v56, %v2141_v57  ;;  %v3706_v55 = vrot.slane %v3704_v30, 5 }
 0x1f6   : > { %v2872_v27 = vpop.f32.mrf.mxu2  ;;  %v2378_v41 = vpop.f32.mrf.mxu1  ;;  %v2286_v59 = vunpack.c.l.b16 %v2142_v52 }
 0x1f7   : > { %v2983_v54 = vadd.f32 %v2872_v27, %v2486_v42  ;;  %v2487_v2 = vadd.f32 %v2378_v41, %v8715_v12  ;;  %v3691_v42 = vor.u32 %v3690_v49, %v3687_v11  ;;  %v3701_v12 = vor.u32 %v3700_v51, %v8858_v34  ;;  %v1481_v27 = vld [vmem:[%s8440_s3 + $0x14] sm:$0x1]  ;;  %s7494_s3 = smul.u32 24, %s1298_s7  ;;  %s9943_s7 = sld [smem:[#allocation30_spill]] (%p8319_p11) }
 0x1f8   : > { %v3222_v33 = vpop.f32.mrf.mxu3  ;;  %v2721_v11 = vsel %vm8554_vm9, %v7130_v62, %v2720_v26  ;;  %v2285_v49 = vunpack.c.l.b16 %v2132_v43  ;;  %1488 = vst.msk [vmem:[#allocation2 + $0xbc] sm:$0x1] %vm1419_vm3, %v1481_v27  ;;  %v2146_v26 = vrot.slane %v2144_v38, 4  ;;  %v3709_v62 = vshrl.u32 %v3429_v17, 16 }
 0x1f9   : > { %v3333_v29 = vadd.f32 %v3222_v33, %v2983_v54  ;;  %7113 = vmatmul.msk.bf16.gmra.mxu1 %vm1654_vm2, %v2306_v39  ;;  %v2157_v39 = vshrl.u32 %v1862_v7, 16  ;;  %v3692_v51 = vrot.slane %v3691_v42, 4  ;;  %v3702_v54 = vrot.slane %v3701_v12, 4  ;;  %v2583_v7 = vld [vmem:[#allocation2 + $0xa0] sm:$0xf]  ;;  %s9168_s5 = scalar_lea.vmem [#allocation13], %s7494_s3 }
 0x1fa   : > { %v2149_v33 = vrot.slane %v2147_v37, 5  ;;  %v2782_v12 = vunpack.c.l.b16 %v2721_v11  ;;  %v2727_v27 = vrot.slane %v2583_v7, 5  ;;  %v3711_v11 = vrot.slane %v3709_v62, 4 }
 0x1fb   : > { %7146 = vmatmul.msk.bf16.gmra.mxu2 %vm1654_vm2, %v2803_v36  ;;  %v8866_v9 = vadd.f32 %v3940_v10, %v3333_v29  ;;  %v2724_v10 = vsel %vm8554_vm9, %v2722_v31, %v2723_v3  ;;  %v3430_v36 = vld [vmem:[#allocation2 + $0xac] sm:$0xf]  ;;  %v1863_v29 = vld [vmem:[#allocation2 + $0xa4] sm:$0x1]  ;;  %v2159_v56 = vrot.slane %v2157_v39, 4  ;;  %v3712_v31 = vshll.u32 %v3429_v17, 16 }
 0x1fc   : > { %v3943_v16 = vpop.f32.mrf.mxu0  ;;  %v3718_v3 = vshll.u32 %v3430_v36, 16  ;;  %v3722_v42 = vshrl.u32 %v3430_v36, 16  ;;  %v2783_v43 = vunpack.c.l.b16 %v2724_v10  ;;  %v2163_v38 = vshll.u32 %v1863_v29, 16  ;;  %v2582_v17 = vld [vmem:[#allocation2 + $0x9c] sm:$0xe] }
 0x1fd   : > { %7227 = vmatmul.msk.bf16.gmra.mxu3 %vm1654_vm2, %v7446_v50  ;;  %v8879_v50 = vrot.slane %v2153_v13, 5  ;;  %v2307_v39 = vpack.c.b16 %v2286_v59, %v2285_v49  ;;  %v1864_v59 = vld [vmem:[#allocation2 + $0xa8] sm:$0xf]  ;;  %v1865_v29 = vld [vmem:[#allocation2 + $0xac] sm:$0xf]  ;;  %v7131_v62 = vrot.slane %v2582_v17, 9 }
 0x1fe   : > { %v2875_v41 = vpop.f32.mrf.mxu2  ;;  %v2380_v40 = vpop.f32.mrf.mxu1  ;;  %v8889_v10 = vrot.slane %v3718_v3, 5  ;;  %v3724_v36 = vrot.slane %v3722_v42, 4  ;;  %v2729_v7 = vrot.slane %v2727_v27, 4  ;;  %v7447_v42 = vld [vmem:[#allocation2 + $0x9c] sm:$0xff]  ;;  %s7470_s3 = sshll.u32 (%p8319_p11), %s9943_s7, 7 }
 0x1ff   : > { %7244 = vmatmul.msk.bf16.gmra.mxu0 %vm1654_vm2, %v3871_v60  ;;  %v2984_v35 = vadd.f32 %v2875_v41, %v2487_v2  ;;  %v2488_v4 = vadd.f32 %v2380_v40, %v8742_v53  ;;  %v3697_v53 = vsel %vm8541_vm6, %v3692_v51, %v8858_v34  ;;  %v3707_v2 = vsel %vm8541_vm6, %v3702_v54, %v3706_v55  ;;  %v2584_v41 = vld [vmem:[#allocation2 + $0xa4] sm:$0x1] }
 0x200   : > { %v3225_v57 = vpop.f32.mrf.mxu3  ;;  %v2150_v60 = vor.u32 %v2149_v33, %v2146_v26  ;;  %v2160_v52 = vor.u32 %v2159_v56, %v8879_v50  ;;  %v3714_v40 = vrot.slane %v3712_v31, 5  ;;  %v3850_v55 = vunpack.c.l.b16 %v3697_v53  ;;  %v3431_v26 = vld [vmem:[#allocation2 + $0xb0] sm:$0x1] }
 0x201   : > { %v3334_v30 = vadd.f32 %v3225_v57, %v2984_v35  ;;  %v2804_v35 = vpack.c.b16 %v2783_v43, %v2782_v12  ;;  %v3851_v54 = vunpack.c.l.b16 %v3707_v2  ;;  %v2165_v57 = vrot.slane %v2163_v38, 5 }
 0x202   : > { %v2151_v49 = vrot.slane %v2150_v60, 4  ;;  %v2730_v31 = vrot.slane %v2584_v41, 5  ;;  %v3715_v12 = vor.u32 %v3714_v40, %v3711_v11  ;;  %v3725_v43 = vor.u32 %v3724_v36, %v8889_v10 }
 0x203   : > { %v8886_v37 = vadd.f32 %v3943_v16, %v3334_v30  ;;  %v2161_v30 = vrot.slane %v2160_v52, 4  ;;  %v3728_v53 = vshll.u32 %v3431_v26, 16  ;;  %v2177_v2 = vshll.u32 %v1865_v29, 16 }
 0x204   : > { %v3945_v13 = vpop.f32.mrf.mxu0  ;;  %v2181_v60 = vshrl.u32 %v1865_v29, 16  ;;  %v3872_v38 = vpack.c.b16 %v3851_v54, %v3850_v55  ;;  %v2728_v11 = vsel %vm8554_vm9, %v7131_v62, %v2727_v27  ;;  %v2731_v40 = vsel %vm8554_vm9, %v2729_v7, %v2730_v31 }
 0x205   : > { %v2166_v41 = vsel %vm8541_vm6, %v2161_v30, %v2165_v57  ;;  %v3716_v36 = vrot.slane %v3715_v12, 4  ;;  %v1866_v57 = vld [vmem:[#allocation2 + $0xb0] sm:$0x1]  ;;  %v3432_v30 = vld [vmem:[#allocation2 + $0xb4] sm:$0xf]  ;;  %v2784_v7 = vunpack.c.l.b16 %v2728_v11  ;;  %v2785_v31 = vunpack.c.l.b16 %v2731_v40 }
 0x206   : > { %v2877_v34 = vpop.f32.mrf.mxu2  ;;  %v2383_v51 = vpop.f32.mrf.mxu1 }
 0x207   : > { %v2985_v16 = vadd.f32 %v2877_v34, %v2488_v4  ;;  %v2489_v33 = vadd.f32 %v2383_v51, %v8755_v32  ;;  %v2168_v4 = vshrl.u32 %v1864_v59, 16  ;;  %v2171_v32 = vshll.u32 %v1864_v59, 16  ;;  %v1494_v51 = vld [vmem:[%s8462_s20 + $0x14] sm:$0x1] }
 0x208   : > { %v3227_v56 = vpop.f32.mrf.mxu3  ;;  %v3726_v34 = vrot.slane %v3725_v43, 4  ;;  %1501 = vst.msk [vmem:[#allocation2 + $0xc8] sm:$0x1] %vm1419_vm3, %v1494_v51  ;;  %v2805_v40 = vpack.c.b16 %v2785_v31, %v2784_v7  ;;  %v7448_v7 = vld [vmem:[#allocation2 + $0xa8] sm:$0xff]  ;;  %v3434_v31 = vld [vmem:[#allocation2 + $0xbc] sm:$0x1] }
 0x209   : > { %v3335_v3 = vadd.f32 %v3227_v56, %v2985_v16  ;;  %7114 = vmatmul.msk.bf16.gmra.mxu1 %vm1654_vm2, %v2307_v39  ;;  %v2156_v39 = vsel %vm8541_vm6, %v2151_v49, %v8879_v50  ;;  %v2170_v54 = vrot.slane %v2168_v4, 4  ;;  %v2173_v26 = vrot.slane %v2171_v32, 5  ;;  %v2585_v4 = vld [vmem:[#allocation2 + $0xa8] sm:$0xe] }
 0x20a   : > { %v8908_v50 = vrot.slane %v2177_v2, 5  ;;  %v2183_v16 = vrot.slane %v2181_v60, 4  ;;  %v2287_v29 = vunpack.c.l.b16 %v2156_v39  ;;  %v2288_v56 = vunpack.c.l.b16 %v2166_v41 }
 0x20b   : > { %7147 = vmatmul.msk.bf16.gmra.mxu2 %vm1654_vm2, %v2804_v35  ;;  %v8895_v52 = vadd.f32 %v3945_v13, %v3335_v3  ;;  %v3730_v13 = vrot.slane %v3728_v53, 5  ;;  %v3721_v3 = vsel %vm8541_vm6, %v3716_v36, %v8889_v10  ;;  %v2174_v43 = vor.u32 %v2173_v26, %v2170_v54  ;;  %v2586_v53 = vld [vmem:[#allocation2 + $0xac] sm:$0xf] }
 0x20c   : > { %v3948_v17 = vpop.f32.mrf.mxu0  ;;  %v3733_v32 = vshrl.u32 %v3432_v30, 16  ;;  %v3736_v2 = vshll.u32 %v3432_v30, 16  ;;  %v2308_v39 = vpack.c.b16 %v2288_v56, %v2287_v29  ;;  %v3852_v10 = vunpack.c.l.b16 %v3721_v3  ;;  %v1867_v3 = vld [vmem:[#allocation2 + $0xb4] sm:$0xf] }
 0x20d   : > { %7228 = vmatmul.msk.bf16.gmra.mxu3 %vm1654_vm2, %v7447_v42  ;;  %v3433_v42 = vld [vmem:[#allocation2 + $0xb8] sm:$0xf]  ;;  %v3731_v12 = vsel %vm8541_vm6, %v3726_v34, %v3730_v13  ;;  %v2734_v51 = vrot.slane %v2586_v53, 5  ;;  %v2175_v13 = vrot.slane %v2174_v43, 4  ;;  %v7132_v26 = vrot.slane %v2585_v4, 9 }
 0x20e   : > { %v2880_v35 = vpop.f32.mrf.mxu2  ;;  %v2385_v55 = vpop.f32.mrf.mxu1  ;;  %v3742_v41 = vshll.u32 %v3433_v42, 16  ;;  %v3746_v11 = vshrl.u32 %v3433_v42, 16  ;;  %v3853_v36 = vunpack.c.l.b16 %v3731_v12  ;;  %v1868_v43 = vld [vmem:[#allocation2 + $0xb8] sm:$0xf] }
 0x20f   : > { %7245 = vmatmul.msk.bf16.gmra.mxu0 %vm1654_vm2, %v3872_v38  ;;  %v2986_v27 = vadd.f32 %v2880_v35, %v2489_v33  ;;  %v2490_v49 = vadd.f32 %v2385_v55, %v8782_v18  ;;  %v2184_v33 = vor.u32 %v2183_v16, %v8908_v50  ;;  %v2187_v18 = vshll.u32 %v1866_v57, 16  ;;  %v2587_v57 = vld [vmem:[#allocation2 + $0xb0] sm:$0x1] }
 0x210   : > { %v3230_v59 = vpop.f32.mrf.mxu3  ;;  %v8922_v29 = vrot.slane %v3742_v41, 5  ;;  %v3748_v56 = vrot.slane %v3746_v11, 4  ;;  %v3873_v42 = vpack.c.b16 %v3853_v36, %v3852_v10  ;;  %v2736_v12 = vrot.slane %v2734_v51, 4 }
 0x211   : > { %v3336_v62 = vadd.f32 %v3230_v59, %v2986_v27  ;;  %v2185_v55 = vrot.slane %v2184_v33, 4  ;;  %v2189_v54 = vrot.slane %v2187_v18, 5  ;;  %v3738_v59 = vrot.slane %v3736_v2, 5 }
 0x212   : > { %v2735_v18 = vsel %vm8554_vm9, %v7132_v26, %v2734_v51  ;;  %v3749_v2 = vor.u32 %v3748_v56, %v8922_v29  ;;  %v2195_v41 = vshll.u32 %v1867_v3, 16  ;;  %v2201_v11 = vshll.u32 %v1868_v43, 16 }
 0x213   : > { %v8919_v60 = vadd.f32 %v3948_v17, %v3336_v62  ;;  %v3735_v17 = vrot.slane %v3733_v32, 4  ;;  %v2190_v33 = vsel %vm8541_vm6, %v2185_v55, %v2189_v54  ;;  %v2205_v10 = vshrl.u32 %v1868_v43, 16 }
 0x214   : > { %v3950_v38 = vpop.f32.mrf.mxu0  ;;  %v2290_v54 = vunpack.c.l.b16 %v2190_v33  ;;  %v2197_v56 = vrot.slane %v2195_v41, 5 }
 0x215   : > { %v3739_v53 = vor.u32 %v3738_v59, %v3735_v17  ;;  %v3750_v17 = vrot.slane %v3749_v2, 4 }
 0x216   : > { %v2882_v35 = vpop.f32.mrf.mxu2  ;;  %v2388_v34 = vpop.f32.mrf.mxu1 }
 0x217   : > { %v2987_v16 = vadd.f32 %v2882_v35, %v2490_v49  ;;  %v2491_v27 = vadd.f32 %v2388_v34, %v8796_v8  ;;  %v2180_v49 = vsel %vm8541_vm6, %v2175_v13, %v8908_v50  ;;  %v2737_v8 = vrot.slane %v2587_v57, 5 }
 0x218   : > { %v3232_v30 = vpop.f32.mrf.mxu3  ;;  %v2192_v50 = vshrl.u32 %v1867_v3, 16  ;;  %v2289_v34 = vunpack.c.l.b16 %v2180_v49  ;;  %v2786_v13 = vunpack.c.l.b16 %v2735_v18  ;;  %v3740_v26 = vrot.slane %v3739_v53, 4 }
 0x219   : > { %v3337_v62 = vadd.f32 %v3232_v30, %v2987_v16  ;;  %7115 = vmatmul.msk.bf16.gmra.mxu1 %vm1654_vm2, %v2308_v39  ;;  %v3752_v39 = vshll.u32 %v3434_v31, 16  ;;  %v2738_v51 = vsel %vm8554_vm9, %v2736_v12, %v2737_v8  ;;  %v3435_v16 = vld [vmem:[#allocation2 + $0xc0] sm:$0xf]  ;;  %v8943_v3 = vrot.slane %v2201_v11, 5  ;;  %v1869_v12 = vld [vmem:[#allocation2 + $0xbc] sm:$0x1] }
 0x21a   : > { %v2194_v30 = vrot.slane %v2192_v50, 4  ;;  %v2787_v31 = vunpack.c.l.b16 %v2738_v51  ;;  %v2207_v49 = vrot.slane %v2205_v10, 4  ;;  %v3757_v8 = vshrl.u32 %v3435_v16, 16 }
 0x21b   : > { %7148 = vmatmul.msk.bf16.gmra.mxu2 %vm1654_vm2, %v2805_v40  ;;  %v8933_v4 = vadd.f32 %v3950_v38, %v3337_v62  ;;  %v1507_v40 = vld [vmem:[%s8486_s16 + $0x14] sm:$0x1]  ;;  %v3754_v59 = vrot.slane %v3752_v39, 5  ;;  %v3436_v62 = vld [vmem:[#allocation2 + $0xc4] sm:$0xf]  ;;  %v2309_v50 = vpack.c.b16 %v2290_v54, %v2289_v34  ;;  %v2211_v10 = vshll.u32 %v1869_v12, 16 }
 0x21c   : > { %v3953_v32 = vpop.f32.mrf.mxu0  ;;  %1514 = vst.msk [vmem:[#allocation2 + $0xd4] sm:$0x1] %vm1419_vm3, %v1507_v40  ;;  %v3766_v43 = vshll.u32 %v3436_v62, 16  ;;  %v3770_v33 = vshrl.u32 %v3436_v62, 16  ;;  %v2198_v39 = vor.u32 %v2197_v56, %v2194_v30  ;;  %v2806_v41 = vpack.c.b16 %v2787_v31, %v2786_v13  ;;  %v2588_v40 = vld [vmem:[#allocation2 + $0xb4] sm:$0xe] }
 0x21d   : > { %7229 = vmatmul.msk.bf16.gmra.mxu3 %vm1654_vm2, %v7448_v7  ;;  %v3755_v2 = vsel %vm8541_vm6, %v3750_v17, %v3754_v59  ;;  %v2208_v11 = vor.u32 %v2207_v49, %v8943_v3  ;;  %v7449_v13 = vld [vmem:[#allocation2 + $0xb4] sm:$0xff]  ;;  %v7133_v59 = vrot.slane %v2588_v40, 9  ;;  %v3437_v30 = vld [vmem:[#allocation2 + $0xc8] sm:$0x1]  ;;  %v2213_v31 = vrot.slane %v2211_v10, 5  ;;  %s9935_s16 = sld [smem:[#allocation62_spill]] }
 0x21e   : > { %v2885_v36 = vpop.f32.mrf.mxu2  ;;  %v2390_v35 = vpop.f32.mrf.mxu1  ;;  %v8953_v62 = vrot.slane %v3766_v43, 5  ;;  %v3772_v17 = vrot.slane %v3770_v33, 4  ;;  %v2199_v54 = vrot.slane %v2198_v39, 4  ;;  %v1518_v49 = vld [vmem:[%s8664_s2 + $0xc] sm:$0xf]  ;;  %v3776_v33 = vshll.u32 %v3437_v30, 16 }
 0x21f   : > { %7246 = vmatmul.msk.bf16.gmra.mxu0 %vm1654_vm2, %v3873_v42  ;;  %v2988_v38 = vadd.f32 %v2885_v36, %v2491_v27  ;;  %v2492_v55 = vadd.f32 %v2390_v35, %v8824_v63  ;;  %v3760_v42 = vshll.u32 %v3435_v16, 16  ;;  %v3745_v63 = vsel %vm8541_vm6, %v3740_v26, %v8922_v29  ;;  %v2589_v27 = vld [vmem:[#allocation2 + $0xb8] sm:$0xf]  ;;  %1525 = vst.msk [vmem:[#allocation2 + $0xd8] sm:$0xf] %vm1416_vm1, %v1518_v49 }
 0x220   : > { %v3235_v57 = vpop.f32.mrf.mxu3  ;;  %v3854_v51 = vunpack.c.l.b16 %v3745_v63  ;;  %v2741_v29 = vrot.slane %v2589_v27, 5  ;;  %v3855_v16 = vunpack.c.l.b16 %v3755_v2  ;;  %v1519_v12 = vld [vmem:[%s8664_s2 + $0x10] sm:$0xf]  ;;  %v3773_v43 = vor.u32 %v3772_v17, %v8953_v62  ;;  %v1871_v2 = vld [vmem:[#allocation2 + $0xc4] sm:$0xf] }
 0x221   : > { %v3338_v7 = vadd.f32 %v3235_v57, %v2988_v38  ;;  %v3759_v38 = vrot.slane %v3757_v8, 4  ;;  %v3762_v26 = vrot.slane %v3760_v42, 5  ;;  %v2590_v57 = vld [vmem:[#allocation2 + $0xbc] sm:$0x1]  ;;  %v1870_v63 = vld [vmem:[#allocation2 + $0xc0] sm:$0xf] }
 0x222   : > { %v2743_v8 = vrot.slane %v2741_v29, 4  ;;  %v2744_v42 = vrot.slane %v2590_v57, 5  ;;  %v3874_v27 = vpack.c.b16 %v3855_v16, %v3854_v51  ;;  %1526 = vst.msk [vmem:[#allocation2 + $0xdc] sm:$0xf] %vm1416_vm1, %v1519_v12  ;;  %v2742_v10 = vsel %vm8554_vm9, %v7133_v59, %v2741_v29  ;;  %v3438_v59 = vld [vmem:[#allocation2 + $0xcc] sm:$0xf] }
 0x223   : > { %v8948_v18 = vadd.f32 %v3953_v32, %v3338_v7  ;;  %v2209_v7 = vrot.slane %v2208_v11, 4  ;;  %v2204_v11 = vsel %vm8541_vm6, %v2199_v54, %v8943_v3  ;;  %v2219_v51 = vshll.u32 %v1870_v63, 16  ;;  %v3439_v49 = vld [vmem:[#allocation2 + $0xd0] sm:$0xf]  ;;  %s9936_s0 = smov %s9935_s16 }
 0x224   : > { %v3955_v53 = vpop.f32.mrf.mxu0  ;;  %v2225_v3 = vshll.u32 %v1871_v2, 16  ;;  %v2229_v57 = vshrl.u32 %v1871_v2, 16  ;;  %v3778_v29 = vrot.slane %v3776_v33, 5  ;;  %v2788_v54 = vunpack.c.l.b16 %v2742_v10 }
 0x225   : > { %v3790_v10 = vshll.u32 %v3439_v49, 16 }
 0x226   : > { %v2887_v36 = vpop.f32.mrf.mxu2  ;;  %v2393_v35 = vpop.f32.mrf.mxu1 }
 0x227   : > { %v2989_v32 = vadd.f32 %v2887_v36, %v2492_v55  ;;  %v3763_v55 = vor.u32 %v3762_v26, %v3759_v38  ;;  %v2493_v40 = vadd.f32 %v2393_v35, %v8658_v44  ;;  %v2216_v36 = vshrl.u32 %v1870_v63, 16  ;;  %v1520_v38 = vld [vmem:[%s8664_s2 + $0x14] sm:$0x1]  ;;  %v1872_v63 = vld [vmem:[#allocation2 + $0xc8] sm:$0x1] }
 0x228   : > { %v3237_v34 = vpop.f32.mrf.mxu3  ;;  %1527 = vst.msk [vmem:[#allocation2 + $0xe0] sm:$0x1] %vm1419_vm3, %v1520_v38  ;;  %v3774_v35 = vrot.slane %v3773_v43, 4  ;;  %v3784_v43 = vshll.u32 %v3438_v59, 16 }
 0x229   : > { %v3339_v56 = vadd.f32 %v3237_v34, %v2989_v32  ;;  %7116 = vmatmul.msk.bf16.gmra.mxu1 %vm1654_vm2, %v2309_v50  ;;  %v2745_v32 = vsel %vm8554_vm9, %v2743_v8, %v2744_v42  ;;  %v3764_v16 = vrot.slane %v3763_v55, 4  ;;  %v2291_v34 = vunpack.c.l.b16 %v2204_v11  ;;  %v2592_v11 = vld [vmem:[#allocation2 + $0xc4] sm:$0xf] }
 0x22a   : > { %v8981_v8 = vrot.slane %v2225_v3, 5  ;;  %v2231_v42 = vrot.slane %v2229_v57, 4  ;;  %v3779_v55 = vsel %vm8541_vm6, %v3774_v35, %v3778_v29  ;;  %v2235_v57 = vshll.u32 %v1872_v63, 16  ;;  %v2591_v35 = vld [vmem:[#allocation2 + $0xc0] sm:$0xe] }
 0x22b   : > { %7149 = vmatmul.msk.bf16.gmra.mxu2 %vm1654_vm2, %v2806_v41  ;;  %v8962_v39 = vadd.f32 %v3955_v53, %v3339_v56  ;;  %v2214_v41 = vsel %vm8541_vm6, %v2209_v7, %v2213_v31  ;;  %v2789_v56 = vunpack.c.l.b16 %v2745_v32  ;;  %v2218_v7 = vrot.slane %v2216_v36, 4 }
 0x22c   : > { %v3958_v50 = vpop.f32.mrf.mxu0  ;;  %v2221_v31 = vrot.slane %v2219_v51, 5  ;;  %v3769_v12 = vsel %vm8541_vm6, %v3764_v16, %v8953_v62  ;;  %v3857_v16 = vunpack.c.l.b16 %v3779_v55  ;;  %v2232_v3 = vor.u32 %v2231_v42, %v8981_v8  ;;  %v1873_v42 = vld [vmem:[#allocation2 + $0xcc] sm:$0xf] }
 0x22d   : > { %7230 = vmatmul.msk.bf16.gmra.mxu3 %vm1654_vm2, %v7449_v13  ;;  %v2292_v13 = vunpack.c.l.b16 %v2214_v41  ;;  %v2807_v51 = vpack.c.b16 %v2789_v56, %v2788_v54  ;;  %v3856_v32 = vunpack.c.l.b16 %v3769_v12  ;;  %v3440_v54 = vld [vmem:[#allocation2 + $0xd4] sm:$0x1]  ;;  %v7134_v12 = vrot.slane %v2591_v35, 9 }
 0x22e   : > { %v2890_v53 = vpop.f32.mrf.mxu2  ;;  %v2395_v26 = vpop.f32.mrf.mxu1  ;;  %v2222_v62 = vor.u32 %v2221_v31, %v2218_v7  ;;  %v2233_v7 = vrot.slane %v2232_v3, 4  ;;  %v2237_v31 = vrot.slane %v2235_v57, 5 }
 0x22f   : > { %7247 = vmatmul.msk.bf16.gmra.mxu0 %vm1654_vm2, %v3874_v27  ;;  %v2990_v44 = vadd.f32 %v2890_v53, %v2493_v40  ;;  %v3781_v27 = vshrl.u32 %v3438_v59, 16  ;;  %v3794_v40 = vshrl.u32 %v3439_v49, 16  ;;  %v2494_v41 = vadd.f32 %v2395_v26, %v8687_v15 }
 0x230   : > { %v3240_v17 = vpop.f32.mrf.mxu3  ;;  %v2310_v36 = vpack.c.b16 %v2292_v13, %v2291_v34  ;;  %v8989_v49 = vrot.slane %v3790_v10, 5  ;;  %v7450_v34 = vld [vmem:[#allocation2 + $0xc0] sm:$0xff]  ;;  %v2223_v13 = vrot.slane %v2222_v62, 4  ;;  %v3875_v56 = vpack.c.b16 %v3857_v16, %v3856_v32 }
 0x231   : > { %v3340_v30 = vadd.f32 %v3240_v17, %v2990_v44  ;;  %v3783_v29 = vrot.slane %v3781_v27, 4  ;;  %v3786_v17 = vrot.slane %v3784_v43, 5  ;;  %v3796_v15 = vrot.slane %v3794_v40, 4  ;;  %v1874_v43 = vld [vmem:[#allocation2 + $0xd0] sm:$0xf] }
 0x232   : > { %v2228_v62 = vsel %vm8541_vm6, %v2223_v13, %v8981_v8  ;;  %v2249_v3 = vshll.u32 %v1874_v43, 16  ;;  %v2253_v57 = vshrl.u32 %v1874_v43, 16 }
 0x233   : > { %v8985_v33 = vadd.f32 %v3958_v50, %v3340_v30  ;;  %v2748_v50 = vrot.slane %v2592_v11, 5  ;;  %v2593_v30 = vld [vmem:[#allocation2 + $0xc8] sm:$0x1]  ;;  %v3787_v27 = vor.u32 %v3786_v17, %v3783_v29  ;;  %v3797_v40 = vor.u32 %v3796_v15, %v8989_v49 }
 0x234   : > { %v3960_v2 = vpop.f32.mrf.mxu0  ;;  %v2751_v63 = vrot.slane %v2593_v30, 5  ;;  %v2293_v29 = vunpack.c.l.b16 %v2228_v62  ;;  %v3441_v30 = vld [vmem:[#allocation2 + $0xd8] sm:$0xf] }
 0x235   : > { %v2750_v55 = vrot.slane %v2748_v50, 4  ;;  %v3788_v35 = vrot.slane %v3787_v27, 4  ;;  %v3798_v17 = vrot.slane %v3797_v40, 4  ;;  %v3808_v27 = vshll.u32 %v3441_v30, 16 }
 0x236   : > { %v2892_v38 = vpop.f32.mrf.mxu2  ;;  %v2398_v53 = vpop.f32.mrf.mxu1 }
 0x237   : > { %v2991_v44 = vadd.f32 %v2892_v38, %v2494_v41  ;;  %v3800_v41 = vshll.u32 %v3440_v54, 16  ;;  %v2240_v38 = vshrl.u32 %v1873_v42, 16  ;;  %v3442_v54 = vld [vmem:[#allocation2 + $0xdc] sm:$0xf] }
 0x238   : > { %v3242_v59 = vpop.f32.mrf.mxu3  ;;  %v3818_v62 = vshrl.u32 %v3442_v54, 16 }
 0x239   : > { %v3341_v26 = vadd.f32 %v3242_v59, %v2991_v44  ;;  %7117 = vmatmul.msk.bf16.gmra.mxu1 %vm1654_vm2, %v2310_v36  ;;  %v2495_v36 = vadd.f32 %v2398_v53, %v8704_v47  ;;  %v2749_v47 = vsel %vm8554_vm9, %v7134_v12, %v2748_v50  ;;  %v2752_v53 = vsel %vm8554_vm9, %v2750_v55, %v2751_v63  ;;  %v2595_v55 = vld [vmem:[#allocation2 + $0xd0] sm:$0xf] }
 0x23a   : > { %v3802_v59 = vrot.slane %v3800_v41, 5  ;;  %v2255_v50 = vrot.slane %v2253_v57, 4  ;;  %v3793_v12 = vsel %vm8541_vm6, %v3788_v35, %v8989_v49  ;;  %v3805_v63 = vshrl.u32 %v3441_v30, 16  ;;  %v2596_v30 = vld [vmem:[#allocation2 + $0xd4] sm:$0x1] }
 0x23b   : > { %7150 = vmatmul.msk.bf16.gmra.mxu2 %vm1654_vm2, %v2807_v51  ;;  %v8993_v11 = vadd.f32 %v3960_v2, %v3341_v26  ;;  %v2243_v51 = vshll.u32 %v1873_v42, 16  ;;  %v2238_v2 = vsel %vm8541_vm6, %v2233_v7, %v2237_v31  ;;  %v2790_v7 = vunpack.c.l.b16 %v2749_v47  ;;  %v1875_v31 = vld [vmem:[#allocation2 + $0xd4] sm:$0x1] }
 0x23c   : > { %v3963_v10 = vpop.f32.mrf.mxu0  ;;  %v2294_v26 = vunpack.c.l.b16 %v2238_v2  ;;  %v9008_v42 = vrot.slane %v2249_v3, 5  ;;  %v3803_v41 = vsel %vm8541_vm6, %v3798_v17, %v3802_v59  ;;  %v2259_v2 = vshll.u32 %v1875_v31, 16 }
 0x23d   : > { %7231 = vmatmul.msk.bf16.gmra.mxu3 %vm1654_vm2, %v7450_v34  ;;  %v2242_v34 = vrot.slane %v2240_v38, 4  ;;  %v2245_v13 = vrot.slane %v2243_v51, 5  ;;  %v3858_v49 = vunpack.c.l.b16 %v3793_v12  ;;  %v3859_v35 = vunpack.c.l.b16 %v3803_v41 }
 0x23e   : > { %v2895_v32 = vpop.f32.mrf.mxu2  ;;  %v2400_v16 = vpop.f32.mrf.mxu1  ;;  %v2311_v51 = vpack.c.b16 %v2294_v26, %v2293_v29  ;;  %v2256_v47 = vor.u32 %v2255_v50, %v9008_v42  ;;  %v3810_v17 = vrot.slane %v3808_v27, 5  ;;  %v7451_v29 = vld [vmem:[#allocation2 + $0xcc] sm:$0xff]  ;;  %v2758_v31 = vrot.slane %v2596_v30, 5 }
 0x23f   : > { %7248 = vmatmul.msk.bf16.gmra.mxu0 %vm1654_vm2, %v3875_v56  ;;  %v2992_v44 = vadd.f32 %v2895_v32, %v2495_v36  ;;  %v2791_v56 = vunpack.c.l.b16 %v2752_v53  ;;  %v3814_v36 = vshll.u32 %v3442_v54, 16  ;;  %v2496_v38 = vadd.f32 %v2400_v16, %v8722_v23  ;;  %v3443_v54 = vld [vmem:[#allocation2 + $0xe0] sm:$0x1] }
 0x240   : > { %v3245_v8 = vpop.f32.mrf.mxu3  ;;  %v2246_v32 = vor.u32 %v2245_v13, %v2242_v34  ;;  %v2755_v53 = vrot.slane %v2595_v55, 5  ;;  %v3820_v23 = vrot.slane %v3818_v62, 4  ;;  %v2261_v34 = vrot.slane %v2259_v2, 5 }
 0x241   : > { %v3342_v15 = vadd.f32 %v3245_v8, %v2992_v44  ;;  %v2808_v44 = vpack.c.b16 %v2791_v56, %v2790_v7  ;;  %v2594_v8 = vld [vmem:[#allocation2 + $0xcc] sm:$0xe]  ;;  %v2257_v13 = vrot.slane %v2256_v47, 4  ;;  %v3876_v50 = vpack.c.b16 %v3859_v35, %v3858_v49 }
 0x242   : > { %v2247_v26 = vrot.slane %v2246_v32, 4  ;;  %v7135_v7 = vrot.slane %v2594_v8, 9  ;;  %v2757_v56 = vrot.slane %v2755_v53, 4  ;;  %v3824_v55 = vshll.u32 %v3443_v54, 16 }
 0x243   : > { %v9013_v43 = vadd.f32 %v3963_v10, %v3342_v15  ;;  %v3807_v15 = vrot.slane %v3805_v63, 4 }
 0x244   : > { %v3965_v40 = vpop.f32.mrf.mxu0  ;;  %v2252_v2 = vsel %vm8541_vm6, %v2247_v26, %v9008_v42  ;;  %v3826_v49 = vrot.slane %v3824_v55, 5  ;;  %v4114_v55 = vld [vmem:[#allocation2 + $0xc] sm:$0xe] }
 0x245   : > { %9924 = vst [vmem:[#allocation50_spill] sm:$0xff] %v9013_v43  ;;  %v3816_v43 = vrot.slane %v3814_v36, 5  ;;  %v3811_v12 = vor.u32 %v3810_v17, %v3807_v15  ;;  %v4958_v36 = vld [vmem:[#allocation2 + $0x18] sm:$0xf]  ;;  %v2295_v17 = vunpack.c.l.b16 %v2252_v2 }
 0x246   : > { %v2897_v3 = vpop.f32.mrf.mxu2  ;;  %v2403_v57 = vpop.f32.mrf.mxu1  ;;  %v5007_v47 = vshrl.u32 %v4958_v36, 16  ;;  %v5010_v8 = vshll.u32 %v4958_v36, 16 }
 0x247   : > { %v2993_v10 = vadd.f32 %v2897_v3, %v2496_v38  ;;  %v3821_v41 = vor.u32 %v3820_v23, %v3816_v43  ;;  %v2497_v62 = vadd.f32 %v2403_v57, %v8749_v1  ;;  %v4959_v38 = vld [vmem:[#allocation2 + $0x1c] sm:$0xf]  ;;  %v2262_v3 = vsel %vm8541_vm6, %v2257_v13, %v2261_v34  ;;  %v4115_v23 = vld [vmem:[#allocation2 + $0x10] sm:$0xf] }
 0x248   : > { %v3247_v59 = vpop.f32.mrf.mxu3  ;;  %v3812_v57 = vrot.slane %v3811_v12, 4  ;;  %v5016_v30 = vshll.u32 %v4959_v38, 16  ;;  %v5020_v42 = vshrl.u32 %v4959_v38, 16  ;;  %v4116_v38 = vld [vmem:[#allocation2 + $0x14] sm:$0x1] }
 0x249   : > { %v3343_v16 = vadd.f32 %v3247_v59, %v2993_v10  ;;  %7118 = vmatmul.msk.bf16.gmra.mxu1 %vm1654_vm2, %v2311_v51  ;;  %v3822_v35 = vrot.slane %v3821_v41, 4  ;;  %v2296_v59 = vunpack.c.l.b16 %v2262_v3  ;;  %v4212_v41 = vrot.slane %v4115_v23, 5 }
 0x24b   : > { %7151 = vmatmul.msk.bf16.gmra.mxu2 %vm1654_vm2, %v2808_v44  ;;  %v9021_v63 = vadd.f32 %v3965_v40, %v3343_v16  ;;  %v2756_v40 = vsel %vm8554_vm9, %v7135_v7, %v2755_v53  ;;  %v2759_v44 = vsel %vm8554_vm9, %v2757_v56, %v2758_v31  ;;  %v3817_v16 = vsel %vm8541_vm6, %v3812_v57, %v3816_v43  ;;  %v4960_v43 = vld [vmem:[#allocation2 + $0x20] sm:$0x1] }
 0x24c   : > { %v3968_v27 = vpop.f32.mrf.mxu0  ;;  %v2792_v54 = vunpack.c.l.b16 %v2756_v40  ;;  %v2793_v53 = vunpack.c.l.b16 %v2759_v44  ;;  %v3827_v13 = vsel %vm8541_vm6, %v3822_v35, %v3826_v49  ;;  %v5012_v7 = vrot.slane %v5010_v8, 5  ;;  %v5677_v40 = vld [vmem:[#allocation2 + $0x1c] sm:$0xf]  ;;  %v5676_v8 = vld [vmem:[#allocation2 + $0x18] sm:$0xe] }
 0x24d   : > { %7232 = vmatmul.msk.bf16.gmra.mxu3 %vm1654_vm2, %v7451_v29  ;;  %v5009_v29 = vrot.slane %v5007_v47, 4  ;;  %v9041_v56 = vrot.slane %v5016_v30, 5  ;;  %v5022_v31 = vrot.slane %v5020_v42, 4  ;;  %v2312_v12 = vpack.c.b16 %v2296_v59, %v2295_v17  ;;  %v4961_v17 = vld [vmem:[#allocation2 + $0x24] sm:$0xf] }
 0x24e   : > { %v2900_v51 = vpop.f32.mrf.mxu2  ;;  %v2405_v32 = vpop.f32.mrf.mxu1  ;;  %v3860_v2 = vunpack.c.l.b16 %v3817_v16  ;;  %v3861_v3 = vunpack.c.l.b16 %v3827_v13  ;;  %v5026_v35 = vshll.u32 %v4960_v43, 16  ;;  %v5774_v30 = vrot.slane %v5677_v40, 5 }
 0x24f   : > { %7249 = vmatmul.msk.bf16.gmra.mxu0 %vm1654_vm2, %v3876_v50  ;;  %v2994_v1 = vadd.f32 %v2900_v51, %v2497_v62  ;;  %v2498_v50 = vadd.f32 %v2405_v32, %v8770_v48  ;;  %v5013_v57 = vor.u32 %v5012_v7, %v5009_v29  ;;  %v5023_v49 = vor.u32 %v5022_v31, %v9041_v56  ;;  %v7452_v48 = vld [vmem:[#allocation2 + $0xd8] sm:$0xff]  ;;  %v4962_v29 = vld [vmem:[#allocation2 + $0x28] sm:$0xf] }
 0x250   : > { %v3250_v10 = vpop.f32.mrf.mxu3  ;;  %v4214_v32 = vrot.slane %v4212_v41, 4  ;;  %v3877_v42 = vpack.c.b16 %v3861_v3, %v3860_v2  ;;  %v5028_v31 = vrot.slane %v5026_v35, 5  ;;  %v5034_v43 = vshll.u32 %v4961_v17, 16 }
 0x251   : > { %v3344_v15 = vadd.f32 %v3250_v10, %v2994_v1  ;;  %v7251_v1 = vrot.slane %v4114_v55, 9  ;;  %v4215_v10 = vrot.slane %v4116_v38, 5  ;;  %v5024_v16 = vrot.slane %v5023_v49, 4 }
 0x252   : > { %v5031_v38 = vshrl.u32 %v4961_v17, 16 }
 0x253   : > { %v9037_v26 = vadd.f32 %v3968_v27, %v3344_v15  ;;  %v2809_v27 = vpack.c.b16 %v2793_v53, %v2792_v54  ;;  %v5678_v15 = vld [vmem:[#allocation2 + $0x20] sm:$0x1]  ;;  %v4213_v23 = vsel %vm8554_vm9, %v7251_v1, %v4212_v41  ;;  %v5014_v53 = vrot.slane %v5013_v57, 4 }
 0x254   : > { %v3970_v34 = vpop.f32.mrf.mxu0  ;;  %v4216_v7 = vsel %vm8554_vm9, %v4214_v32, %v4215_v10  ;;  %v5033_v49 = vrot.slane %v5031_v38, 4 }
 0x255   : > { %v5019_v40 = vsel %vm8541_vm6, %v5014_v53, %v9041_v56  ;;  %v4963_v56 = vld [vmem:[#allocation2 + $0x2c] sm:$0x1] }
 0x256   : > { %v2902_v36 = vpop.f32.mrf.mxu2  ;;  %v2408_v62 = vpop.f32.mrf.mxu1 }
 0x257   : > { %v2995_v51 = vadd.f32 %v2902_v36, %v2498_v50  ;;  %v2499_v13 = vadd.f32 %v2408_v62, %v8786_v28  ;;  %v7382_v50 = vrot.slane %v5676_v8, 9  ;;  %v5777_v36 = vrot.slane %v5678_v15, 5 }
 0x258   : > { %v3252_v44 = vpop.f32.mrf.mxu3  ;;  %v4324_v28 = vunpack.c.l.b16 %v4213_v23  ;;  %v4325_v62 = vunpack.c.l.b16 %v4216_v7  ;;  %v5392_v15 = vunpack.c.l.b16 %v5019_v40  ;;  %v5679_v40 = vld [vmem:[#allocation2 + $0x24] sm:$0xe] }
 0x259   : > { %v3345_v47 = vadd.f32 %v3252_v44, %v2995_v51  ;;  %7119 = vmatmul.msk.bf16.gmra.mxu1 %vm1654_vm2, %v2312_v12  ;;  %v5040_v51 = vshll.u32 %v4962_v29, 16  ;;  %v5029_v44 = vsel %vm8541_vm6, %v5024_v16, %v5028_v31  ;;  %v5775_v1 = vsel %vm8554_vm9, %v7382_v50, %v5774_v30  ;;  %v7453_v50 = vld [vmem:[#allocation2 + $0x18] sm:$0xff] }
 0x25a   : > { %v5393_v23 = vunpack.c.l.b16 %v5029_v44  ;;  %v5886_v53 = vunpack.c.l.b16 %v5775_v1 }
 0x25b   : > { %7152 = vmatmul.msk.bf16.gmra.mxu2 %vm1654_vm2, %v2809_v27  ;;  %v9047_v59 = vadd.f32 %v3970_v34, %v3345_v47  ;;  %v5776_v34 = vrot.slane %v5774_v30, 4  ;;  %v5044_v27 = vshrl.u32 %v4962_v29, 16  ;;  %v5036_v47 = vrot.slane %v5034_v43, 5  ;;  %v5680_v43 = vld [vmem:[#allocation2 + $0x28] sm:$0xf] }
 0x25c   : > { %v3973_v54 = vpop.f32.mrf.mxu0  ;;  %v5042_v32 = vrot.slane %v5040_v51, 5  ;;  %v5424_v51 = vpack.c.b16 %v5393_v23, %v5392_v15  ;;  %v5781_v44 = vrot.slane %v5680_v43, 5  ;;  %v7383_v23 = vrot.slane %v5679_v40, 9 }
 0x25d   : > { %7233 = vmatmul.msk.bf16.gmra.mxu3 %vm1654_vm2, %v7452_v48  ;;  %v5778_v57 = vsel %vm8554_vm9, %v5776_v34, %v5777_v36  ;;  %v4118_v48 = vld [vmem:[#allocation2 + $0x1c] sm:$0xf]  ;;  %v5046_v10 = vrot.slane %v5044_v27, 4  ;;  %v5037_v7 = vor.u32 %v5036_v47, %v5033_v49  ;;  %v4119_v34 = vld [vmem:[#allocation2 + $0x20] sm:$0x1] }
 0x25e   : > { %v2905_v12 = vpop.f32.mrf.mxu2  ;;  %v2410_v55 = vpop.f32.mrf.mxu1  ;;  %v5887_v16 = vunpack.c.l.b16 %v5778_v57  ;;  %v5681_v49 = vld [vmem:[#allocation2 + $0x2c] sm:$0x1]  ;;  %v5782_v43 = vsel %vm8554_vm9, %v7383_v23, %v5781_v44 }
 0x25f   : > { %7250 = vmatmul.msk.bf16.gmra.mxu0 %vm1654_vm2, %v3877_v42  ;;  %v2996_v41 = vadd.f32 %v2905_v12, %v2499_v13  ;;  %v4356_v42 = vpack.c.b16 %v4325_v62, %v4324_v28  ;;  %v2500_v17 = vadd.f32 %v2410_v55, %v8805_v24  ;;  %v4219_v13 = vrot.slane %v4118_v48, 5  ;;  %v4117_v12 = vld [vmem:[#allocation2 + $0x18] sm:$0xe]  ;;  %v4964_v48 = vld [vmem:[#allocation2 + $0x30] sm:$0xf] }
 0x260   : > { %v3255_v2 = vpop.f32.mrf.mxu3  ;;  %v5047_v36 = vor.u32 %v5046_v10, %v5042_v32  ;;  %v5918_v24 = vpack.c.b16 %v5887_v16, %v5886_v53  ;;  %v7252_v55 = vrot.slane %v4117_v12, 9  ;;  %v5038_v28 = vrot.slane %v5037_v7, 4  ;;  %v4965_v10 = vld [vmem:[#allocation2 + $0x34] sm:$0xf] }
 0x261   : > { %v3346_v3 = vadd.f32 %v3255_v2, %v2996_v41  ;;  %v4221_v27 = vrot.slane %v4219_v13, 4  ;;  %v4222_v2 = vrot.slane %v4119_v34, 5  ;;  %v5783_v16 = vrot.slane %v5781_v44, 4  ;;  %v4122_v44 = vld [vmem:[#allocation2 + $0x2c] sm:$0x1] }
 0x262   : > { %v5048_v62 = vrot.slane %v5047_v36, 4  ;;  %v5055_v7 = vshrl.u32 %v4964_v48, 16 }
 0x263   : > { %v9065_v35 = vadd.f32 %v3973_v54, %v3346_v3  ;;  %v5050_v54 = vshll.u32 %v4963_v56, 16  ;;  %v4220_v56 = vsel %vm8554_vm9, %v7252_v55, %v4219_v13  ;;  %v5068_v13 = vshrl.u32 %v4965_v10, 16 }
 0x264   : > { %v3975_v8 = vpop.f32.mrf.mxu0  ;;  %v4326_v34 = vunpack.c.l.b16 %v4220_v56  ;;  %v5057_v55 = vrot.slane %v5055_v7, 4  ;;  %v7454_v56 = vld [vmem:[#allocation2 + $0x24] sm:$0xff]  ;;  %v4229_v7 = vrot.slane %v4122_v44, 5 }
 0x265   : > { %v5052_v3 = vrot.slane %v5050_v54, 5 }
 0x266   : > { %v2907_v30 = vpop.f32.mrf.mxu2  ;;  %v2413_v29 = vpop.f32.mrf.mxu1 }
 0x267   : > { %v2997_v31 = vadd.f32 %v2907_v30, %v2500_v17  ;;  %v2501_v47 = vadd.f32 %v2413_v29, %v8685_v14  ;;  %v4223_v17 = vsel %vm8554_vm9, %v4221_v27, %v4222_v2  ;;  %v5053_v14 = vsel %vm8541_vm6, %v5048_v62, %v5052_v3 }
 0x268   : > { %v3257_v38 = vpop.f32.mrf.mxu3  ;;  %v5784_v30 = vrot.slane %v5681_v49, 5  ;;  %v4327_v36 = vunpack.c.l.b16 %v4223_v17  ;;  %v4966_v49 = vld [vmem:[#allocation2 + $0x38] sm:$0x1]  ;;  %v5888_v17 = vunpack.c.l.b16 %v5782_v43 }
 0x269   : > { %v3347_v41 = vadd.f32 %v3257_v38, %v2997_v31  ;;  %7268 = vmatmul.msk.bf16.vlgmr.msra.gmra.mxu1 %vm1654_vm2, %v4356_v42  ;;  %v5058_v31 = vshll.u32 %v4964_v48, 16  ;;  %v4121_v38 = vld [vmem:[#allocation2 + $0x28] sm:$0xf] }
 0x26a   : > { %v4357_v3 = vpack.c.b16 %v4327_v36, %v4326_v34  ;;  %v4226_v40 = vrot.slane %v4121_v38, 5  ;;  %v4967_v34 = vld [vmem:[#allocation2 + $0x3c] sm:$0xf] }
 0x26b   : > { %7349 = vmatmul.msk.bf16.vlgmr.msra.gmra.mxu2 %vm1654_vm2, %v7453_v50  ;;  %v9070_v1 = vadd.f32 %v3975_v8, %v3347_v41  ;;  %v5043_v8 = vsel %vm8541_vm6, %v5038_v28, %v5042_v32  ;;  %v5064_v50 = vshll.u32 %v4965_v10, 16  ;;  %v5395_v32 = vunpack.c.l.b16 %v5053_v14  ;;  %v4120_v10 = vld [vmem:[#allocation2 + $0x24] sm:$0xe] }
 0x26c   : > { %v3978_v57 = vpop.f32.mrf.mxu0  ;;  %v5394_v54 = vunpack.c.l.b16 %v5043_v8  ;;  %v5785_v41 = vsel %vm8554_vm9, %v5783_v16, %v5784_v30  ;;  %v5060_v27 = vrot.slane %v5058_v31, 5  ;;  %v5070_v28 = vrot.slane %v5068_v13, 4  ;;  %v5683_v8 = vld [vmem:[#allocation2 + $0x34] sm:$0xf]  ;;  %v5682_v31 = vld [vmem:[#allocation2 + $0x30] sm:$0xe] }
 0x26d   : > { %7366 = vmatmul.msk.bf16.vlgmr.msra.gmra.mxu3 %vm1654_vm2, %v5424_v51  ;;  %v9089_v2 = vrot.slane %v5064_v50, 5  ;;  %v5074_v30 = vshll.u32 %v4966_v49, 16  ;;  %v5788_v50 = vrot.slane %v5683_v8, 5  ;;  %v5082_v44 = vshll.u32 %v4967_v34, 16 }
 0x26e   : > { %v2910_v42 = vpop.f32.mrf.mxu2  ;;  %v2415_v15 = vpop.f32.mrf.mxu1  ;;  %v5061_v14 = vor.u32 %v5060_v27, %v5057_v55 }
 0x26f   : > { %7399 = vmatmul.msk.bf16.vlgmr.msra.gmra.mxu0 %vm1654_vm2, %v5918_v24  ;;  %v2998_v53 = vadd.f32 %v2910_v42, %v2501_v47  ;;  %v2502_v62 = vadd.f32 %v2415_v15, %v8702_v46  ;;  %v5071_v16 = vor.u32 %v5070_v28, %v9089_v2  ;;  %v7253_v46 = vrot.slane %v4120_v10, 9 }
 0x270   : > { %v3260_v29 = vpop.f32.mrf.mxu3  ;;  %v4228_v15 = vrot.slane %v4226_v40, 4  ;;  %v5062_v38 = vrot.slane %v5061_v14, 4  ;;  %v5076_v43 = vrot.slane %v5074_v30, 5  ;;  %v5079_v10 = vshrl.u32 %v4967_v34, 16 }
 0x271   : > { %v3348_v12 = vadd.f32 %v3260_v29, %v2998_v53  ;;  %v5425_v53 = vpack.c.b16 %v5395_v32, %v5394_v54  ;;  %v5072_v32 = vrot.slane %v5071_v16, 4  ;;  %v4227_v27 = vsel %vm8554_vm9, %v7253_v46, %v4226_v40 }
 0x272   : > { %v4230_v28 = vsel %vm8554_vm9, %v4228_v15, %v4229_v7  ;;  %v5067_v40 = vsel %vm8541_vm6, %v5062_v38, %v9089_v2  ;;  %v5081_v16 = vrot.slane %v5079_v10, 4  ;;  %v5084_v30 = vrot.slane %v5082_v44, 5  ;;  %v5686_v44 = vld [vmem:[#allocation2 + $0x40] sm:$0xf] }
 0x273   : > { %v9087_v51 = vadd.f32 %v3978_v57, %v3348_v12  ;;  %v5889_v57 = vunpack.c.l.b16 %v5785_v41  ;;  %v5684_v12 = vld [vmem:[#allocation2 + $0x38] sm:$0x1]  ;;  %v4968_v41 = vld [vmem:[#allocation2 + $0x40] sm:$0xf]  ;;  %v4329_v8 = vunpack.c.l.b16 %v4230_v28 }
 0x274   : > { %v3980_v24 = vpop.f32.mrf.mxu0 }
 0x275   : > { %v5919_v13 = vpack.c.b16 %v5889_v57, %v5888_v17  ;;  %v4328_v57 = vunpack.c.l.b16 %v4227_v27  ;;  %v5085_v27 = vor.u32 %v5084_v30, %v5081_v16  ;;  %v5687_v16 = vld [vmem:[#allocation2 + $0x44] sm:$0x1] }
 0x276   : > { %v2912_v47 = vpop.f32.mrf.mxu2  ;;  %v2418_v48 = vpop.f32.mrf.mxu1 }
 0x277   : > { %v2999_v42 = vadd.f32 %v2912_v47, %v2502_v62  ;;  %v2503_v55 = vadd.f32 %v2418_v48, %v8720_v22  ;;  %v7384_v62 = vrot.slane %v5682_v31, 9  ;;  %v5791_v47 = vrot.slane %v5684_v12, 5  ;;  %v4969_v12 = vld [vmem:[#allocation2 + $0x44] sm:$0x1] }
 0x278   : > { %v3262_v23 = vpop.f32.mrf.mxu3  ;;  %v5092_v22 = vshrl.u32 %v4968_v41, 16  ;;  %v5396_v31 = vunpack.c.l.b16 %v5067_v40  ;;  %v4358_v38 = vpack.c.b16 %v4329_v8, %v4328_v57  ;;  %v5086_v40 = vrot.slane %v5085_v27, 4  ;;  %v5685_v8 = vld [vmem:[#allocation2 + $0x3c] sm:$0xe] }
 0x279   : > { %v3349_v29 = vadd.f32 %v3262_v23, %v2999_v42  ;;  %7269 = vmatmul.msk.bf16.gmra.mxu1 %vm1654_vm2, %v4357_v3  ;;  %v5077_v23 = vsel %vm8541_vm6, %v5072_v32, %v5076_v43 }
 0x27a   : > { %v5094_v15 = vrot.slane %v5092_v22, 4 }
 0x27b   : > { %7350 = vmatmul.msk.bf16.gmra.mxu2 %vm1654_vm2, %v7454_v56  ;;  %v9095_v36 = vadd.f32 %v3980_v24, %v3349_v29  ;;  %v5790_v24 = vrot.slane %v5788_v50, 4  ;;  %v5088_v56 = vshll.u32 %v4968_v41, 16  ;;  %v4124_v29 = vld [vmem:[#allocation2 + $0x34] sm:$0xf] }
 0x27c   : > { %v3983_v54 = vpop.f32.mrf.mxu0 }
 0x27d   : > { %7367 = vmatmul.msk.bf16.gmra.mxu3 %vm1654_vm2, %v5425_v53  ;;  %v5789_v53 = vsel %vm8554_vm9, %v7384_v62, %v5788_v50  ;;  %v5792_v14 = vsel %vm8554_vm9, %v5790_v24, %v5791_v47  ;;  %v5090_v46 = vrot.slane %v5088_v56, 5  ;;  %v7455_v62 = vld [vmem:[#allocation2 + $0x30] sm:$0xff]  ;;  %v4125_v24 = vld [vmem:[#allocation2 + $0x38] sm:$0x1] }
 0x27e   : > { %v2915_v3 = vpop.f32.mrf.mxu2  ;;  %v2420_v49 = vpop.f32.mrf.mxu1  ;;  %v5890_v32 = vunpack.c.l.b16 %v5789_v53  ;;  %v5891_v43 = vunpack.c.l.b16 %v5792_v14 }
 0x27f   : > { %7400 = vmatmul.msk.bf16.gmra.mxu0 %vm1654_vm2, %v5919_v13  ;;  %v3000_v42 = vadd.f32 %v2915_v3, %v2503_v55  ;;  %v5397_v13 = vunpack.c.l.b16 %v5077_v23  ;;  %v2504_v34 = vadd.f32 %v2420_v49, %v8747_v0  ;;  %v4233_v55 = vrot.slane %v4124_v29, 5  ;;  %v4123_v3 = vld [vmem:[#allocation2 + $0x30] sm:$0xe]  ;;  %v4970_v29 = vld [vmem:[#allocation2 + $0x48] sm:$0xf] }
 0x280   : > { %v3265_v48 = vpop.f32.mrf.mxu3  ;;  %v5095_v47 = vor.u32 %v5094_v15, %v5090_v46  ;;  %v5920_v0 = vpack.c.b16 %v5891_v43, %v5890_v32  ;;  %v7254_v49 = vrot.slane %v4123_v3, 9  ;;  %v5795_v23 = vrot.slane %v5686_v44, 5  ;;  %v4971_v15 = vld [vmem:[#allocation2 + $0x4c] sm:$0xf] }
 0x281   : > { %v3350_v17 = vadd.f32 %v3265_v48, %v3000_v42  ;;  %v5426_v56 = vpack.c.b16 %v5397_v13, %v5396_v31  ;;  %v4235_v22 = vrot.slane %v4233_v55, 4  ;;  %v4236_v48 = vrot.slane %v4125_v24, 5 }
 0x282   : > { %v5797_v43 = vrot.slane %v5795_v23, 4  ;;  %v5103_v27 = vshrl.u32 %v4970_v29, 16 }
 0x283   : > { %v9113_v7 = vadd.f32 %v3983_v54, %v3350_v17  ;;  %v5098_v54 = vshll.u32 %v4969_v12, 16  ;;  %v5096_v17 = vrot.slane %v5095_v47, 4  ;;  %v4234_v12 = vsel %vm8554_vm9, %v7254_v49, %v4233_v55 }
 0x284   : > { %v3985_v2 = vpop.f32.mrf.mxu0  ;;  %v5116_v55 = vshrl.u32 %v4971_v15, 16  ;;  %v4330_v24 = vunpack.c.l.b16 %v4234_v12  ;;  %v5105_v49 = vrot.slane %v5103_v27, 4  ;;  %v7456_v12 = vld [vmem:[#allocation2 + $0x3c] sm:$0xff]  ;;  %v5689_v27 = vld [vmem:[#allocation2 + $0x4c] sm:$0xf] }
 0x285   : > { %v5100_v57 = vrot.slane %v5098_v54, 5 }
 0x286   : > { %v2917_v50 = vpop.f32.mrf.mxu2  ;;  %v2423_v41 = vpop.f32.mrf.mxu1 }
 0x287   : > { %v3001_v28 = vadd.f32 %v2917_v50, %v2504_v34  ;;  %v2505_v30 = vadd.f32 %v2423_v41, %v8768_v45  ;;  %v4237_v34 = vsel %vm8554_vm9, %v4235_v22, %v4236_v48  ;;  %v5101_v45 = vsel %vm8541_vm6, %v5096_v17, %v5100_v57 }
 0x288   : > { %v3267_v10 = vpop.f32.mrf.mxu3  ;;  %v5798_v50 = vrot.slane %v5687_v16, 5  ;;  %v4331_v47 = vunpack.c.l.b16 %v4237_v34  ;;  %v4972_v16 = vld [vmem:[#allocation2 + $0x50] sm:$0x1] }
 0x289   : > { %v3351_v42 = vadd.f32 %v3267_v10, %v3001_v28  ;;  %7270 = vmatmul.msk.bf16.gmra.mxu1 %vm1654_vm2, %v4358_v38  ;;  %v7385_v38 = vrot.slane %v5685_v8, 9  ;;  %v5106_v28 = vshll.u32 %v4970_v29, 16  ;;  %v4127_v10 = vld [vmem:[#allocation2 + $0x40] sm:$0xf] }
 0x28a   : > { %v4359_v57 = vpack.c.b16 %v4331_v47, %v4330_v24  ;;  %v4240_v8 = vrot.slane %v4127_v10, 5  ;;  %v5802_v10 = vrot.slane %v5689_v27, 5 }
 0x28b   : > { %7351 = vmatmul.msk.bf16.gmra.mxu2 %vm1654_vm2, %v7455_v62  ;;  %v9118_v53 = vadd.f32 %v3985_v2, %v3351_v42  ;;  %v5091_v2 = vsel %vm8541_vm6, %v5086_v40, %v5090_v46  ;;  %v5112_v62 = vshll.u32 %v4971_v15, 16  ;;  %v5399_v46 = vunpack.c.l.b16 %v5101_v45  ;;  %v4126_v15 = vld [vmem:[#allocation2 + $0x3c] sm:$0xe] }
 0x28c   : > { %v3988_v14 = vpop.f32.mrf.mxu0  ;;  %v5398_v54 = vunpack.c.l.b16 %v5091_v2  ;;  %v5796_v44 = vsel %vm8554_vm9, %v7385_v38, %v5795_v23  ;;  %v5799_v42 = vsel %vm8554_vm9, %v5797_v43, %v5798_v50  ;;  %v5108_v22 = vrot.slane %v5106_v28, 5  ;;  %v4128_v23 = vld [vmem:[#allocation2 + $0x44] sm:$0x1] }
 0x28d   : > { %7368 = vmatmul.msk.bf16.gmra.mxu3 %vm1654_vm2, %v5426_v56  ;;  %v9137_v48 = vrot.slane %v5112_v62, 5  ;;  %v5118_v40 = vrot.slane %v5116_v55, 4  ;;  %v5892_v34 = vunpack.c.l.b16 %v5796_v44  ;;  %v5122_v43 = vshll.u32 %v4972_v16, 16  ;;  %v4973_v62 = vld [vmem:[#allocation2 + $0x54] sm:$0xf] }
 0x28e   : > { %v2920_v31 = vpop.f32.mrf.mxu2  ;;  %v2425_v13 = vpop.f32.mrf.mxu1  ;;  %v5427_v38 = vpack.c.b16 %v5399_v46, %v5398_v54  ;;  %v4974_v55 = vld [vmem:[#allocation2 + $0x58] sm:$0xf]  ;;  %v5130_v16 = vshll.u32 %v4973_v62, 16 }
 0x28f   : > { %7401 = vmatmul.msk.bf16.gmra.mxu0 %vm1654_vm2, %v5920_v0  ;;  %v3002_v32 = vadd.f32 %v2920_v31, %v2505_v30  ;;  %v2506_v17 = vadd.f32 %v2425_v13, %v8784_v6  ;;  %v5119_v45 = vor.u32 %v5118_v40, %v9137_v48  ;;  %v7255_v6 = vrot.slane %v4126_v15, 9  ;;  %v5690_v40 = vld [vmem:[#allocation2 + $0x50] sm:$0x1] }
 0x290   : > { %v3270_v41 = vpop.f32.mrf.mxu3  ;;  %v4242_v13 = vrot.slane %v4240_v8, 4  ;;  %v5140_v15 = vshrl.u32 %v4974_v55, 16 }
 0x291   : > { %v3352_v3 = vadd.f32 %v3270_v41, %v3002_v32  ;;  %v5109_v32 = vor.u32 %v5108_v22, %v5105_v49  ;;  %v4243_v41 = vrot.slane %v4128_v23, 5  ;;  %v5120_v54 = vrot.slane %v5119_v45, 4  ;;  %v5688_v22 = vld [vmem:[#allocation2 + $0x48] sm:$0xe] }
 0x292   : > { %v4241_v44 = vsel %vm8554_vm9, %v7255_v6, %v4240_v8  ;;  %v5124_v49 = vrot.slane %v5122_v43, 5  ;;  %v7386_v23 = vrot.slane %v5688_v22, 9  ;;  %v5132_v45 = vrot.slane %v5130_v16, 5  ;;  %v4130_v6 = vld [vmem:[#allocation2 + $0x4c] sm:$0xf] }
 0x293   : > { %v9135_v56 = vadd.f32 %v3988_v14, %v3352_v3  ;;  %v5893_v14 = vunpack.c.l.b16 %v5799_v42  ;;  %v5110_v47 = vrot.slane %v5109_v32, 4  ;;  %v4244_v42 = vsel %vm8554_vm9, %v4242_v13, %v4243_v41  ;;  %v4131_v16 = vld [vmem:[#allocation2 + $0x50] sm:$0x1] }
 0x294   : > { %v3990_v0 = vpop.f32.mrf.mxu0 }
 0x295   : > { %v5921_v28 = vpack.c.b16 %v5893_v14, %v5892_v34  ;;  %v5115_v8 = vsel %vm8541_vm6, %v5110_v47, %v9137_v48  ;;  %v4332_v14 = vunpack.c.l.b16 %v4241_v44  ;;  %v5803_v48 = vsel %vm8554_vm9, %v7386_v23, %v5802_v10 }
 0x296   : > { %v2922_v30 = vpop.f32.mrf.mxu2  ;;  %v2428_v29 = vpop.f32.mrf.mxu1  ;;  %v5400_v47 = vunpack.c.l.b16 %v5115_v8 }
 0x297   : > { %v3003_v31 = vadd.f32 %v2922_v30, %v2506_v17  ;;  %v2507_v46 = vadd.f32 %v2428_v29, %v8803_v19  ;;  %v5136_v30 = vshll.u32 %v4974_v55, 16 }
 0x298   : > { %v3272_v2 = vpop.f32.mrf.mxu3 }
 0x299   : > { %v3353_v50 = vadd.f32 %v3272_v2, %v3003_v31  ;;  %7271 = vmatmul.msk.bf16.gmra.mxu1 %vm1654_vm2, %v4359_v57  ;;  %v5127_v57 = vshrl.u32 %v4973_v62, 16  ;;  %v5804_v31 = vrot.slane %v5802_v10, 4  ;;  %v4333_v2 = vunpack.c.l.b16 %v4244_v42  ;;  %v4129_v42 = vld [vmem:[#allocation2 + $0x48] sm:$0xe] }
 0x29a   : > { %v9158_v43 = vrot.slane %v5136_v30, 5  ;;  %v7256_v23 = vrot.slane %v4129_v42, 9 }
 0x29b   : > { %7352 = vmatmul.msk.bf16.gmra.mxu2 %vm1654_vm2, %v7456_v12  ;;  %v9143_v3 = vadd.f32 %v3990_v0, %v3353_v50  ;;  %v5805_v12 = vrot.slane %v5690_v40, 5  ;;  %v5129_v32 = vrot.slane %v5127_v57, 4  ;;  %v5142_v50 = vrot.slane %v5140_v15, 4 }
 0x29c   : > { %v3993_v24 = vpop.f32.mrf.mxu0  ;;  %v4360_v55 = vpack.c.b16 %v4333_v2, %v4332_v14  ;;  %v5894_v57 = vunpack.c.l.b16 %v5803_v48 }
 0x29d   : > { %7369 = vmatmul.msk.bf16.gmra.mxu3 %vm1654_vm2, %v5427_v38  ;;  %v5125_v38 = vsel %vm8541_vm6, %v5120_v54, %v5124_v49  ;;  %v5806_v27 = vsel %vm8554_vm9, %v5804_v31, %v5805_v12  ;;  %v4247_v49 = vrot.slane %v4130_v6, 5  ;;  %v5133_v22 = vor.u32 %v5132_v45, %v5129_v32  ;;  %v5691_v32 = vld [vmem:[#allocation2 + $0x54] sm:$0xe] }
 0x29e   : > { %v2925_v0 = vpop.f32.mrf.mxu2  ;;  %v2430_v17 = vpop.f32.mrf.mxu1  ;;  %v5401_v54 = vunpack.c.l.b16 %v5125_v38  ;;  %v5895_v10 = vunpack.c.l.b16 %v5806_v27  ;;  %v4250_v12 = vrot.slane %v4131_v16, 5  ;;  %v5693_v27 = vld [vmem:[#allocation2 + $0x5c] sm:$0x1] }
 0x29f   : > { %7402 = vmatmul.msk.bf16.gmra.mxu0 %vm1654_vm2, %v5921_v28  ;;  %v3004_v19 = vadd.f32 %v2925_v0, %v2507_v46  ;;  %v4975_v28 = vld [vmem:[#allocation2 + $0x5c] sm:$0x1]  ;;  %v2508_v62 = vadd.f32 %v2430_v17, %v8829_v25  ;;  %v7457_v0 = vld [vmem:[#allocation2 + $0x48] sm:$0xff]  ;;  %v1528_v25 = vld [vmem:[%s9168_s5] sm:$0xf]  ;;  %v4249_v31 = vrot.slane %v4247_v49, 4 }
 0x2a0   : > { %v3275_v29 = vpop.f32.mrf.mxu3  ;;  %v5146_v30 = vshll.u32 %v4975_v28, 16  ;;  %v1529_v17 = vld [vmem:[%s9168_s5 + $0x4] sm:$0xf]  ;;  %v5428_v8 = vpack.c.b16 %v5401_v54, %v5400_v47  ;;  %1535 = vst.msk [vmem:[#allocation2 + $0x6c] sm:$0xf] %vm1416_vm1, %v1528_v25  ;;  %v5922_v2 = vpack.c.b16 %v5895_v10, %v5894_v57 }
 0x2a1   : > { %v3354_v34 = vadd.f32 %v3275_v29, %v3004_v19  ;;  %v5692_v19 = vld [vmem:[#allocation2 + $0x58] sm:$0xf]  ;;  %1536 = vst.msk [vmem:[#allocation2 + $0x70] sm:$0xf] %vm1416_vm1, %v1529_v17  ;;  %v4251_v42 = vsel %vm8554_vm9, %v4249_v31, %v4250_v12 }
 0x2a2   : > { %v5148_v38 = vrot.slane %v5146_v30, 5  ;;  %v5809_v45 = vrot.slane %v5692_v19, 5  ;;  %v4335_v19 = vunpack.c.l.b16 %v4251_v42  ;;  %v4133_v17 = vld [vmem:[#allocation2 + $0x58] sm:$0xf] }
 0x2a3   : > { %v9160_v13 = vadd.f32 %v3993_v24, %v3354_v34  ;;  %v5143_v24 = vor.u32 %v5142_v50, %v9158_v43  ;;  %v5134_v34 = vrot.slane %v5133_v22, 4  ;;  %v1530_v50 = vld [vmem:[%s9168_s5 + $0x8] sm:$0x1]  ;;  %v7387_v22 = vrot.slane %v5691_v32, 9 }
 0x2a4   : > { %v3995_v41 = vpop.f32.mrf.mxu0  ;;  %1537 = vst.msk [vmem:[#allocation2 + $0x74] sm:$0x1] %vm1419_vm3, %v1530_v50  ;;  %v4254_v50 = vrot.slane %v4133_v17, 5 }
 0x2a5   : > { %v5144_v14 = vrot.slane %v5143_v24, 4  ;;  %v5811_v24 = vrot.slane %v5809_v45, 4 }
 0x2a6   : > { %v2927_v46 = vpop.f32.mrf.mxu2  ;;  %v2433_v44 = vpop.f32.mrf.mxu1 }
 0x2a7   : > { %v3005_v40 = vadd.f32 %v2927_v46, %v2508_v62  ;;  %v2509_v28 = vadd.f32 %v2433_v44, %v8691_v20  ;;  %v4976_v62 = vld [vmem:[#allocation2 + $0x60] sm:$0xf]  ;;  %v4248_v46 = vsel %vm8554_vm9, %v7256_v23, %v4247_v49  ;;  %v5149_v44 = vsel %vm8541_vm6, %v5144_v14, %v5148_v38 }
 0x2a8   : > { %v3277_v15 = vpop.f32.mrf.mxu3  ;;  %v5151_v57 = vshrl.u32 %v4976_v62, 16  ;;  %v5154_v10 = vshll.u32 %v4976_v62, 16 }
 0x2a9   : > { %v3355_v29 = vadd.f32 %v3277_v15, %v3005_v40  ;;  %7272 = vmatmul.msk.bf16.gmra.mxu1 %vm1654_vm2, %v4360_v55  ;;  %v4977_v55 = vld [vmem:[#allocation2 + $0x64] sm:$0xf]  ;;  %v5812_v40 = vrot.slane %v5693_v27, 5  ;;  %v4334_v15 = vunpack.c.l.b16 %v4248_v46  ;;  %v4978_v27 = vld [vmem:[#allocation2 + $0x68] sm:$0x1]  ;;  %v7458_v46 = vld [vmem:[#allocation2 + $0x54] sm:$0xff] }
 0x2aa   : > { %v5160_v49 = vshll.u32 %v4977_v55, 16  ;;  %v5164_v16 = vshrl.u32 %v4977_v55, 16  ;;  %v5153_v12 = vrot.slane %v5151_v57, 4  ;;  %v4132_v55 = vld [vmem:[#allocation2 + $0x54] sm:$0xe] }
 0x2ab   : > { %7353 = vmatmul.msk.bf16.gmra.mxu2 %vm1654_vm2, %v7457_v0  ;;  %v9177_v6 = vadd.f32 %v3995_v41, %v3355_v29  ;;  %v5139_v41 = vsel %vm8541_vm6, %v5134_v34, %v9158_v43  ;;  %v5403_v43 = vunpack.c.l.b16 %v5149_v44  ;;  %v5810_v29 = vsel %vm8554_vm9, %v7387_v22, %v5809_v45  ;;  %v4134_v45 = vld [vmem:[#allocation2 + $0x5c] sm:$0x1] }
 0x2ac   : > { %v3998_v48 = vpop.f32.mrf.mxu0  ;;  %v5402_v25 = vunpack.c.l.b16 %v5139_v41  ;;  %v5156_v34 = vrot.slane %v5154_v10, 5  ;;  %v9198_v14 = vrot.slane %v5160_v49, 5  ;;  %v4361_v32 = vpack.c.b16 %v4335_v19, %v4334_v15  ;;  %v5695_v41 = vld [vmem:[#allocation2 + $0x64] sm:$0xf]  ;;  %v5694_v10 = vld [vmem:[#allocation2 + $0x60] sm:$0xe] }
 0x2ad   : > { %7370 = vmatmul.msk.bf16.gmra.mxu3 %vm1654_vm2, %v5428_v8  ;;  %v5813_v8 = vsel %vm8554_vm9, %v5811_v24, %v5812_v40  ;;  %v5896_v42 = vunpack.c.l.b16 %v5810_v29  ;;  %v5170_v40 = vshll.u32 %v4978_v27, 16  ;;  %v4257_v57 = vrot.slane %v4134_v45, 5  ;;  %v4979_v15 = vld [vmem:[#allocation2 + $0x6c] sm:$0xf] }
 0x2ae   : > { %v2930_v47 = vpop.f32.mrf.mxu2  ;;  %v2435_v54 = vpop.f32.mrf.mxu1  ;;  %v5157_v44 = vor.u32 %v5156_v34, %v5153_v12  ;;  %v5816_v49 = vrot.slane %v5695_v41, 5  ;;  %v9926_v12 = vld [vmem:[#allocation44_spill] sm:$0xff]  ;;  %v5175_v45 = vshrl.u32 %v4979_v15, 16 }
 0x2af   : > { %7403 = vmatmul.msk.bf16.gmra.mxu0 %vm1654_vm2, %v5922_v2  ;;  %v3006_v20 = vadd.f32 %v2930_v47, %v2509_v28  ;;  %v5166_v2 = vrot.slane %v5164_v16, 4  ;;  %v2510_v38 = vadd.f32 %v2435_v54, %v8709_v58  ;;  %v7257_v58 = vrot.slane %v4132_v55, 9 }
 0x2b0   : > { %v3280_v0 = vpop.f32.mrf.mxu3  ;;  %v4256_v54 = vrot.slane %v4254_v50, 4  ;;  %v5158_v17 = vrot.slane %v5157_v44, 4  ;;  %v5172_v29 = vrot.slane %v5170_v40, 5 }
 0x2b1   : > { %v3356_v30 = vadd.f32 %v3280_v0, %v3006_v20  ;;  %v5429_v20 = vpack.c.b16 %v5403_v43, %v5402_v25  ;;  %v5167_v24 = vor.u32 %v5166_v2, %v9198_v14  ;;  %v4255_v2 = vsel %vm8554_vm9, %v7257_v58, %v4254_v50 }
 0x2b2   : > { %v5163_v50 = vsel %vm8541_vm6, %v5158_v17, %v9198_v14  ;;  %v4981_v17 = vld [vmem:[#allocation2 + $0x74] sm:$0x1] }
 0x2b3   : > { %v9196_v23 = vadd.f32 %v3998_v48, %v3356_v30  ;;  %v5897_v48 = vunpack.c.l.b16 %v5813_v8  ;;  %v5696_v30 = vld [vmem:[#allocation2 + $0x68] sm:$0x1]  ;;  %v5168_v43 = vrot.slane %v5167_v24, 4  ;;  %v4980_v8 = vld [vmem:[#allocation2 + $0x70] sm:$0xf] }
 0x2b4   : > { %v4000_v31 = vpop.f32.mrf.mxu0  ;;  %v5819_v55 = vrot.slane %v5696_v30, 5  ;;  %v5404_v30 = vunpack.c.l.b16 %v5163_v50 }
 0x2b5   : > { %v5923_v16 = vpack.c.b16 %v5897_v48, %v5896_v42  ;;  %v5184_v42 = vshll.u32 %v4980_v8, 16  ;;  %v5173_v44 = vsel %vm8541_vm6, %v5168_v43, %v5172_v29 }
 0x2b6   : > { %v2932_v28 = vpop.f32.mrf.mxu2  ;;  %v2438_v62 = vpop.f32.mrf.mxu1 }
 0x2b7   : > { %v3007_v47 = vadd.f32 %v2932_v28, %v2510_v38  ;;  %v2511_v34 = vadd.f32 %v2438_v62, %v9926_v12  ;;  %v4258_v38 = vsel %vm8554_vm9, %v4256_v54, %v4257_v57  ;;  %v5188_v62 = vshrl.u32 %v4980_v8, 16  ;;  %v4136_v54 = vld [vmem:[#allocation2 + $0x64] sm:$0xf]  ;;  %v9927_v8 = vld [vmem:[#allocation45_spill] sm:$0xff] }
 0x2b8   : > { %v3282_v22 = vpop.f32.mrf.mxu3  ;;  %v5186_v57 = vrot.slane %v5184_v42, 5  ;;  %v5698_v42 = vld [vmem:[#allocation2 + $0x70] sm:$0xf] }
 0x2b9   : > { %v3357_v0 = vadd.f32 %v3282_v22, %v3007_v47  ;;  %7273 = vmatmul.msk.bf16.gmra.mxu1 %vm1654_vm2, %v4361_v32  ;;  %v7388_v32 = vrot.slane %v5694_v10, 9  ;;  %v5178_v47 = vshll.u32 %v4979_v15, 16  ;;  %v4336_v22 = vunpack.c.l.b16 %v4255_v2 }
 0x2ba   : > { %v5190_v10 = vrot.slane %v5188_v62, 4  ;;  %v5405_v15 = vunpack.c.l.b16 %v5173_v44 }
 0x2bb   : > { %7354 = vmatmul.msk.bf16.gmra.mxu2 %vm1654_vm2, %v7458_v46  ;;  %v9204_v19 = vadd.f32 %v4000_v31, %v3357_v0  ;;  %v5818_v31 = vrot.slane %v5816_v49, 4  ;;  %v5817_v24 = vsel %vm8554_vm9, %v7388_v32, %v5816_v49  ;;  %v5177_v0 = vrot.slane %v5175_v45, 4  ;;  %v4137_v45 = vld [vmem:[#allocation2 + $0x68] sm:$0x1] }
 0x2bc   : > { %v4003_v25 = vpop.f32.mrf.mxu0  ;;  %v5180_v58 = vrot.slane %v5178_v47, 5  ;;  %v5898_v29 = vunpack.c.l.b16 %v5817_v24  ;;  %v5191_v47 = vor.u32 %v5190_v10, %v5186_v57  ;;  %v5699_v10 = vld [vmem:[#allocation2 + $0x74] sm:$0x1] }
 0x2bd   : > { %7371 = vmatmul.msk.bf16.gmra.mxu3 %vm1654_vm2, %v5429_v20  ;;  %v4337_v20 = vunpack.c.l.b16 %v4258_v38  ;;  %v5820_v40 = vsel %vm8554_vm9, %v5818_v31, %v5819_v55  ;;  %v4261_v38 = vrot.slane %v4136_v54, 5  ;;  %v7459_v31 = vld [vmem:[#allocation2 + $0x60] sm:$0xff] }
 0x2be   : > { %v2935_v27 = vpop.f32.mrf.mxu2  ;;  %v2440_v28 = vpop.f32.mrf.mxu1  ;;  %v5181_v32 = vor.u32 %v5180_v58, %v5177_v0  ;;  %v4135_v55 = vld [vmem:[#allocation2 + $0x60] sm:$0xe]  ;;  %v5192_v44 = vrot.slane %v5191_v47, 4  ;;  %v5823_v0 = vrot.slane %v5698_v42, 5 }
 0x2bf   : > { %7404 = vmatmul.msk.bf16.gmra.mxu0 %vm1654_vm2, %v5923_v16  ;;  %v3008_v46 = vadd.f32 %v2935_v27, %v2511_v34  ;;  %v2512_v12 = vadd.f32 %v2440_v28, %v9927_v8  ;;  %v4362_v43 = vpack.c.b16 %v4337_v20, %v4336_v22  ;;  %v5899_v34 = vunpack.c.l.b16 %v5820_v40  ;;  %v5697_v40 = vld [vmem:[#allocation2 + $0x6c] sm:$0xe] }
 0x2c0   : > { %v3285_v48 = vpop.f32.mrf.mxu3  ;;  %v7258_v50 = vrot.slane %v4135_v55, 9  ;;  %v4264_v22 = vrot.slane %v4137_v45, 5  ;;  %v5182_v20 = vrot.slane %v5181_v32, 4 }
 0x2c1   : > { %v3358_v41 = vadd.f32 %v3285_v48, %v3008_v46  ;;  %v5430_v48 = vpack.c.b16 %v5405_v15, %v5404_v30  ;;  %v5924_v28 = vpack.c.b16 %v5899_v34, %v5898_v29  ;;  %v4982_v30 = vld [vmem:[#allocation2 + $0x90] sm:$0xf]  ;;  %v4983_v15 = vld [vmem:[#allocation2 + $0x94] sm:$0xf] }
 0x2c2   : > { %v4262_v29 = vsel %vm8554_vm9, %v7258_v50, %v4261_v38  ;;  %v5199_v45 = vshrl.u32 %v4982_v30, 16  ;;  %v5202_v47 = vshll.u32 %v4982_v30, 16  ;;  %v4139_v50 = vld [vmem:[#allocation2 + $0x88] sm:$0xf] }
 0x2c3   : > { %v9222_v16 = vadd.f32 %v4003_v25, %v3358_v41  ;;  %v5194_v25 = vshll.u32 %v4981_v17, 16  ;;  %v4263_v41 = vrot.slane %v4261_v38, 4  ;;  %v9928_v17 = vld [vmem:[#allocation46_spill] sm:$0xff]  ;;  %v5212_v38 = vshrl.u32 %v4983_v15, 16 }
 0x2c4   : > { %v4005_v14 = vpop.f32.mrf.mxu0  ;;  %v4338_v42 = vunpack.c.l.b16 %v4262_v29 }
 0x2c5   : > { %v5196_v24 = vrot.slane %v5194_v25, 5  ;;  %v4265_v34 = vsel %vm8554_vm9, %v4263_v41, %v4264_v22  ;;  %v5208_v25 = vshll.u32 %v4983_v15, 16  ;;  %v4268_v15 = vrot.slane %v4139_v50, 5 }
 0x2c6   : > { %v2937_v49 = vpop.f32.mrf.mxu2  ;;  %v2443_v2 = vpop.f32.mrf.mxu1 }
 0x2c7   : > { %v3009_v27 = vadd.f32 %v2937_v49, %v2512_v12  ;;  %v2513_v8 = vadd.f32 %v2443_v2, %v9928_v17  ;;  %v7389_v49 = vrot.slane %v5697_v40, 9  ;;  %v5197_v2 = vsel %vm8541_vm6, %v5192_v44, %v5196_v24  ;;  %v9929_v17 = vld [vmem:[#allocation47_spill] sm:$0xff] }
 0x2c8   : > { %v3287_v46 = vpop.f32.mrf.mxu3  ;;  %v5201_v44 = vrot.slane %v5199_v45, 4  ;;  %v5204_v24 = vrot.slane %v5202_v47, 5  ;;  %v9246_v40 = vrot.slane %v5208_v25, 5 }
 0x2c9   : > { %v3359_v62 = vadd.f32 %v3287_v46, %v3009_v27  ;;  %7274 = vmatmul.msk.bf16.gmra.mxu1 %vm1654_vm2, %v4362_v43  ;;  %v5825_v27 = vrot.slane %v5823_v0, 4 }
 0x2ca   : > { %v5205_v45 = vor.u32 %v5204_v24, %v5201_v44 }
 0x2cb   : > { %7355 = vmatmul.msk.bf16.gmra.mxu2 %vm1654_vm2, %v7459_v31  ;;  %v9227_v58 = vadd.f32 %v4005_v14, %v3359_v62  ;;  %v5187_v14 = vsel %vm8541_vm6, %v5182_v20, %v5186_v57  ;;  %v5826_v31 = vrot.slane %v5699_v10, 5  ;;  %v4339_v62 = vunpack.c.l.b16 %v4265_v34 }
 0x2cc   : > { %v4008_v54 = vpop.f32.mrf.mxu0  ;;  %v5407_v57 = vunpack.c.l.b16 %v5197_v2  ;;  %v5214_v10 = vrot.slane %v5212_v38, 4 }
 0x2cd   : > { %7372 = vmatmul.msk.bf16.gmra.mxu3 %vm1654_vm2, %v5430_v48  ;;  %v5406_v48 = vunpack.c.l.b16 %v5187_v14  ;;  %v5827_v41 = vsel %vm8554_vm9, %v5825_v27, %v5826_v31  ;;  %v4363_v30 = vpack.c.b16 %v4339_v62, %v4338_v42  ;;  %v4138_v14 = vld [vmem:[#allocation2 + $0x84] sm:$0xe]  ;;  %v5701_v27 = vld [vmem:[#allocation2 + $0x94] sm:$0xf]  ;;  %v5700_v62 = vld [vmem:[#allocation2 + $0x90] sm:$0xe] }
 0x2ce   : > { %v2940_v12 = vpop.f32.mrf.mxu2  ;;  %v2445_v43 = vpop.f32.mrf.mxu1  ;;  %v5215_v47 = vor.u32 %v5214_v10, %v9246_v40  ;;  %v5830_v50 = vrot.slane %v5701_v27, 5  ;;  %v4986_v10 = vld [vmem:[#allocation2 + $0xa0] sm:$0xf] }
 0x2cf   : > { %7405 = vmatmul.msk.bf16.gmra.mxu0 %vm1654_vm2, %v5924_v28  ;;  %v3010_v32 = vadd.f32 %v2940_v12, %v2513_v8  ;;  %v5824_v28 = vsel %vm8554_vm9, %v7389_v49, %v5823_v0  ;;  %v2514_v8 = vadd.f32 %v2445_v43, %v9929_v17  ;;  %v4984_v12 = vld [vmem:[#allocation2 + $0x98] sm:$0x1]  ;;  %v4140_v0 = vld [vmem:[#allocation2 + $0x8c] sm:$0x1]  ;;  %v7259_v43 = vrot.slane %v4138_v14, 9 }
 0x2d0   : > { %v3290_v55 = vpop.f32.mrf.mxu3  ;;  %v5900_v2 = vunpack.c.l.b16 %v5824_v28  ;;  %v5218_v25 = vshll.u32 %v4984_v12, 16  ;;  %v4271_v42 = vrot.slane %v4140_v0, 5  ;;  %v5702_v28 = vld [vmem:[#allocation2 + $0x98] sm:$0x1]  ;;  %v5216_v44 = vrot.slane %v5215_v47, 4  ;;  %v9931_v12 = vld [vmem:[#allocation48_spill] sm:$0xff] }
 0x2d1   : > { %v3360_v46 = vadd.f32 %v3290_v55, %v3010_v32  ;;  %v7460_v32 = vld [vmem:[#allocation2 + $0x6c] sm:$0xff]  ;;  %v5431_v55 = vpack.c.b16 %v5407_v57, %v5406_v48  ;;  %v5206_v57 = vrot.slane %v5205_v45, 4  ;;  %v7390_v0 = vrot.slane %v5700_v62, 9 }
 0x2d2   : > { %v5220_v24 = vrot.slane %v5218_v25, 5  ;;  %v5232_v45 = vshll.u32 %v4986_v10, 16 }
 0x2d3   : > { %v9244_v22 = vadd.f32 %v4008_v54, %v3360_v46  ;;  %v5901_v54 = vunpack.c.l.b16 %v5827_v41  ;;  %v4270_v46 = vrot.slane %v4268_v15, 4  ;;  %v4985_v41 = vld [vmem:[#allocation2 + $0x9c] sm:$0xf] }
 0x2d4   : > { %v4010_v20 = vpop.f32.mrf.mxu0  ;;  %v5226_v27 = vshll.u32 %v4985_v41, 16 }
 0x2d5   : > { %v5925_v17 = vpack.c.b16 %v5901_v54, %v5900_v2  ;;  %v4272_v14 = vsel %vm8554_vm9, %v4270_v46, %v4271_v42  ;;  %v5833_v2 = vrot.slane %v5702_v28, 5  ;;  %v5223_v54 = vshrl.u32 %v4985_v41, 16  ;;  %v4142_v28 = vld [vmem:[#allocation2 + $0x94] sm:$0xf] }
 0x2d6   : > { %v2942_v29 = vpop.f32.mrf.mxu2  ;;  %v2448_v34 = vpop.f32.mrf.mxu1  ;;  %v5831_v46 = vsel %vm8554_vm9, %v7390_v0, %v5830_v50  ;;  %v9270_v41 = vrot.slane %v5232_v45, 5  ;;  %v4141_v45 = vld [vmem:[#allocation2 + $0x90] sm:$0xe] }
 0x2d7   : > { %v3011_v49 = vadd.f32 %v2942_v29, %v2514_v8  ;;  %v2515_v29 = vadd.f32 %v2448_v34, %v9931_v12  ;;  %v5236_v34 = vshrl.u32 %v4986_v10, 16  ;;  %v5225_v62 = vrot.slane %v5223_v54, 4 }
 0x2d8   : > { %v3292_v31 = vpop.f32.mrf.mxu3 }
 0x2d9   : > { %v3361_v38 = vadd.f32 %v3292_v31, %v3011_v49  ;;  %7275 = vmatmul.msk.bf16.gmra.mxu1 %vm1654_vm2, %v4363_v30  ;;  %v4269_v30 = vsel %vm8554_vm9, %v7259_v43, %v4268_v15  ;;  %v5211_v15 = vsel %vm8541_vm6, %v5206_v57, %v9246_v40  ;;  %v5221_v43 = vsel %vm8541_vm6, %v5216_v44, %v5220_v24 }
 0x2da   : > { %v4340_v25 = vunpack.c.l.b16 %v4269_v30  ;;  %v5238_v10 = vrot.slane %v5236_v34, 4  ;;  %v5408_v57 = vunpack.c.l.b16 %v5211_v15  ;;  %v4987_v30 = vld [vmem:[#allocation2 + $0xa4] sm:$0x1]  ;;  %v5704_v15 = vld [vmem:[#allocation2 + $0xa0] sm:$0xf] }
 0x2db   : > { %7356 = vmatmul.msk.bf16.gmra.mxu2 %vm1654_vm2, %v7460_v32  ;;  %v9252_v8 = vadd.f32 %v4010_v20, %v3361_v38  ;;  %v5832_v20 = vrot.slane %v5830_v50, 4  ;;  %v4341_v38 = vunpack.c.l.b16 %v4272_v14  ;;  %v9933_v14 = vld [vmem:[#allocation49_spill] sm:$0xff]  ;;  %v5242_v34 = vshll.u32 %v4987_v30, 16  ;;  %v5705_v30 = vld [vmem:[#allocation2 + $0xa4] sm:$0x1] }
 0x2dc   : > { %v4013_v48 = vpop.f32.mrf.mxu0 }
 0x2dd   : > { %9930 = vst [vmem:[#allocation44_spill] sm:$0xff] %v9252_v8  ;;  %7373 = vmatmul.msk.bf16.gmra.mxu3 %vm1654_vm2, %v5431_v55  ;;  %v5834_v42 = vsel %vm8554_vm9, %v5832_v20, %v5833_v2  ;;  %v4364_v24 = vpack.c.b16 %v4341_v38, %v4340_v25  ;;  %v4275_v20 = vrot.slane %v4142_v28, 5  ;;  %v7260_v38 = vrot.slane %v4141_v45, 9  ;;  %v5703_v28 = vld [vmem:[#allocation2 + $0x9c] sm:$0xe] }
 0x2de   : > { %v2945_v49 = vpop.f32.mrf.mxu2  ;;  %v2450_v32 = vpop.f32.mrf.mxu1  ;;  %v5903_v50 = vunpack.c.l.b16 %v5834_v42 }
 0x2df   : > { %7406 = vmatmul.msk.bf16.gmra.mxu0 %vm1654_vm2, %v5925_v17  ;;  %v3012_v31 = vadd.f32 %v2945_v49, %v2515_v29  ;;  %v5228_v17 = vrot.slane %v5226_v27, 5  ;;  %v5409_v29 = vunpack.c.l.b16 %v5221_v43  ;;  %v2516_v44 = vadd.f32 %v2450_v32, %v9933_v14  ;;  %v7461_v27 = vld [vmem:[#allocation2 + $0x90] sm:$0xff] }
 0x2e0   : > { %v3295_v47 = vpop.f32.mrf.mxu3  ;;  %v5902_v49 = vunpack.c.l.b16 %v5831_v46  ;;  %v4277_v46 = vrot.slane %v4275_v20, 4 }
 0x2e1   : > { %v3362_v55 = vadd.f32 %v3295_v47, %v3012_v31  ;;  %v5229_v2 = vor.u32 %v5228_v17, %v5225_v62  ;;  %v4143_v47 = vld [vmem:[#allocation2 + $0x98] sm:$0x1]  ;;  %v5432_v32 = vpack.c.b16 %v5409_v29, %v5408_v57  ;;  %v5244_v17 = vrot.slane %v5242_v34, 5  ;;  %v4988_v57 = vld [vmem:[#allocation2 + $0xa8] sm:$0xf] }
 0x2e2   : > { %v5926_v25 = vpack.c.b16 %v5903_v50, %v5902_v49  ;;  %v4278_v42 = vrot.slane %v4143_v47, 5  ;;  %v4989_v29 = vld [vmem:[#allocation2 + $0xac] sm:$0xf]  ;;  %v4276_v50 = vsel %vm8554_vm9, %v7260_v38, %v4275_v20  ;;  %v5840_v47 = vrot.slane %v5705_v30, 5 }
 0x2e3   : > { %v9272_v12 = vadd.f32 %v4013_v48, %v3362_v55  ;;  %v5239_v48 = vor.u32 %v5238_v10, %v9270_v41  ;;  %v5230_v14 = vrot.slane %v5229_v2, 4  ;;  %v5247_v34 = vshrl.u32 %v4988_v57, 16 }
 0x2e4   : > { %v4015_v40 = vpop.f32.mrf.mxu0  ;;  %v4279_v2 = vsel %vm8554_vm9, %v4277_v46, %v4278_v42  ;;  %v5256_v20 = vshll.u32 %v4989_v29, 16  ;;  %v4145_v42 = vld [vmem:[#allocation2 + $0xa0] sm:$0xf] }
 0x2e5   : > { %9932 = vst [vmem:[#allocation45_spill] sm:$0xff] %v9272_v12  ;;  %v5240_v62 = vrot.slane %v5239_v48, 4  ;;  %v4343_v38 = vunpack.c.l.b16 %v4279_v2 }
 0x2e6   : > { %v2947_v0 = vpop.f32.mrf.mxu2  ;;  %v4432_v31 = vpop.f32.mrf.mxu1 }
 0x2e7   : > { %v3013_v54 = vadd.f32 %v2947_v0, %v2516_v44  ;;  %v5837_v44 = vrot.slane %v5704_v15, 5  ;;  %v5260_v15 = vshrl.u32 %v4989_v29, 16  ;;  %v9306_v29 = vrot.slane %v5256_v20, 5 }
 0x2e8   : > { %v3297_v55 = vpop.f32.mrf.mxu3 }
 0x2e9   : > { %v3363_v43 = vadd.f32 %v3297_v55, %v3013_v54  ;;  %7276 = vmatmul.msk.bf16.gmra.mxu1 %vm1654_vm2, %v4364_v24  ;;  %v4544_v54 = vadd.f32 %v4432_v31, %v8856_v61  ;;  %v5245_v31 = vsel %vm8541_vm6, %v5240_v62, %v5244_v17  ;;  %v5839_v45 = vrot.slane %v5837_v44, 4  ;;  %v9300_v62 = vld [vmem:[%s9937_s1] ss:$0 sm:$0xff] }
 0x2ea   : > { %v5250_v55 = vshll.u32 %v4988_v57, 16  ;;  %v5411_v46 = vunpack.c.l.b16 %v5245_v31  ;;  %v4990_v31 = vld [vmem:[#allocation2 + $0xb0] sm:$0x1] }
 0x2eb   : > { %7357 = vmatmul.msk.bf16.gmra.mxu2 %vm1654_vm2, %v7461_v27  ;;  %v9278_v0 = vadd.f32 %v4015_v40, %v3363_v43  ;;  %v5235_v40 = vsel %vm8541_vm6, %v5230_v14, %v9270_v41  ;;  %v7391_v27 = vrot.slane %v5703_v28, 9  ;;  %v4342_v41 = vunpack.c.l.b16 %v4276_v50 }
 0x2ec   : > { %v5994_v10 = vpop.f32.mrf.mxu0  ;;  %v5841_v28 = vsel %vm8554_vm9, %v5839_v45, %v5840_v47  ;;  %v5252_v57 = vrot.slane %v5250_v55, 5 }
 0x2ed   : > { %9934 = vst [vmem:[#allocation46_spill] sm:$0xff] %v9278_v0  ;;  %7374 = vmatmul.msk.bf16.gmra.mxu3 %vm1654_vm2, %v5432_v32  ;;  %v9295_v32 = vld [vmem:[%s9935_s16] ss:$0 sm:$0xff]  ;;  %v5838_v17 = vsel %vm8554_vm9, %v7391_v27, %v5837_v44  ;;  %v4365_v2 = vpack.c.b16 %v4343_v38, %v4342_v41  ;;  %v4146_v27 = vld [vmem:[#allocation2 + $0xa4] sm:$0x1]  ;;  %v5905_v20 = vunpack.c.l.b16 %v5841_v28  ;;  %s9631_s16 = scalar_lea.vmem (%p8319_p11), %s9944_s17, %s7470_s3 }
 0x2ee   : > { %v4782_v24 = vpop.f32.mrf.mxu2  ;;  %v4434_v49 = vpop.f32.mrf.mxu1  ;;  %v5904_v55 = vunpack.c.l.b16 %v5838_v17  ;;  %v5708_v28 = vld [vmem:[#allocation2 + $0xb0] sm:$0x1] }
 0x2ef   : > { %7407 = vmatmul.msk.bf16.gmra.mxu0 %vm1654_vm2, %v5926_v25  ;;  %v4894_v61 = vadd.f32 %v4782_v24, %v4544_v54  ;;  %v5410_v25 = vunpack.c.l.b16 %v5235_v40  ;;  %v5249_v54 = vrot.slane %v5247_v34, 4  ;;  %v5262_v24 = vrot.slane %v5260_v15, 4  ;;  %v4144_v40 = vld [vmem:[#allocation2 + $0x9c] sm:$0xe]  ;;  %v5707_v15 = vld [vmem:[#allocation2 + $0xac] sm:$0xf] }
 0x2f0   : > { %v5500_v48 = vpop.f32.mrf.mxu3  ;;  %v7462_v34 = vld [vmem:[#allocation2 + $0x9c] sm:$0xff]  ;;  %v5927_v17 = vpack.c.b16 %v5905_v20, %v5904_v55 }
 0x2f1   : > { %v5612_v43 = vadd.f32 %v5500_v48, %v4894_v61  ;;  %v4282_v61 = vrot.slane %v4145_v42, 5  ;;  %v5433_v44 = vpack.c.b16 %v5411_v46, %v5410_v25  ;;  %v5253_v12 = vor.u32 %v5252_v57, %v5249_v54  ;;  %v5706_v42 = vld [vmem:[#allocation2 + $0xa8] sm:$0xe]  ;;  %v4991_v54 = vld [vmem:[#allocation2 + $0xb4] sm:$0xf] }
 0x2f2   : > { %v4285_v46 = vrot.slane %v4146_v27, 5 }
 0x2f3   : > { %v6106_v14 = vadd.f32 %v5994_v10, %v5612_v43  ;;  %v4545_v10 = vadd.f32 %v4434_v49, %v8866_v9  ;;  %v5263_v9 = vor.u32 %v5262_v24, %v9306_v29  ;;  %v5266_v49 = vshll.u32 %v4990_v31, 16 }
 0x2f4   : > { %v5996_v30 = vpop.f32.mrf.mxu0  ;;  %v4284_v25 = vrot.slane %v4282_v61, 4 }
 0x2f5   : > { %v6205_v50 = vmul.f32 %v9295_v32, %v6106_v14  ;;  %v7261_v14 = vrot.slane %v4144_v40, 9  ;;  %v5254_v40 = vrot.slane %v5253_v12, 4  ;;  %v5268_v31 = vrot.slane %v5266_v49, 5 }
 0x2f6   : > { %v4784_v48 = vpop.f32.mrf.mxu2  ;;  %v4437_v43 = vpop.f32.mrf.mxu1  ;;  %v5274_v12 = vshll.u32 %v4991_v54, 16 }
 0x2f7   : > { %v9311_v45 = vadd.f32 %v9300_v62, %v6205_v50  ;;  %v4895_v47 = vadd.f32 %v4784_v48, %v4545_v10  ;;  %v5844_v50 = vrot.slane %v5707_v15, 5  ;;  %v4283_v24 = vsel %vm8554_vm9, %v7261_v14, %v4282_v61 }
 0x2f8   : > { %v5502_v0 = vpop.f32.mrf.mxu3  ;;  %v4546_v27 = vadd.f32 %v4437_v43, %v8886_v37  ;;  %v5847_v15 = vrot.slane %v5708_v28, 5  ;;  %v5271_v61 = vshrl.u32 %v4991_v54, 16  ;;  %v4344_v49 = vunpack.c.l.b16 %v4283_v24  ;;  %v4148_v28 = vld [vmem:[#allocation2 + $0xac] sm:$0xf] }
 0x2f9   : > { %v6272_v41 = vmul.f32 0.5, %v9311_v45  ;;  %v5613_v38 = vadd.f32 %v5502_v0, %v4895_v47  ;;  %7277 = vmatmul.msk.bf16.gmra.mxu1 %vm1654_vm2, %v4365_v2  ;;  %v5264_v0 = vrot.slane %v5263_v9, 4  ;;  %v4992_v2 = vld [vmem:[#allocation2 + $0xb8] sm:$0xf]  ;;  %v7392_v47 = vrot.slane %v5706_v42, 9 }
 0x2fa   : > { %v5846_v20 = vrot.slane %v5844_v50, 4  ;;  %v5280_v37 = vshll.u32 %v4992_v2, 16  ;;  %v5284_v43 = vshrl.u32 %v4992_v2, 16  ;;  %v5273_v2 = vrot.slane %v5271_v61, 4 }
 0x2fb   : > { %7697 = vtanh.f32 %v6272_v41  ;;  %v6107_v10 = vadd.f32 %v5996_v30, %v5613_v38  ;;  %7358 = vmatmul.msk.bf16.gmra.mxu2 %vm1654_vm2, %v7462_v34  ;;  %v4286_v30 = vsel %vm8554_vm9, %v4284_v25, %v4285_v46  ;;  %v5259_v38 = vsel %vm8541_vm6, %v5254_v40, %v9306_v29 }
 0x2fc   : > { %v5999_v57 = vpop.f32.mrf.mxu0  ;;  %v4345_v41 = vunpack.c.l.b16 %v4286_v30  ;;  %v5848_v24 = vsel %vm8554_vm9, %v5846_v20, %v5847_v15  ;;  %v9341_v40 = vrot.slane %v5280_v37, 5  ;;  %v4149_v20 = vld [vmem:[#allocation2 + $0xb0] sm:$0x1]  ;;  %v4993_v15 = vld [vmem:[#allocation2 + $0xbc] sm:$0x1] }
 0x2fd   : > { %v6206_v48 = vmul.f32 %v9295_v32, %v6107_v10  ;;  %7375 = vmatmul.msk.bf16.gmra.mxu3 %vm1654_vm2, %v5433_v44  ;;  %v5269_v10 = vsel %vm8541_vm6, %v5264_v0, %v5268_v31 }
 0x2fe   : > { %v4787_v34 = vpop.f32.mrf.mxu2  ;;  %v4439_v55 = vpop.f32.mrf.mxu1  ;;  %v4366_v31 = vpack.c.b16 %v4345_v41, %v4344_v49 }
 0x2ff   : > { %v9326_v14 = vadd.f32 %v9300_v62, %v6206_v48  ;;  %7408 = vmatmul.msk.bf16.gmra.mxu0 %vm1654_vm2, %v5927_v17  ;;  %v4896_v9 = vadd.f32 %v4787_v34, %v4546_v27  ;;  %v5845_v17 = vsel %vm8554_vm9, %v7392_v47, %v5844_v50  ;;  %v5276_v48 = vrot.slane %v5274_v12, 5 }
 0x300   : > { %v5505_v44 = vpop.f32.mrf.mxu3  ;;  %v5286_v27 = vrot.slane %v5284_v43, 4  ;;  %v4547_v50 = vadd.f32 %v4439_v55, %v8895_v52  ;;  %v5413_v47 = vunpack.c.l.b16 %v5269_v10  ;;  %v5906_v37 = vunpack.c.l.b16 %v5845_v17 }
 0x301   : > { %v7698_v25 = vpop.eup %7697  ;;  %v6273_v46 = vmul.f32 0.5, %v9326_v14  ;;  %v5614_v42 = vadd.f32 %v5505_v44, %v4896_v9  ;;  %v5412_v9 = vunpack.c.l.b16 %v5259_v38  ;;  %v4289_v44 = vrot.slane %v4148_v28, 5  ;;  %v7463_v28 = vld [vmem:[#allocation2 + $0xa8] sm:$0xff] }
 0x302   : > { %v6336_v54 = vadd.f32 1.0, %v7698_v25  ;;  %v4147_v25 = vld [vmem:[#allocation2 + $0xa8] sm:$0xe]  ;;  %v5907_v43 = vunpack.c.l.b16 %v5848_v24  ;;  %v5287_v52 = vor.u32 %v5286_v27, %v9341_v40  ;;  %v5290_v10 = vshll.u32 %v4993_v15, 16  ;;  %v4995_v15 = vld [vmem:[#allocation2 + $0xc4] sm:$0xf] }
 0x303   : > { %7699 = vtanh.f32 %v6273_v46  ;;  %v6108_v29 = vadd.f32 %v5999_v57, %v5614_v42  ;;  %v5277_v46 = vor.u32 %v5276_v48, %v5273_v2  ;;  %v7262_v49 = vrot.slane %v4147_v25, 9 }
 0x304   : > { %v6368_v30 = vmul.f32 0.5, %v6336_v54  ;;  %v6001_v34 = vpop.f32.mrf.mxu0  ;;  %v4291_v41 = vrot.slane %v4289_v44, 4  ;;  %v5710_v54 = vld [vmem:[#allocation2 + $0xb8] sm:$0xf]  ;;  %v5434_v48 = vpack.c.b16 %v5413_v47, %v5412_v9  ;;  %v5288_v25 = vrot.slane %v5287_v52, 4 }
 0x305   : > { %v6207_v0 = vmul.f32 %v9295_v32, %v6108_v29  ;;  %v5278_v27 = vrot.slane %v5277_v46, 4  ;;  %v5711_v47 = vld [vmem:[#allocation2 + $0xbc] sm:$0x1] }
 0x306   : > { %v6400_v61 = vmul.f32 %v6368_v30, %v9311_v45  ;;  %v4789_v57 = vpop.f32.mrf.mxu2  ;;  %v4442_v12 = vpop.f32.mrf.mxu1  ;;  %v4292_v45 = vrot.slane %v4149_v20, 5  ;;  %v5928_v30 = vpack.c.b16 %v5907_v43, %v5906_v37  ;;  %v5851_v20 = vrot.slane %v5710_v54, 5 }
 0x307   : > { %v9347_v38 = vadd.f32 %v9300_v62, %v6207_v0  ;;  %v4897_v42 = vadd.f32 %v4789_v57, %v4547_v50  ;;  %v5709_v0 = vld [vmem:[#allocation2 + $0xb4] sm:$0xe]  ;;  %v4994_v50 = vld [vmem:[#allocation2 + $0xc0] sm:$0xf] }
 0x308   : > { %6432 = vst [vmem:[%s9351_s22] sm:$0xff] %v6400_v61  ;;  %v5507_v55 = vpop.f32.mrf.mxu3  ;;  %v4293_v9 = vsel %vm8554_vm9, %v4291_v41, %v4292_v45  ;;  %v7393_v43 = vrot.slane %v5709_v0, 9  ;;  %v5295_v46 = vshrl.u32 %v4994_v50, 16  ;;  %v5298_v54 = vshll.u32 %v4994_v50, 16 }
 0x309   : > { %v7700_v17 = vpop.eup %7699  ;;  %v6274_v24 = vmul.f32 0.5, %v9347_v38  ;;  %v5615_v2 = vadd.f32 %v5507_v55, %v4897_v42  ;;  %7278 = vmatmul.msk.bf16.gmra.mxu1 %vm1654_vm2, %v4366_v31  ;;  %v4290_v42 = vsel %vm8554_vm9, %v7262_v49, %v4289_v44  ;;  %v5292_v31 = vrot.slane %v5290_v10, 5 }
 0x30a   : > { %v6337_v29 = vadd.f32 1.0, %v7700_v17  ;;  %v5304_v44 = vshll.u32 %v4995_v15, 16  ;;  %v5308_v49 = vshrl.u32 %v4995_v15, 16  ;;  %v5853_v10 = vrot.slane %v5851_v20, 4 }
 0x30b   : > { %7701 = vtanh.f32 %v6274_v24  ;;  %v6109_v61 = vadd.f32 %v6001_v34, %v5615_v2  ;;  %7359 = vmatmul.msk.bf16.gmra.mxu2 %vm1654_vm2, %v7463_v28  ;;  %v4548_v34 = vadd.f32 %v4442_v12, %v8919_v60  ;;  %v5854_v17 = vrot.slane %v5711_v47, 5 }
 0x30c   : > { %v6369_v57 = vmul.f32 0.5, %v6337_v29  ;;  %v6004_v8 = vpop.f32.mrf.mxu0  ;;  %v4346_v12 = vunpack.c.l.b16 %v4290_v42  ;;  %v4347_v24 = vunpack.c.l.b16 %v4293_v9  ;;  %v5293_v2 = vsel %vm8541_vm6, %v5288_v25, %v5292_v31 }
 0x30d   : > { %v6208_v37 = vmul.f32 %v9295_v32, %v6109_v61  ;;  %7376 = vmatmul.msk.bf16.gmra.mxu3 %vm1654_vm2, %v5434_v48  ;;  %v4151_v48 = vld [vmem:[#allocation2 + $0xb8] sm:$0xf]  ;;  %v5297_v61 = vrot.slane %v5295_v46, 4  ;;  %v5300_v42 = vrot.slane %v5298_v54, 5  ;;  %v9378_v9 = vrot.slane %v5304_v44, 5 }
 0x30e   : > { %v6401_v28 = vmul.f32 %v6369_v57, %v9326_v14  ;;  %v4792_v52 = vpop.f32.mrf.mxu2  ;;  %v4444_v55 = vpop.f32.mrf.mxu1  ;;  %v5283_v14 = vsel %vm8541_vm6, %v5278_v27, %v9341_v40  ;;  %v4150_v57 = vld [vmem:[#allocation2 + $0xb4] sm:$0xe]  ;;  %v5310_v47 = vrot.slane %v5308_v49, 4  ;;  %v5855_v27 = vsel %vm8554_vm9, %v5853_v10, %v5854_v17  ;;  %v4996_v44 = vld [vmem:[#allocation2 + $0xc8] sm:$0x1] }
 0x30f   : > { %v9366_v41 = vadd.f32 %v9300_v62, %v6208_v37  ;;  %7409 = vmatmul.msk.bf16.gmra.mxu0 %vm1654_vm2, %v5928_v30  ;;  %v4898_v45 = vadd.f32 %v4792_v52, %v4548_v34  ;;  %v5852_v30 = vsel %vm8554_vm9, %v7393_v43, %v5851_v20  ;;  %v4296_v25 = vrot.slane %v4151_v48, 5 }
 0x310   : > { %6433 = vst [vmem:[%s9351_s22 + $0x8] sm:$0xff] %v6401_v28  ;;  %v5510_v60 = vpop.f32.mrf.mxu3  ;;  %v4367_v34 = vpack.c.b16 %v4347_v24, %v4346_v12  ;;  %v5414_v28 = vunpack.c.l.b16 %v5283_v14  ;;  %v5415_v52 = vunpack.c.l.b16 %v5293_v2  ;;  %v4549_v43 = vadd.f32 %v4444_v55, %v8933_v4  ;;  %v7464_v14 = vld [vmem:[#allocation2 + $0xb4] sm:$0xff]  ;;  %v5713_v4 = vld [vmem:[#allocation2 + $0xc4] sm:$0xf] }
 0x311   : > { %v7702_v29 = vpop.eup %7701  ;;  %v6275_v0 = vmul.f32 0.5, %v9366_v41  ;;  %v5616_v50 = vadd.f32 %v5510_v60, %v4898_v45  ;;  %v4152_v45 = vld [vmem:[#allocation2 + $0xbc] sm:$0x1]  ;;  %v5908_v46 = vunpack.c.l.b16 %v5852_v30  ;;  %v7263_v54 = vrot.slane %v4150_v57, 9  ;;  %v5712_v57 = vld [vmem:[#allocation2 + $0xc0] sm:$0xe] }
 0x312   : > { %v6338_v15 = vadd.f32 1.0, %v7702_v29  ;;  %v5909_v10 = vunpack.c.l.b16 %v5855_v27  ;;  %v5301_v17 = vor.u32 %v5300_v42, %v5297_v61  ;;  %v5311_v48 = vor.u32 %v5310_v47, %v9378_v9 }
 0x313   : > { %7703 = vtanh.f32 %v6275_v0  ;;  %v6110_v40 = vadd.f32 %v6004_v8, %v5616_v50  ;;  %v4298_v2 = vrot.slane %v4296_v25, 4  ;;  %v4299_v29 = vrot.slane %v4152_v45, 5 }
 0x314   : > { %v6370_v31 = vmul.f32 0.5, %v6338_v15  ;;  %v6006_v37 = vpop.f32.mrf.mxu0  ;;  %v5314_v0 = vshll.u32 %v4996_v44, 16  ;;  %v5435_v61 = vpack.c.b16 %v5415_v52, %v5414_v28  ;;  %v4297_v15 = vsel %vm8554_vm9, %v7263_v54, %v4296_v25  ;;  %v5714_v44 = vld [vmem:[#allocation2 + $0xc8] sm:$0x1]  ;;  %v4998_v54 = vld [vmem:[#allocation2 + $0xd0] sm:$0xf] }
 0x315   : > { %v6209_v20 = vmul.f32 %v9295_v32, %v6110_v40  ;;  %v5929_v47 = vpack.c.b16 %v5909_v10, %v5908_v46  ;;  %v5302_v40 = vrot.slane %v5301_v17, 4  ;;  %v5858_v27 = vrot.slane %v5713_v4, 5 }
 0x316   : > { %v6402_v8 = vmul.f32 %v6370_v31, %v9347_v38  ;;  %v4794_v49 = vpop.f32.mrf.mxu2  ;;  %v4447_v60 = vpop.f32.mrf.mxu1  ;;  %v4997_v31 = vld [vmem:[#allocation2 + $0xcc] sm:$0xf]  ;;  %v4348_v52 = vunpack.c.l.b16 %v4297_v15  ;;  %v7394_v25 = vrot.slane %v5712_v57, 9 }
 0x317   : > { %v9387_v12 = vadd.f32 %v9300_v62, %v6209_v20  ;;  %v4899_v24 = vadd.f32 %v4794_v49, %v4549_v43  ;;  %v4300_v20 = vsel %vm8554_vm9, %v4298_v2, %v4299_v29  ;;  %v5312_v43 = vrot.slane %v5311_v48, 4 }
 0x318   : > { %6434 = vst [vmem:[%s9351_s22 + $0x10] sm:$0xff] %v6402_v8  ;;  %v5512_v55 = vpop.f32.mrf.mxu3  ;;  %v5316_v8 = vrot.slane %v5314_v0, 5  ;;  %v4550_v49 = vadd.f32 %v4447_v60, %v8948_v18  ;;  %v5322_v10 = vshll.u32 %v4997_v31, 16  ;;  %v5860_v2 = vrot.slane %v5858_v27, 4  ;;  %v4154_v0 = vld [vmem:[#allocation2 + $0xc4] sm:$0xf] }
 0x319   : > { %v7704_v50 = vpop.eup %7703  ;;  %v6276_v38 = vmul.f32 0.5, %v9387_v12  ;;  %v5617_v30 = vadd.f32 %v5512_v55, %v4899_v24  ;;  %7279 = vmatmul.msk.bf16.gmra.mxu1 %vm1654_vm2, %v4367_v34  ;;  %v5861_v29 = vrot.slane %v5714_v44, 5  ;;  %v5328_v18 = vshll.u32 %v4998_v54, 16 }
 0x31a   : > { %v6339_v42 = vadd.f32 1.0, %v7704_v50  ;;  %v5332_v60 = vshrl.u32 %v4998_v54, 16  ;;  %v4303_v44 = vrot.slane %v4154_v0, 5 }
 0x31b   : > { %7705 = vtanh.f32 %v6276_v38  ;;  %v6111_v45 = vadd.f32 %v6006_v37, %v5617_v30  ;;  %7360 = vmatmul.msk.bf16.gmra.mxu2 %vm1654_vm2, %v7464_v14  ;;  %v5319_v37 = vshrl.u32 %v4997_v31, 16  ;;  %v4349_v14 = vunpack.c.l.b16 %v4300_v20 }
 0x31c   : > { %v6371_v34 = vmul.f32 0.5, %v6339_v42  ;;  %v6009_v28 = vpop.f32.mrf.mxu0  ;;  %v5317_v38 = vsel %vm8541_vm6, %v5312_v43, %v5316_v8  ;;  %v5859_v30 = vsel %vm8554_vm9, %v7394_v25, %v5858_v27  ;;  %v5862_v20 = vsel %vm8554_vm9, %v5860_v2, %v5861_v29 }
 0x31d   : > { %v6210_v46 = vmul.f32 %v9295_v32, %v6111_v45  ;;  %7377 = vmatmul.msk.bf16.gmra.mxu3 %vm1654_vm2, %v5435_v61  ;;  %v5321_v42 = vrot.slane %v5319_v37, 4  ;;  %v4368_v45 = vpack.c.b16 %v4349_v14, %v4348_v52  ;;  %v9416_v43 = vrot.slane %v5328_v18, 5  ;;  %v4999_v37 = vld [vmem:[#allocation2 + $0xd4] sm:$0x1] }
 0x31e   : > { %v6403_v17 = vmul.f32 %v6371_v34, %v9366_v41  ;;  %v4797_v24 = vpop.f32.mrf.mxu2  ;;  %v4449_v48 = vpop.f32.mrf.mxu1  ;;  %v5307_v41 = vsel %vm8541_vm6, %v5302_v40, %v9378_v9  ;;  %v4153_v40 = vld [vmem:[#allocation2 + $0xc0] sm:$0xe]  ;;  %v4155_v34 = vld [vmem:[#allocation2 + $0xc8] sm:$0x1]  ;;  %v5334_v8 = vrot.slane %v5332_v60, 4 }
 0x31f   : > { %v9402_v4 = vadd.f32 %v9300_v62, %v6210_v46  ;;  %7410 = vmatmul.msk.bf16.gmra.mxu0 %vm1654_vm2, %v5929_v47  ;;  %v4900_v55 = vadd.f32 %v4797_v24, %v4550_v49  ;;  %v5324_v47 = vrot.slane %v5322_v10, 5  ;;  %v5416_v54 = vunpack.c.l.b16 %v5307_v41 }
 0x320   : > { %6435 = vst [vmem:[%s9351_s22 + $0x18] sm:$0xff] %v6403_v17  ;;  %v5515_v50 = vpop.f32.mrf.mxu3  ;;  %v5417_v46 = vunpack.c.l.b16 %v5317_v38  ;;  %v5910_v49 = vunpack.c.l.b16 %v5859_v30  ;;  %v4551_v10 = vadd.f32 %v4449_v48, %v8962_v39  ;;  %v5911_v17 = vunpack.c.l.b16 %v5862_v20  ;;  %v5716_v48 = vld [vmem:[#allocation2 + $0xd0] sm:$0xf]  ;;  %v1531_v30 = vld [vmem:[%s9168_s5 + $0xc] sm:$0xf] }
 0x321   : > { %v7706_v61 = vpop.eup %7705  ;;  %v6277_v15 = vmul.f32 0.5, %v9402_v4  ;;  %v5618_v57 = vadd.f32 %v5515_v50, %v4900_v55  ;;  %v5325_v24 = vor.u32 %v5324_v47, %v5321_v42  ;;  %v7264_v29 = vrot.slane %v4153_v40, 9  ;;  %v7465_v50 = vld [vmem:[#allocation2 + $0xc0] sm:$0xff]  ;;  %v1532_v47 = vld [vmem:[%s9168_s5 + $0x10] sm:$0xf] }
 0x322   : > { %v6340_v31 = vadd.f32 1.0, %v7706_v61  ;;  %v4305_v55 = vrot.slane %v4303_v44, 4  ;;  %v4306_v0 = vrot.slane %v4155_v34, 5  ;;  %v5335_v41 = vor.u32 %v5334_v8, %v9416_v43  ;;  %1538 = vst.msk [vmem:[#allocation2 + $0xe4] sm:$0xf] %vm1416_vm1, %v1531_v30 }
 0x323   : > { %7707 = vtanh.f32 %v6277_v15  ;;  %v6112_v9 = vadd.f32 %v6009_v28, %v5618_v57  ;;  %v5338_v38 = vshll.u32 %v4999_v37, 16  ;;  %v5436_v57 = vpack.c.b16 %v5417_v46, %v5416_v54  ;;  %1539 = vst.msk [vmem:[#allocation2 + $0xe8] sm:$0xf] %vm1416_vm1, %v1532_v47  ;;  %v1533_v54 = vld [vmem:[%s9168_s5 + $0x14] sm:$0x1] }
 0x324   : > { %v6372_v27 = vmul.f32 0.5, %v6340_v31  ;;  %v6011_v25 = vpop.f32.mrf.mxu0  ;;  %v5930_v42 = vpack.c.b16 %v5911_v17, %v5910_v49  ;;  %v4304_v20 = vsel %vm8554_vm9, %v7264_v29, %v4303_v44  ;;  %v5326_v40 = vrot.slane %v5325_v24, 4  ;;  %1540 = vst.msk [vmem:[#allocation2 + $0xec] sm:$0x1] %vm1419_vm3, %v1533_v54  ;;  %v5717_v17 = vld [vmem:[#allocation2 + $0xd4] sm:$0x1] }
 0x325   : > { %v6211_v52 = vmul.f32 %v9295_v32, %v6112_v9  ;;  %v4307_v9 = vsel %vm8554_vm9, %v4305_v55, %v4306_v0  ;;  %v5340_v8 = vrot.slane %v5338_v38, 5  ;;  %v5865_v37 = vrot.slane %v5716_v48, 5 }
 0x326   : > { %v6404_v28 = vmul.f32 %v6372_v27, %v9387_v12  ;;  %v4799_v14 = vpop.f32.mrf.mxu2  ;;  %v4452_v2 = vpop.f32.mrf.mxu1  ;;  %v5715_v27 = vld [vmem:[#allocation2 + $0xcc] sm:$0xe]  ;;  %v4351_v29 = vunpack.c.l.b16 %v4307_v9  ;;  %v5331_v55 = vsel %vm8541_vm6, %v5326_v40, %v9416_v43  ;;  %v5868_v48 = vrot.slane %v5717_v17, 5 }
 0x327   : > { %v9422_v18 = vadd.f32 %v9300_v62, %v6211_v52  ;;  %v4901_v60 = vadd.f32 %v4799_v14, %v4551_v10  ;;  %v5000_v52 = vld [vmem:[#allocation2 + $0xd8] sm:$0xf]  ;;  %v4552_v10 = vadd.f32 %v4452_v2, %v8985_v33  ;;  %v7395_v0 = vrot.slane %v5715_v27, 9 }
 0x328   : > { %6436 = vst [vmem:[%s9351_s22 + $0x20] sm:$0xff] %v6404_v28  ;;  %v5517_v39 = vpop.f32.mrf.mxu3  ;;  %v5343_v2 = vshrl.u32 %v5000_v52, 16 }
 0x329   : > { %v7708_v61 = vpop.eup %7707  ;;  %v6278_v12 = vmul.f32 0.5, %v9422_v18  ;;  %v5619_v15 = vadd.f32 %v5517_v39, %v4901_v60  ;;  %7280 = vmatmul.msk.bf16.gmra.mxu1 %vm1654_vm2, %v4368_v45  ;;  %v5336_v45 = vrot.slane %v5335_v41, 4  ;;  %v5001_v60 = vld [vmem:[#allocation2 + $0xdc] sm:$0xf]  ;;  %v5346_v41 = vshll.u32 %v5000_v52, 16 }
 0x32a   : > { %v6341_v31 = vadd.f32 1.0, %v7708_v61  ;;  %v5867_v39 = vrot.slane %v5865_v37, 4  ;;  %v5345_v40 = vrot.slane %v5343_v2, 4 }
 0x32b   : > { %7709 = vtanh.f32 %v6278_v12  ;;  %v6113_v34 = vadd.f32 %v6011_v25, %v5619_v15  ;;  %7361 = vmatmul.msk.bf16.gmra.mxu2 %vm1654_vm2, %v7465_v50  ;;  %v4350_v25 = vunpack.c.l.b16 %v4304_v20  ;;  %v4157_v12 = vld [vmem:[#allocation2 + $0xd0] sm:$0xf]  ;;  %v5352_v15 = vshll.u32 %v5001_v60, 16 }
 0x32c   : > { %v6373_v46 = vmul.f32 0.5, %v6341_v31  ;;  %v6014_v49 = vpop.f32.mrf.mxu0  ;;  %v5866_v20 = vsel %vm8554_vm9, %v7395_v0, %v5865_v37  ;;  %v5869_v54 = vsel %vm8554_vm9, %v5867_v39, %v5868_v48 }
 0x32d   : > { %v6212_v44 = vmul.f32 %v9295_v32, %v6113_v34  ;;  %7378 = vmatmul.msk.bf16.gmra.mxu3 %vm1654_vm2, %v5436_v57  ;;  %v5356_v57 = vshrl.u32 %v5001_v60, 16  ;;  %v4369_v31 = vpack.c.b16 %v4351_v29, %v4350_v25  ;;  %v5348_v34 = vrot.slane %v5346_v41, 5  ;;  %v4158_v25 = vld [vmem:[#allocation2 + $0xd4] sm:$0x1] }
 0x32e   : > { %v6405_v24 = vmul.f32 %v6373_v46, %v9402_v4  ;;  %v4802_v28 = vpop.f32.mrf.mxu2  ;;  %v4454_v14 = vpop.f32.mrf.mxu1  ;;  %v5341_v4 = vsel %vm8541_vm6, %v5336_v45, %v5340_v8  ;;  %v4310_v46 = vrot.slane %v4157_v12, 5  ;;  %v9460_v17 = vrot.slane %v5352_v15, 5  ;;  %v5719_v12 = vld [vmem:[#allocation2 + $0xdc] sm:$0xf] }
 0x32f   : > { %v9447_v50 = vadd.f32 %v9300_v62, %v6212_v44  ;;  %7411 = vmatmul.msk.bf16.gmra.mxu0 %vm1654_vm2, %v5930_v42  ;;  %v4902_v33 = vadd.f32 %v4802_v28, %v4552_v10  ;;  %v5418_v42 = vunpack.c.l.b16 %v5331_v55  ;;  %v5419_v27 = vunpack.c.l.b16 %v5341_v4  ;;  %v4156_v10 = vld [vmem:[#allocation2 + $0xcc] sm:$0xe]  ;;  %v5002_v55 = vld [vmem:[#allocation2 + $0xe0] sm:$0x1] }
 0x330   : > { %6437 = vst [vmem:[%s9351_s22 + $0x28] sm:$0xff] %v6405_v24  ;;  %v5520_v38 = vpop.f32.mrf.mxu3  ;;  %v4553_v44 = vadd.f32 %v4454_v14, %v8993_v11  ;;  %v5358_v37 = vrot.slane %v5356_v57, 4  ;;  %v5912_v29 = vunpack.c.l.b16 %v5866_v20  ;;  %v5913_v2 = vunpack.c.l.b16 %v5869_v54 }
 0x331   : > { %v7710_v30 = vpop.eup %7709  ;;  %v6279_v43 = vmul.f32 0.5, %v9447_v50  ;;  %v5620_v61 = vadd.f32 %v5520_v38, %v4902_v33  ;;  %v7466_v33 = vld [vmem:[#allocation2 + $0xcc] sm:$0xff]  ;;  %v5349_v41 = vor.u32 %v5348_v34, %v5345_v40  ;;  %v5437_v14 = vpack.c.b16 %v5419_v27, %v5418_v42  ;;  %v9939_v27 = vld [vmem:[#allocation50_spill] sm:$0xff] }
 0x332   : > { %v6342_v47 = vadd.f32 1.0, %v7710_v30  ;;  %v7265_v38 = vrot.slane %v4156_v10, 9  ;;  %v4312_v4 = vrot.slane %v4310_v46, 4  ;;  %v4313_v39 = vrot.slane %v4158_v25, 5  ;;  %v5720_v10 = vld [vmem:[#allocation2 + $0xe0] sm:$0x1] }
 0x333   : > { %7711 = vtanh.f32 %v6279_v43  ;;  %v6114_v9 = vadd.f32 %v6014_v49, %v5620_v61  ;;  %v5359_v43 = vor.u32 %v5358_v37, %v9460_v17  ;;  %v5362_v61 = vshll.u32 %v5002_v55, 16 }
 0x334   : > { %v6374_v45 = vmul.f32 0.5, %v6342_v47  ;;  %v6016_v8 = vpop.f32.mrf.mxu0  ;;  %v5931_v47 = vpack.c.b16 %v5913_v2, %v5912_v29  ;;  %v5350_v42 = vrot.slane %v5349_v41, 4  ;;  %v4311_v40 = vsel %vm8554_vm9, %v7265_v38, %v4310_v46  ;;  %v5003_v46 = vld [vmem:[#allocation2 + $0xe4] sm:$0xf] }
 0x335   : > { %v6213_v52 = vmul.f32 %v9295_v32, %v6114_v9  ;;  %v4314_v34 = vsel %vm8554_vm9, %v4312_v4, %v4313_v39  ;;  %v4352_v55 = vunpack.c.l.b16 %v4311_v40 }
 0x336   : > { %v6406_v49 = vmul.f32 %v6374_v45, %v9422_v18  ;;  %v4804_v24 = vpop.f32.mrf.mxu2  ;;  %v4457_v28 = vpop.f32.mrf.mxu1  ;;  %v5355_v2 = vsel %vm8541_vm6, %v5350_v42, %v9460_v17 }
 0x337   : > { %v9464_v0 = vadd.f32 %v9300_v62, %v6213_v52  ;;  %v4903_v60 = vadd.f32 %v4804_v24, %v4553_v44  ;;  %v4554_v54 = vadd.f32 %v4457_v28, %v9939_v27  ;;  %v5364_v52 = vrot.slane %v5362_v61, 5  ;;  %v5718_v44 = vld [vmem:[#allocation2 + $0xd8] sm:$0xe] }
 0x338   : > { %6438 = vst [vmem:[%s9351_s22 + $0x30] sm:$0xff] %v6406_v49  ;;  %v5522_v11 = vpop.f32.mrf.mxu3  ;;  %v4353_v28 = vunpack.c.l.b16 %v4314_v34  ;;  %v7396_v41 = vrot.slane %v5718_v44, 9  ;;  %v5420_v17 = vunpack.c.l.b16 %v5355_v2 }
 0x339   : > { %v7712_v48 = vpop.eup %7711  ;;  %v6280_v18 = vmul.f32 0.5, %v9464_v0  ;;  %v5621_v30 = vadd.f32 %v5522_v11, %v4903_v60  ;;  %7281 = vmatmul.msk.bf16.gmra.mxu1 %vm1654_vm2, %v4369_v31  ;;  %v5872_v31 = vrot.slane %v5719_v12, 5  ;;  %v5004_v60 = vld [vmem:[#allocation2 + $0xe8] sm:$0xf]  ;;  %v5875_v11 = vrot.slane %v5720_v10, 5 }
 0x33a   : > { %v6343_v15 = vadd.f32 1.0, %v7712_v48  ;;  %v5367_v48 = vshrl.u32 %v5003_v46, 16  ;;  %v5376_v61 = vshll.u32 %v5004_v60, 16  ;;  %v5380_v12 = vshrl.u32 %v5004_v60, 16 }
 0x33b   : > { %7713 = vtanh.f32 %v6280_v18  ;;  %v6115_v57 = vadd.f32 %v6016_v8, %v5621_v30  ;;  %7362 = vmatmul.msk.bf16.gmra.mxu2 %vm1654_vm2, %v7466_v33  ;;  %v5360_v8 = vrot.slane %v5359_v43, 4  ;;  %v4160_v30 = vld [vmem:[#allocation2 + $0xdc] sm:$0xf]  ;;  %v5370_v43 = vshll.u32 %v5003_v46, 16 }
 0x33c   : > { %v6375_v20 = vmul.f32 0.5, %v6343_v15  ;;  %v6019_v9 = vpop.f32.mrf.mxu0  ;;  %v5873_v40 = vsel %vm8554_vm9, %v7396_v41, %v5872_v31  ;;  %v9497_v46 = vrot.slane %v5376_v61, 5 }
 0x33d   : > { %v6214_v45 = vmul.f32 %v9295_v32, %v6115_v57  ;;  %7379 = vmatmul.msk.bf16.gmra.mxu3 %vm1654_vm2, %v5437_v14  ;;  %v5365_v39 = vsel %vm8541_vm6, %v5360_v8, %v5364_v52  ;;  %v4370_v57 = vpack.c.b16 %v4353_v28, %v4352_v55  ;;  %v4317_v8 = vrot.slane %v4160_v30, 5  ;;  %v7467_v28 = vld [vmem:[#allocation2 + $0xd8] sm:$0xff] }
 0x33e   : > { %v6407_v25 = vmul.f32 %v6375_v20, %v9447_v50  ;;  %v4807_v37 = vpop.f32.mrf.mxu2  ;;  %v4459_v49 = vpop.f32.mrf.mxu1  ;;  %v5874_v50 = vrot.slane %v5872_v31, 4  ;;  %v5421_v20 = vunpack.c.l.b16 %v5365_v39  ;;  %v5369_v52 = vrot.slane %v5367_v48, 4 }
 0x33f   : > { %v9480_v24 = vadd.f32 %v9300_v62, %v6214_v45  ;;  %7412 = vmatmul.msk.bf16.gmra.mxu0 %vm1654_vm2, %v5931_v47  ;;  %v4904_v29 = vadd.f32 %v4807_v37, %v4554_v54  ;;  %v4555_v27 = vadd.f32 %v4459_v49, %v9021_v63  ;;  %v4159_v54 = vld [vmem:[#allocation2 + $0xd8] sm:$0xe]  ;;  %v5372_v37 = vrot.slane %v5370_v43, 5  ;;  %v5005_v49 = vld [vmem:[#allocation2 + $0xec] sm:$0x1] }
 0x340   : > { %6439 = vst [vmem:[%s9351_s22 + $0x38] sm:$0xff] %v6407_v25  ;;  %v5525_v33 = vpop.f32.mrf.mxu3  ;;  %v5876_v34 = vsel %vm8554_vm9, %v5874_v50, %v5875_v11  ;;  %v4161_v25 = vld [vmem:[#allocation2 + $0xe0] sm:$0x1]  ;;  %v5382_v31 = vrot.slane %v5380_v12, 4  ;;  %v5914_v60 = vunpack.c.l.b16 %v5873_v40  ;;  %v5438_v2 = vpack.c.b16 %v5421_v20, %v5420_v17 }
 0x341   : > { %v7714_v14 = vpop.eup %7713  ;;  %v6281_v38 = vmul.f32 0.5, %v9480_v24  ;;  %v5622_v4 = vadd.f32 %v5525_v33, %v4904_v29  ;;  %v5915_v63 = vunpack.c.l.b16 %v5876_v34  ;;  %v7266_v41 = vrot.slane %v4159_v54, 9  ;;  %v5723_v34 = vld [vmem:[#allocation2 + $0xec] sm:$0x1] }
 0x342   : > { %v6344_v18 = vadd.f32 1.0, %v7714_v14  ;;  %v4319_v14 = vrot.slane %v4317_v8, 4  ;;  %v5373_v48 = vor.u32 %v5372_v37, %v5369_v52  ;;  %v5386_v30 = vshll.u32 %v5005_v49, 16 }
 0x343   : > { %7715 = vtanh.f32 %v6281_v38  ;;  %v6116_v15 = vadd.f32 %v6019_v9, %v5622_v4  ;;  %v4320_v38 = vrot.slane %v4161_v25, 5  ;;  %v5722_v4 = vld [vmem:[#allocation2 + $0xe8] sm:$0xf]  ;;  %v5932_v61 = vpack.c.b16 %v5915_v63, %v5914_v60 }
 0x344   : > { %v6376_v47 = vmul.f32 0.5, %v6344_v18  ;;  %v6021_v42 = vpop.f32.mrf.mxu0  ;;  %v5383_v18 = vor.u32 %v5382_v31, %v9497_v46  ;;  %v4318_v17 = vsel %vm8554_vm9, %v7266_v41, %v4317_v8  ;;  %v5374_v52 = vrot.slane %v5373_v48, 4 }
 0x345   : > { %v6215_v45 = vmul.f32 %v9295_v32, %v6116_v15  ;;  %v4321_v40 = vsel %vm8554_vm9, %v4319_v14, %v4320_v38  ;;  %v5388_v8 = vrot.slane %v5386_v30, 5  ;;  %v9530_v14 = vld [vmem:[%s9936_s0] ss:$0 sm:$0xff] }
 0x346   : > { %v6408_v9 = vmul.f32 %v6376_v47, %v9464_v0  ;;  %v4809_v44 = vpop.f32.mrf.mxu2  ;;  %v4462_v10 = vpop.f32.mrf.mxu1  ;;  %v5879_v47 = vrot.slane %v5722_v4, 5  ;;  %v4355_v25 = vunpack.c.l.b16 %v4321_v40  ;;  %v5379_v49 = vsel %vm8541_vm6, %v5374_v52, %v9497_v46 }
 0x347   : > { %v9500_v29 = vadd.f32 %v9300_v62, %v6215_v45  ;;  %v4905_v55 = vadd.f32 %v4809_v44, %v4555_v27  ;;  %v4556_v20 = vadd.f32 %v4462_v10, %v9037_v26  ;;  %v4354_v26 = vunpack.c.l.b16 %v4318_v17 }
 0x348   : > { %6440 = vst [vmem:[%s9351_s22 + $0x40] sm:$0xff] %v6408_v9  ;;  %v5527_v33 = vpop.f32.mrf.mxu3  ;;  %v5384_v9 = vrot.slane %v5383_v18, 4  ;;  %v5881_v31 = vrot.slane %v5879_v47, 4  ;;  %v5422_v38 = vunpack.c.l.b16 %v5379_v49 }
 0x349   : > { %v7716_v0 = vpop.eup %7715  ;;  %v6282_v50 = vmul.f32 0.5, %v9500_v29  ;;  %v5623_v11 = vadd.f32 %v5527_v33, %v4905_v55  ;;  %7282 = vmatmul.msk.bf16.gmra.mxu1 %vm1654_vm2, %v4370_v57  ;;  %v5882_v55 = vrot.slane %v5723_v34, 5 }
 0x34a   : > { %v6345_v39 = vadd.f32 1.0, %v7716_v0  ;;  %v4371_v0 = vpack.c.b16 %v4355_v25, %v4354_v26 }
 0x34b   : > { %7717 = vtanh.f32 %v6282_v50  ;;  %v6117_v43 = vadd.f32 %v6021_v42, %v5623_v11  ;;  %7363 = vmatmul.msk.bf16.gmra.mxu2 %vm1654_vm2, %v7467_v28  ;;  %v5721_v42 = vld [vmem:[#allocation2 + $0xe4] sm:$0xe]  ;;  %v5883_v11 = vsel %vm8554_vm9, %v5881_v31, %v5882_v55 }
 0x34c   : > { %v6377_v12 = vmul.f32 0.5, %v6345_v39  ;;  %v6024_v15 = vpop.f32.mrf.mxu0  ;;  %v7397_v37 = vrot.slane %v5721_v42, 9 }
 0x34d   : > { %v6216_v57 = vmul.f32 %v9295_v32, %v6117_v43  ;;  %7380 = vmatmul.msk.bf16.gmra.mxu3 %vm1654_vm2, %v5438_v2 }
 0x34e   : > { %v6409_v45 = vmul.f32 %v6377_v12, %v9480_v24  ;;  %v4812_v27 = vpop.f32.mrf.mxu2  ;;  %v4464_v54 = vpop.f32.mrf.mxu1  ;;  %v5880_v50 = vsel %vm8554_vm9, %v7397_v37, %v5879_v47 }
 0x34f   : > { %v6251_v44 = vadd.f32 %v9300_v62, %v6216_v57  ;;  %7413 = vmatmul.msk.bf16.gmra.mxu0 %vm1654_vm2, %v5932_v61  ;;  %v4906_v32 = vadd.f32 %v4812_v27, %v4556_v20  ;;  %v5389_v62 = vsel %vm8541_vm6, %v5384_v9, %v5388_v8  ;;  %v4557_v46 = vadd.f32 %v4464_v54, %v9047_v59  ;;  %v7468_v61 = vld [vmem:[#allocation2 + $0xe4] sm:$0xff] }
 0x350   : > { %6441 = vst [vmem:[%s9351_s22 + $0x48] sm:$0xff] %v6409_v45  ;;  %v5530_v10 = vpop.f32.mrf.mxu3  ;;  %v5423_v4 = vunpack.c.l.b16 %v5389_v62  ;;  %v5916_v12 = vunpack.c.l.b16 %v5880_v50 }
 0x351   : > { %v7718_v28 = vpop.eup %7717  ;;  %v6283_v60 = vmul.f32 0.5, %v6251_v44  ;;  %v5624_v24 = vadd.f32 %v5530_v10, %v4906_v32 }
 0x352   : > { %v6346_v63 = vadd.f32 1.0, %v7718_v28 }
 0x353   : > { %7719 = vtanh.f32 %v6283_v60  ;;  %v6118_v33 = vadd.f32 %v6024_v15, %v5624_v24  ;;  %v5917_v15 = vunpack.c.l.b16 %v5883_v11 }
 0x354   : > { %v6378_v2 = vmul.f32 0.5, %v6346_v63  ;;  %v6026_v41 = vpop.f32.mrf.mxu0 }
 0x355   : > { %v6217_v5 = vmul.f32 %v9530_v14, %v6118_v33  ;;  %v5933_v42 = vpack.c.b16 %v5917_v15, %v5916_v12 }
 0x356   : > { %v6410_v39 = vmul.f32 %v6378_v2, %v9500_v29  ;;  %v4814_v48 = vpop.f32.mrf.mxu2  ;;  %v4467_v18 = vpop.f32.mrf.mxu1  ;;  %v5439_v29 = vpack.c.b16 %v5423_v4, %v5422_v38 }
 0x357   : > { %v6252_v30 = vadd.f32 %v9538_v21, %v6217_v5  ;;  %v4907_v43 = vadd.f32 %v4814_v48, %v4557_v46  ;;  %v4558_v54 = vadd.f32 %v4467_v18, %v9065_v35 }
 0x358   : > { %6442 = vst [vmem:[%s9351_s22 + $0x50] sm:$0xff] %v6410_v39  ;;  %v5532_v17 = vpop.f32.mrf.mxu3 }
 0x359   : > { %v7720_v59 = vpop.eup %7719  ;;  %v6284_v47 = vmul.f32 0.5, %v6252_v30  ;;  %v5625_v57 = vadd.f32 %v5532_v17, %v4907_v43  ;;  %7283 = vmatmul.msk.bf16.gmra.mxu1 %vm1654_vm2, %v4371_v0 }
 0x35a   : > { %v6347_v20 = vadd.f32 1.0, %v7720_v59 }
 0x35b   : > { %7721 = vtanh.f32 %v6284_v47  ;;  %v6119_v40 = vadd.f32 %v6026_v41, %v5625_v57  ;;  %7364 = vmatmul.msk.bf16.gmra.mxu2 %vm1654_vm2, %v7468_v61 }
 0x35c   : > { %v6379_v34 = vmul.f32 0.5, %v6347_v20  ;;  %v6029_v45 = vpop.f32.mrf.mxu0 }
 0x35d   : > { %v6218_v27 = vmul.f32 %v9530_v14, %v6119_v40  ;;  %7381 = vmatmul.msk.bf16.gmra.mxu3 %vm1654_vm2, %v5439_v29 }
 0x35e   : > { %v6411_v52 = vmul.f32 %v6379_v34, %v6251_v44  ;;  %v4817_v9 = vpop.f32.mrf.mxu2  ;;  %v4469_v8 = vpop.f32.mrf.mxu1 }
 0x35f   : > { %v6253_v32 = vadd.f32 %v9538_v21, %v6218_v27  ;;  %7414 = vmatmul.msk.bf16.gmra.mxu0 %vm1654_vm2, %v5933_v42  ;;  %v4908_v26 = vadd.f32 %v4817_v9, %v4558_v54  ;;  %v4559_v24 = vadd.f32 %v4469_v8, %v9070_v1 }
 0x360   : > { %6443 = vst [vmem:[%s9351_s22 + $0x58] sm:$0xff] %v6411_v52  ;;  %v5535_v10 = vpop.f32.mrf.mxu3 }
 0x361   : > { %v7722_v25 = vpop.eup %7721  ;;  %v6285_v37 = vmul.f32 0.5, %v6253_v32  ;;  %v5626_v31 = vadd.f32 %v5535_v10, %v4908_v26 }
 0x362   : > { %v6348_v55 = vadd.f32 1.0, %v7722_v25 }
 0x363   : > { %7723 = vtanh.f32 %v6285_v37  ;;  %v6120_v28 = vadd.f32 %v6029_v45, %v5626_v31 }
 0x364   : > { %v6380_v35 = vmul.f32 0.5, %v6348_v55  ;;  %v6031_v60 = vpop.f32.mrf.mxu0 }
 0x365   : > { %v6219_v44 = vmul.f32 %v9530_v14, %v6120_v28 }
 0x366   : > { %v6412_v63 = vmul.f32 %v6380_v35, %v6252_v30  ;;  %v4819_v49 = vpop.f32.mrf.mxu2  ;;  %v4472_v62 = vpop.f32.mrf.mxu1 }
 0x367   : > { %v6254_v33 = vadd.f32 %v9538_v21, %v6219_v44  ;;  %v4909_v2 = vadd.f32 %v4819_v49, %v4559_v24  ;;  %v4560_v1 = vadd.f32 %v4472_v62, %v9087_v51 }
 0x368   : > { %6444 = vst [vmem:[%s9351_s22 + $0x60] sm:$0xff] %v6412_v63  ;;  %v5537_v41 = vpop.f32.mrf.mxu3 }
 0x369   : > { %v7724_v0 = vpop.eup %7723  ;;  %v6286_v50 = vmul.f32 0.5, %v6254_v33  ;;  %v5627_v11 = vadd.f32 %v5537_v41, %v4909_v2 }
 0x36a   : > { %v6349_v5 = vadd.f32 1.0, %v7724_v0 }
 0x36b   : > { %7725 = vtanh.f32 %v6286_v50  ;;  %v6121_v46 = vadd.f32 %v6031_v60, %v5627_v11 }
 0x36c   : > { %v6381_v38 = vmul.f32 0.5, %v6349_v5  ;;  %v6034_v4 = vpop.f32.mrf.mxu0 }
 0x36d   : > { %v6220_v39 = vmul.f32 %v9530_v14, %v6121_v46 }
 0x36e   : > { %v6413_v48 = vmul.f32 %v6381_v38, %v6253_v32  ;;  %v4822_v18 = vpop.f32.mrf.mxu2  ;;  %v4474_v30 = vpop.f32.mrf.mxu1 }
 0x36f   : > { %v6255_v43 = vadd.f32 %v9538_v21, %v6220_v39  ;;  %v4910_v61 = vadd.f32 %v4822_v18, %v4560_v1  ;;  %v4561_v51 = vadd.f32 %v4474_v30, %v9095_v36 }
 0x370   : > { %6445 = vst [vmem:[%s9351_s22 + $0x68] sm:$0xff] %v6413_v48  ;;  %v5540_v12 = vpop.f32.mrf.mxu3 }
 0x371   : > { %v7726_v15 = vpop.eup %7725  ;;  %v6287_v17 = vmul.f32 0.5, %v6255_v43  ;;  %v5628_v59 = vadd.f32 %v5540_v12, %v4910_v61 }
 0x372   : > { %v6350_v47 = vadd.f32 1.0, %v7726_v15 }
 0x373   : > { %7727 = vtanh.f32 %v6287_v17  ;;  %v6122_v57 = vadd.f32 %v6034_v4, %v5628_v59 }
 0x374   : > { %v6382_v29 = vmul.f32 0.5, %v6350_v47  ;;  %v6036_v20 = vpop.f32.mrf.mxu0 }
 0x375   : > { %v6221_v40 = vmul.f32 %v9530_v14, %v6122_v57 }
 0x376   : > { %v6414_v42 = vmul.f32 %v6382_v29, %v6254_v33  ;;  %v4824_v34 = vpop.f32.mrf.mxu2  ;;  %v4477_v45 = vpop.f32.mrf.mxu1 }
 0x377   : > { %v6256_v27 = vadd.f32 %v9538_v21, %v6221_v40  ;;  %v4911_v54 = vadd.f32 %v4824_v34, %v4561_v51  ;;  %v4562_v36 = vadd.f32 %v4477_v45, %v9113_v7 }
 0x378   : > { %6446 = vst [vmem:[%s9351_s22 + $0x70] sm:$0xff] %v6414_v42  ;;  %v5542_v52 = vpop.f32.mrf.mxu3 }
 0x379   : > { %v7728_v9 = vpop.eup %7727  ;;  %v6288_v8 = vmul.f32 0.5, %v6256_v27  ;;  %v5629_v32 = vadd.f32 %v5542_v52, %v4911_v54 }
 0x37a   : > { %v6351_v26 = vadd.f32 1.0, %v7728_v9 }
 0x37b   : > { %7729 = vtanh.f32 %v6288_v8  ;;  %v6123_v10 = vadd.f32 %v6036_v20, %v5629_v32 }
 0x37c   : > { %v6383_v25 = vmul.f32 0.5, %v6351_v26  ;;  %v6039_v37 = vpop.f32.mrf.mxu0 }
 0x37d   : > { %v6222_v31 = vmul.f32 %v9530_v14, %v6123_v10 }
 0x37e   : > { %v6415_v55 = vmul.f32 %v6383_v25, %v6255_v43  ;;  %v4827_v28 = vpop.f32.mrf.mxu2  ;;  %v4479_v35 = vpop.f32.mrf.mxu1 }
 0x37f   : > { %v6257_v60 = vadd.f32 %v9538_v21, %v6222_v31  ;;  %v4912_v44 = vadd.f32 %v4827_v28, %v4562_v36  ;;  %v4563_v7 = vadd.f32 %v4479_v35, %v9118_v53 }
 0x380   : > { %6447 = vst [vmem:[%s9351_s22 + $0x78] sm:$0xff] %v6415_v55  ;;  %v5545_v24 = vpop.f32.mrf.mxu3 }
 0x381   : > { %v7730_v63 = vpop.eup %7729  ;;  %v6289_v49 = vmul.f32 0.5, %v6257_v60  ;;  %v5630_v62 = vadd.f32 %v5545_v24, %v4912_v44 }
 0x382   : > { %v6352_v33 = vadd.f32 1.0, %v7730_v63 }
 0x383   : > { %7731 = vtanh.f32 %v6289_v49  ;;  %v6124_v2 = vadd.f32 %v6039_v37, %v5630_v62 }
 0x384   : > { %v6384_v41 = vmul.f32 0.5, %v6352_v33  ;;  %v6041_v0 = vpop.f32.mrf.mxu0 }
 0x385   : > { %v6223_v50 = vmul.f32 %v9530_v14, %v6124_v2 }
 0x386   : > { %v6416_v11 = vmul.f32 %v6384_v41, %v6256_v27  ;;  %v4829_v5 = vpop.f32.mrf.mxu2  ;;  %v4482_v46 = vpop.f32.mrf.mxu1 }
 0x387   : > { %v6258_v38 = vadd.f32 %v9538_v21, %v6223_v50  ;;  %v4913_v4 = vadd.f32 %v4829_v5, %v4563_v7  ;;  %v4564_v53 = vadd.f32 %v4482_v46, %v9135_v56 }
 0x388   : > { %6448 = vst [vmem:[%s9351_s22 + $0x80] sm:$0xff] %v6416_v11  ;;  %v5547_v39 = vpop.f32.mrf.mxu3 }
 0x389   : > { %v7732_v1 = vpop.eup %7731  ;;  %v6290_v48 = vmul.f32 0.5, %v6258_v38  ;;  %v5631_v18 = vadd.f32 %v5547_v39, %v4913_v4 }
 0x38a   : > { %v6353_v30 = vadd.f32 1.0, %v7732_v1 }
 0x38b   : > { %7733 = vtanh.f32 %v6290_v48  ;;  %v6125_v43 = vadd.f32 %v6041_v0, %v5631_v18 }
 0x38c   : > { %v6385_v61 = vmul.f32 0.5, %v6353_v30  ;;  %v6044_v12 = vpop.f32.mrf.mxu0 }
 0x38d   : > { %v6224_v15 = vmul.f32 %v9530_v14, %v6125_v43 }
 0x38e   : > { %v6417_v17 = vmul.f32 %v6385_v61, %v6257_v60  ;;  %v4832_v59 = vpop.f32.mrf.mxu2  ;;  %v4484_v47 = vpop.f32.mrf.mxu1 }
 0x38f   : > { %v6259_v57 = vadd.f32 %v9538_v21, %v6224_v15  ;;  %v4914_v29 = vadd.f32 %v4832_v59, %v4564_v53  ;;  %v4565_v56 = vadd.f32 %v4484_v47, %v9143_v3 }
 0x390   : > { %6449 = vst [vmem:[%s9351_s22 + $0x88] sm:$0xff] %v6417_v17  ;;  %v5550_v20 = vpop.f32.mrf.mxu3 }
 0x391   : > { %v7734_v40 = vpop.eup %7733  ;;  %v6291_v51 = vmul.f32 0.5, %v6259_v57  ;;  %v5632_v42 = vadd.f32 %v5550_v20, %v4914_v29 }
 0x392   : > { %v6354_v34 = vadd.f32 1.0, %v7734_v40 }
 0x393   : > { %7735 = vtanh.f32 %v6291_v51  ;;  %v6126_v45 = vadd.f32 %v6044_v12, %v5632_v42 }
 0x394   : > { %v6386_v27 = vmul.f32 0.5, %v6354_v34  ;;  %v6046_v54 = vpop.f32.mrf.mxu0 }
 0x395   : > { %v6225_v52 = vmul.f32 %v9530_v14, %v6126_v45 }
 0x396   : > { %v6418_v9 = vmul.f32 %v6386_v27, %v6258_v38  ;;  %v4834_v8 = vpop.f32.mrf.mxu2  ;;  %v4487_v32 = vpop.f32.mrf.mxu1 }
 0x397   : > { %v6260_v26 = vadd.f32 %v9538_v21, %v6225_v52  ;;  %v4915_v10 = vadd.f32 %v4834_v8, %v4565_v56  ;;  %v4566_v3 = vadd.f32 %v4487_v32, %v9160_v13 }
 0x398   : > { %6450 = vst [vmem:[%s9351_s22 + $0x90] sm:$0xff] %v6418_v9  ;;  %v5552_v25 = vpop.f32.mrf.mxu3 }
 0x399   : > { %v7736_v37 = vpop.eup %7735  ;;  %v6292_v31 = vmul.f32 0.5, %v6260_v26  ;;  %v5633_v36 = vadd.f32 %v5552_v25, %v4915_v10 }
 0x39a   : > { %v6355_v55 = vadd.f32 1.0, %v7736_v37 }
 0x39b   : > { %7737 = vtanh.f32 %v6292_v31  ;;  %v6127_v28 = vadd.f32 %v6046_v54, %v5633_v36 }
 0x39c   : > { %v6387_v35 = vmul.f32 0.5, %v6355_v55  ;;  %v6049_v60 = vpop.f32.mrf.mxu0 }
 0x39d   : > { %v6226_v44 = vmul.f32 %v9530_v14, %v6127_v28 }
 0x39e   : > { %v6419_v24 = vmul.f32 %v6387_v35, %v6259_v57  ;;  %v4837_v63 = vpop.f32.mrf.mxu2  ;;  %v4489_v49 = vpop.f32.mrf.mxu1 }
 0x39f   : > { %v6261_v62 = vadd.f32 %v9538_v21, %v6226_v44  ;;  %v4916_v33 = vadd.f32 %v4837_v63, %v4566_v3  ;;  %v4567_v13 = vadd.f32 %v4489_v49, %v9177_v6 }
 0x3a0   : > { %6451 = vst [vmem:[%s9351_s22 + $0x98] sm:$0xff] %v6419_v24  ;;  %v5555_v2 = vpop.f32.mrf.mxu3 }
 0x3a1   : > { %v7738_v41 = vpop.eup %7737  ;;  %v6293_v0 = vmul.f32 0.5, %v6261_v62  ;;  %v5634_v50 = vadd.f32 %v5555_v2, %v4916_v33 }
 0x3a2   : > { %v6356_v7 = vadd.f32 1.0, %v7738_v41 }
 0x3a3   : > { %7739 = vtanh.f32 %v6293_v0  ;;  %v6128_v11 = vadd.f32 %v6049_v60, %v5634_v50 }
 0x3a4   : > { %v6388_v5 = vmul.f32 0.5, %v6356_v7  ;;  %v6051_v46 = vpop.f32.mrf.mxu0 }
 0x3a5   : > { %v6227_v38 = vmul.f32 %v9530_v14, %v6128_v11 }
 0x3a6   : > { %v6420_v4 = vmul.f32 %v6388_v5, %v6260_v26  ;;  %v4839_v39 = vpop.f32.mrf.mxu2  ;;  %v4492_v1 = vpop.f32.mrf.mxu1 }
 0x3a7   : > { %v6262_v48 = vadd.f32 %v9538_v21, %v6227_v38  ;;  %v4917_v18 = vadd.f32 %v4839_v39, %v4567_v13  ;;  %v4568_v6 = vadd.f32 %v4492_v1, %v9196_v23 }
 0x3a8   : > { %6452 = vst [vmem:[%s9351_s22 + $0xa0] sm:$0xff] %v6420_v4  ;;  %v5557_v30 = vpop.f32.mrf.mxu3 }
 0x3a9   : > { %v7740_v43 = vpop.eup %7739  ;;  %v6294_v61 = vmul.f32 0.5, %v6262_v48  ;;  %v5635_v12 = vadd.f32 %v5557_v30, %v4917_v18 }
 0x3aa   : > { %v6357_v15 = vadd.f32 1.0, %v7740_v43 }
 0x3ab   : > { %7741 = vtanh.f32 %v6294_v61  ;;  %v6129_v53 = vadd.f32 %v6051_v46, %v5635_v12 }
 0x3ac   : > { %v6389_v17 = vmul.f32 0.5, %v6357_v15  ;;  %v6054_v59 = vpop.f32.mrf.mxu0 }
 0x3ad   : > { %v6228_v47 = vmul.f32 %v9530_v14, %v6129_v53 }
 0x3ae   : > { %v6421_v57 = vmul.f32 %v6389_v17, %v6261_v62  ;;  %v4842_v29 = vpop.f32.mrf.mxu2  ;;  %v4494_v20 = vpop.f32.mrf.mxu1 }
 0x3af   : > { %v6263_v40 = vadd.f32 %v9538_v21, %v6228_v47  ;;  %v4918_v51 = vadd.f32 %v4842_v29, %v4568_v6  ;;  %v4569_v23 = vadd.f32 %v4494_v20, %v9204_v19 }
 0x3b0   : > { %6453 = vst [vmem:[%s9351_s22 + $0xa8] sm:$0xff] %v6421_v57  ;;  %v5560_v42 = vpop.f32.mrf.mxu3 }
 0x3b1   : > { %v7742_v34 = vpop.eup %7741  ;;  %v6295_v45 = vmul.f32 0.5, %v6263_v40  ;;  %v5636_v27 = vadd.f32 %v5560_v42, %v4918_v51 }
 0x3b2   : > { %v6358_v54 = vadd.f32 1.0, %v7742_v34 }
 0x3b3   : > { %7743 = vtanh.f32 %v6295_v45  ;;  %v6130_v52 = vadd.f32 %v6054_v59, %v5636_v27 }
 0x3b4   : > { %v6390_v56 = vmul.f32 0.5, %v6358_v54  ;;  %v6056_v9 = vpop.f32.mrf.mxu0 }
 0x3b5   : > { %v6229_v8 = vmul.f32 %v9530_v14, %v6130_v52 }
 0x3b6   : > { %v6422_v32 = vmul.f32 %v6390_v56, %v6262_v48  ;;  %v4844_v26 = vpop.f32.mrf.mxu2  ;;  %v4497_v10 = vpop.f32.mrf.mxu1 }
 0x3b7   : > { %v6264_v25 = vadd.f32 %v9538_v21, %v6229_v8  ;;  %v4919_v37 = vadd.f32 %v4844_v26, %v4569_v23  ;;  %v4570_v19 = vadd.f32 %v4497_v10, %v9222_v16 }
 0x3b8   : > { %6454 = vst [vmem:[%s9351_s22 + $0xb0] sm:$0xff] %v6422_v32  ;;  %v5562_v31 = vpop.f32.mrf.mxu3 }
 0x3b9   : > { %v7744_v36 = vpop.eup %7743  ;;  %v6296_v55 = vmul.f32 0.5, %v6264_v25  ;;  %v5637_v28 = vadd.f32 %v5562_v31, %v4919_v37 }
 0x3ba   : > { %v6359_v35 = vadd.f32 1.0, %v7744_v36 }
 0x3bb   : > { %7745 = vtanh.f32 %v6296_v55  ;;  %v6131_v60 = vadd.f32 %v6056_v9, %v5637_v28  ;;  %v9940_v9 = vld [vmem:[#allocation44_spill] sm:$0xff] }
 0x3bc   : > { %v6391_v44 = vmul.f32 0.5, %v6359_v35  ;;  %v6059_v3 = vpop.f32.mrf.mxu0 }
 0x3bd   : > { %v6230_v24 = vmul.f32 %v9530_v14, %v6131_v60 }
 0x3be   : > { %v6423_v63 = vmul.f32 %v6391_v44, %v6263_v40  ;;  %v4847_v49 = vpop.f32.mrf.mxu2  ;;  %v4499_v62 = vpop.f32.mrf.mxu1 }
 0x3bf   : > { %v6265_v33 = vadd.f32 %v9538_v21, %v6230_v24  ;;  %v4920_v2 = vadd.f32 %v4847_v49, %v4570_v19  ;;  %v4571_v16 = vadd.f32 %v4499_v62, %v9227_v58 }
 0x3c0   : > { %6455 = vst [vmem:[%s9351_s22 + $0xb8] sm:$0xff] %v6423_v63  ;;  %v5565_v41 = vpop.f32.mrf.mxu3 }
 0x3c1   : > { %v7746_v0 = vpop.eup %7745  ;;  %v6297_v50 = vmul.f32 0.5, %v6265_v33  ;;  %v5638_v7 = vadd.f32 %v5565_v41, %v4920_v2 }
 0x3c2   : > { %v6360_v11 = vadd.f32 1.0, %v7746_v0 }
 0x3c3   : > { %7747 = vtanh.f32 %v6297_v50  ;;  %v6132_v5 = vadd.f32 %v6059_v3, %v5638_v7  ;;  %v9941_v3 = vld [vmem:[#allocation45_spill] sm:$0xff] }
 0x3c4   : > { %v6392_v46 = vmul.f32 0.5, %v6360_v11  ;;  %v6061_v38 = vpop.f32.mrf.mxu0 }
 0x3c5   : > { %v6231_v13 = vmul.f32 %v9530_v14, %v6132_v5 }
 0x3c6   : > { %v6424_v4 = vmul.f32 %v6392_v46, %v6264_v25  ;;  %v4849_v39 = vpop.f32.mrf.mxu2  ;;  %v4502_v1 = vpop.f32.mrf.mxu1 }
 0x3c7   : > { %v6266_v48 = vadd.f32 %v9538_v21, %v6231_v13  ;;  %v4921_v18 = vadd.f32 %v4849_v39, %v4571_v16  ;;  %v4572_v58 = vadd.f32 %v4502_v1, %v9244_v22  ;;  %v9942_v13 = vld [vmem:[#allocation46_spill] sm:$0xff] }
 0x3c8   : > { %6456 = vst [vmem:[%s9351_s22 + $0xc0] sm:$0xff] %v6424_v4  ;;  %v5567_v30 = vpop.f32.mrf.mxu3 }
 0x3c9   : > { %v7748_v43 = vpop.eup %7747  ;;  %v6298_v61 = vmul.f32 0.5, %v6266_v48  ;;  %v5639_v12 = vadd.f32 %v5567_v30, %v4921_v18 }
 0x3ca   : > { %v6361_v15 = vadd.f32 1.0, %v7748_v43 }
 0x3cb   : > { %7749 = vtanh.f32 %v6298_v61  ;;  %v6133_v53 = vadd.f32 %v6061_v38, %v5639_v12 }
 0x3cc   : > { %v6393_v17 = vmul.f32 0.5, %v6361_v15  ;;  %v6064_v59 = vpop.f32.mrf.mxu0 }
 0x3cd   : > { %v6232_v47 = vmul.f32 %v9530_v14, %v6133_v53 }
 0x3ce   : > { %v6425_v6 = vmul.f32 %v6393_v17, %v6265_v33  ;;  %v4852_v57 = vpop.f32.mrf.mxu2  ;;  %v4504_v29 = vpop.f32.mrf.mxu1 }
 0x3cf   : > { %v6267_v20 = vadd.f32 %v9538_v21, %v6232_v47  ;;  %v4922_v40 = vadd.f32 %v4852_v57, %v4572_v58  ;;  %v4573_v22 = vadd.f32 %v4504_v29, %v9940_v9  ;;  %v6580_v9 = vld [vmem:[%s9351_s22 + $0x30] sm:$0xff] (%p8319_p11) }
 0x3d0   : > { %6457 = vst [vmem:[%s9351_s22 + $0xc8] sm:$0xff] %v6425_v6  ;;  %v5570_v51 = vpop.f32.mrf.mxu3 }
 0x3d1   : > { %v7750_v42 = vpop.eup %7749  ;;  %v6299_v34 = vmul.f32 0.5, %v6267_v20  ;;  %v5640_v45 = vadd.f32 %v5570_v51, %v4922_v40  ;;  %6581 = vst [vmem:[%s9631_s16 + $0x30] sm:$0xff] (%p8319_p11), %v6580_v9 }
 0x3d2   : > { %v6362_v27 = vadd.f32 1.0, %v7750_v42 }
 0x3d3   : > { %7751 = vtanh.f32 %v6299_v34  ;;  %v6134_v54 = vadd.f32 %v6064_v59, %v5640_v45 }
 0x3d4   : > { %v6394_v52 = vmul.f32 0.5, %v6362_v27  ;;  %v6066_v23 = vpop.f32.mrf.mxu0  ;;  %v6572_v27 = vld [vmem:[%s9351_s22 + $0x10] sm:$0xff] (%p8319_p11) }
 0x3d5   : > { %v6233_v56 = vmul.f32 %v9530_v14, %v6134_v54  ;;  %v6574_v54 = vld [vmem:[%s9351_s22 + $0x18] sm:$0xff] (%p8319_p11)  ;;  %6573 = vst [vmem:[%s9631_s16 + $0x10] sm:$0xff] (%p8319_p11), %v6572_v27 }
 0x3d6   : > { %v6426_v8 = vmul.f32 %v6394_v52, %v6266_v48  ;;  %v4854_v32 = vpop.f32.mrf.mxu2  ;;  %v4507_v37 = vpop.f32.mrf.mxu1  ;;  %v6576_v52 = vld [vmem:[%s9351_s22 + $0x20] sm:$0xff] (%p8319_p11)  ;;  %6575 = vst [vmem:[%s9631_s16 + $0x18] sm:$0xff] (%p8319_p11), %v6574_v54 }
 0x3d7   : > { %v6268_v26 = vadd.f32 %v9538_v21, %v6233_v56  ;;  %v4923_v10 = vadd.f32 %v4854_v32, %v4573_v22  ;;  %v4574_v24 = vadd.f32 %v4507_v37, %v9941_v3  ;;  %v6578_v56 = vld [vmem:[%s9351_s22 + $0x28] sm:$0xff] (%p8319_p11)  ;;  %6577 = vst [vmem:[%s9631_s16 + $0x20] sm:$0xff] (%p8319_p11), %v6576_v52  ;;  %v6582_v22 = vld [vmem:[%s9351_s22 + $0x38] sm:$0xff] (%p8319_p11)  ;;  %v6588_v32 = vld [vmem:[%s9351_s22 + $0x50] sm:$0xff] (%p8319_p11) }
 0x3d8   : > { %6458 = vst [vmem:[%s9351_s22 + $0xd0] sm:$0xff] %v6426_v8  ;;  %v5572_v25 = vpop.f32.mrf.mxu3  ;;  %v6584_v8 = vld [vmem:[%s9351_s22 + $0x40] sm:$0xff] (%p8319_p11)  ;;  %v6596_v37 = vld [vmem:[%s9351_s22 + $0x70] sm:$0xff] (%p8319_p11) }
 0x3d9   : > { %v7752_v31 = vpop.eup %7751  ;;  %v6300_v36 = vmul.f32 0.5, %v6268_v26  ;;  %v5641_v55 = vadd.f32 %v5572_v25, %v4923_v10  ;;  %6579 = vst [vmem:[%s9631_s16 + $0x28] sm:$0xff] (%p8319_p11), %v6578_v56  ;;  %v6592_v10 = vld [vmem:[%s9351_s22 + $0x60] sm:$0xff] (%p8319_p11)  ;;  %v6594_v25 = vld [vmem:[%s9351_s22 + $0x68] sm:$0xff] (%p8319_p11)  ;;  %v6612_v3 = vld [vmem:[%s9351_s22 + $0xb0] sm:$0xff] (%p8319_p11) }
 0x3da   : > { %v6363_v28 = vadd.f32 1.0, %v7752_v31  ;;  %6583 = vst [vmem:[%s9631_s16 + $0x38] sm:$0xff] (%p8319_p11), %v6582_v22  ;;  %v6598_v31 = vld [vmem:[%s9351_s22 + $0x78] sm:$0xff] (%p8319_p11) }
 0x3db   : > { %7753 = vtanh.f32 %v6300_v36  ;;  %v6135_v35 = vadd.f32 %v6066_v23, %v5641_v55  ;;  %v6586_v23 = vld [vmem:[%s9351_s22 + $0x48] sm:$0xff] (%p8319_p11)  ;;  %6585 = vst [vmem:[%s9631_s16 + $0x40] sm:$0xff] (%p8319_p11), %v6584_v8  ;;  %v6600_v36 = vld [vmem:[%s9351_s22 + $0x80] sm:$0xff] (%p8319_p11) }
 0x3dc   : > { %v6395_v60 = vmul.f32 0.5, %v6363_v28  ;;  %v6069_v33 = vpop.f32.mrf.mxu0  ;;  %6587 = vst [vmem:[%s9631_s16 + $0x48] sm:$0xff] (%p8319_p11), %v6586_v23  ;;  %v6602_v55 = vld [vmem:[%s9351_s22 + $0x88] sm:$0xff] (%p8319_p11)  ;;  %v6604_v28 = vld [vmem:[%s9351_s22 + $0x90] sm:$0xff] (%p8319_p11) }
 0x3dd   : > { %v6234_v44 = vmul.f32 %v9530_v14, %v6135_v35  ;;  %6589 = vst [vmem:[%s9631_s16 + $0x50] sm:$0xff] (%p8319_p11), %v6588_v32  ;;  %v6606_v35 = vld [vmem:[%s9351_s22 + $0x98] sm:$0xff] (%p8319_p11) }
 0x3de   : > { %v6427_v19 = vmul.f32 %v6395_v60, %v6267_v20  ;;  %v4857_v63 = vpop.f32.mrf.mxu2  ;;  %v4509_v11 = vpop.f32.mrf.mxu1  ;;  %6593 = vst [vmem:[%s9631_s16 + $0x60] sm:$0xff] (%p8319_p11), %v6592_v10  ;;  %v6608_v60 = vld [vmem:[%s9351_s22 + $0xa0] sm:$0xff] (%p8319_p11) }
 0x3df   : > { %v6269_v49 = vadd.f32 %v9538_v21, %v6234_v44  ;;  %v4924_v62 = vadd.f32 %v4857_v63, %v4574_v24  ;;  %v4575_v16 = vadd.f32 %v4509_v11, %v9942_v13  ;;  %6595 = vst [vmem:[%s9631_s16 + $0x68] sm:$0xff] (%p8319_p11), %v6594_v25  ;;  %v6610_v44 = vld [vmem:[%s9351_s22 + $0xa8] sm:$0xff] (%p8319_p11)  ;;  %v6614_v24 = vld [vmem:[%s9351_s22 + $0xb8] sm:$0xff] (%p8319_p11) }
 0x3e0   : > { %6459 = vst [vmem:[%s9351_s22 + $0xd8] sm:$0xff] %v6427_v19  ;;  %v5575_v2 = vpop.f32.mrf.mxu3  ;;  %v6616_v19 = vld [vmem:[%s9351_s22 + $0xc0] sm:$0xff] (%p8319_p11)  ;;  %v6618_v63 = vld [vmem:[%s9351_s22 + $0xc8] sm:$0xff] (%p8319_p11) }
 0x3e1   : > { %v7754_v41 = vpop.eup %7753  ;;  %v6301_v0 = vmul.f32 0.5, %v6269_v49  ;;  %v5642_v50 = vadd.f32 %v5575_v2, %v4924_v62  ;;  %6597 = vst [vmem:[%s9631_s16 + $0x70] sm:$0xff] (%p8319_p11), %v6596_v37 }
 0x3e2   : > { %v6364_v7 = vadd.f32 1.0, %v7754_v41  ;;  %6599 = vst [vmem:[%s9631_s16 + $0x78] sm:$0xff] (%p8319_p11), %v6598_v31 }
 0x3e3   : > { %7755 = vtanh.f32 %v6301_v0  ;;  %v6136_v5 = vadd.f32 %v6069_v33, %v5642_v50  ;;  %6601 = vst [vmem:[%s9631_s16 + $0x100] sm:$0xff] (%p8319_p11), %v6600_v36 }
 0x3e4   : > { %v6396_v46 = vmul.f32 0.5, %v6364_v7  ;;  %v6071_v15 = vpop.f32.mrf.mxu0  ;;  %6603 = vst [vmem:[%s9631_s16 + $0x108] sm:$0xff] (%p8319_p11), %v6602_v55 }
 0x3e5   : > { %v6235_v38 = vmul.f32 %v9530_v14, %v6136_v5  ;;  %6605 = vst [vmem:[%s9631_s16 + $0x110] sm:$0xff] (%p8319_p11), %v6604_v28 }
 0x3e6   : > { %v6428_v4 = vmul.f32 %v6396_v46, %v6268_v26  ;;  %v4859_v39 = vpop.f32.mrf.mxu2  ;;  %v6590_v26 = vld [vmem:[%s9351_s22 + $0x58] sm:$0xff] (%p8319_p11)  ;;  %6607 = vst [vmem:[%s9631_s16 + $0x118] sm:$0xff] (%p8319_p11), %v6606_v35 }
 0x3e7   : > { %v6270_v1 = vadd.f32 %v9538_v21, %v6235_v38  ;;  %v4925_v48 = vadd.f32 %v4859_v39, %v4575_v16  ;;  %6591 = vst [vmem:[%s9631_s16 + $0x58] sm:$0xff] (%p8319_p11), %v6590_v26  ;;  %v6622_v62 = vld [vmem:[%s9351_s22 + $0xd8] sm:$0xff] (%p8319_p11) }
 0x3e8   : > { %6460 = vst [vmem:[%s9351_s22 + $0xe0] sm:$0xff] %v6428_v4  ;;  %v5577_v18 = vpop.f32.mrf.mxu3 }
 0x3e9   : > { %v7756_v30 = vpop.eup %7755  ;;  %v6302_v43 = vmul.f32 0.5, %v6270_v1  ;;  %v5643_v61 = vadd.f32 %v5577_v18, %v4925_v48  ;;  %6609 = vst [vmem:[%s9631_s16 + $0x120] sm:$0xff] (%p8319_p11), %v6608_v60 }
 0x3ea   : > { %v6365_v12 = vadd.f32 1.0, %v7756_v30  ;;  %6611 = vst [vmem:[%s9631_s16 + $0x128] sm:$0xff] (%p8319_p11), %v6610_v44 }
 0x3eb   : > { %7757 = vtanh.f32 %v6302_v43  ;;  %v6137_v53 = vadd.f32 %v6071_v15, %v5643_v61  ;;  %6613 = vst [vmem:[%s9631_s16 + $0x130] sm:$0xff] (%p8319_p11), %v6612_v3 }
 0x3ec   : > { %v6397_v17 = vmul.f32 0.5, %v6365_v12  ;;  %6615 = vst [vmem:[%s9631_s16 + $0x138] sm:$0xff] (%p8319_p11), %v6614_v24 }
 0x3ed   : > { %v6236_v59 = vmul.f32 %v9530_v14, %v6137_v53  ;;  %v6568_v14 = vld [vmem:[%s9351_s22] sm:$0xff] (%p8319_p11)  ;;  %6617 = vst [vmem:[%s9631_s16 + $0x140] sm:$0xff] (%p8319_p11), %v6616_v19 }
 0x3ee   : > { %v6429_v47 = vmul.f32 %v6397_v17, %v6269_v49  ;;  %6569 = vst [vmem:[%s9631_s16] sm:$0xff] (%p8319_p11), %v6568_v14  ;;  %v6620_v49 = vld [vmem:[%s9351_s22 + $0xd0] sm:$0xff] (%p8319_p11) }
 0x3ef   : > { %v6271_v58 = vadd.f32 %v9538_v21, %v6236_v59  ;;  %v6570_v21 = vld [vmem:[%s9351_s22 + $0x8] sm:$0xff] (%p8319_p11)  ;;  %6619 = vst [vmem:[%s9631_s16 + $0x148] sm:$0xff] (%p8319_p11), %v6618_v63  ;;  %v6624_v33 = vld [vmem:[%s9351_s22 + $0xe0] sm:$0xff] (%p8319_p11) }
 0x3f0   : > { %6461 = vst [vmem:[%s9351_s22 + $0xe8] sm:$0xff] %v6429_v47 }
 0x3f1   : > { %v7758_v6 = vpop.eup %7757  ;;  %v6303_v57 = vmul.f32 0.5, %v6271_v58  ;;  %6571 = vst [vmem:[%s9631_s16 + $0x8] sm:$0xff] (%p8319_p11), %v6570_v21 }
 0x3f2   : > { %v6366_v29 = vadd.f32 1.0, %v7758_v6  ;;  %6621 = vst [vmem:[%s9631_s16 + $0x150] sm:$0xff] (%p8319_p11), %v6620_v49 }
 0x3f3   : > { %7759 = vtanh.f32 %v6303_v57  ;;  %6623 = vst [vmem:[%s9631_s16 + $0x158] sm:$0xff] (%p8319_p11), %v6622_v62 }
 0x3f4   : > { %v6398_v20 = vmul.f32 0.5, %v6366_v29  ;;  %6625 = vst [vmem:[%s9631_s16 + $0x160] sm:$0xff] (%p8319_p11), %v6624_v33 }
 0x3f6   : > { %v6430_v40 = vmul.f32 %v6398_v20, %v6270_v1 }
 0x3f7   : > { %v6626_v2 = vld [vmem:[%s9351_s22 + $0xe8] sm:$0xff] (%p8319_p11) }
 0x3f8   : > { %6462 = vst [vmem:[%s9351_s22 + $0xf0] sm:$0xff] %v6430_v40 }
 0x3f9   : > { %v7760_v51 = vpop.eup %7759  ;;  %6627 = vst [vmem:[%s9631_s16 + $0x168] sm:$0xff] (%p8319_p11), %v6626_v2 }
 0x3fa   : > { %v6367_v42 = vadd.f32 1.0, %v7760_v51 }
 0x3fc   : > { %v6399_v34 = vmul.f32 0.5, %v6367_v42  ;;  %6470 = sbr.rel (!%p8319_p11) target bundleno = 1033 (0x409), region = 486 }
 0x3fe   : > { %v6431_v45 = vmul.f32 %v6399_v34, %v6271_v58 }
 0x3ff   : > { %v6628_v41 = vld [vmem:[%s9351_s22 + $0xf0] sm:$0xff] (%p8319_p11) }
 0x400   : > { %6463 = vst [vmem:[%s9351_s22 + $0xf8] sm:$0xff] %v6431_v45 }
 0x401   : > { %6629 = vst [vmem:[%s9631_s16 + $0x170] sm:$0xff] %v6628_v41 }
 0x407   : > { %v6630_v0 = vld [vmem:[%s9351_s22 + $0xf8] sm:$0xff] }
 0x408   : > { %6631 = vst [vmem:[%s9631_s16 + $0x178] sm:$0xff] %v6630_v0 }
 0x409 PF: > { %s23_s6 = sadd.s32 1, %s7961_s6   ;;  %s9947_s25 = sld [smem:[#allocation16_spill]] }
 0x40a   : > { %p9696_p12 = scmp.ge.s32.totalorder %s23_s6, 4   ;;  %s9948_s14 = sld [smem:[#allocation20_spill]] }
 0x40b   : > { %s9949_s15 = sld [smem:[#allocation42_spill]]  ;;  %s9956_s26 = smov %s9983_s8 }
 0x40c   : > { %s9950_s16 = sld [smem:[#allocation22_spill]]  ;;  %s9958_s27 = smov %s7877_s28 }
 0x40d   : > { %s9951_s17 = sld [smem:[#allocation40_spill]]  ;;  %s9959_s28 = smov %s8303_s24 }
 0x40e   : > { %s9952_s12 = sld [smem:[#allocation24_spill]]  ;;  %s9961_s29 = smov %s7885_s30 }
 0x40f   : > { %s9953_s22 = sld [smem:[#allocation39_spill]]  ;;  %s9962_s30 = smov %s8289_s19 }
 0x410   : > { %s9954_s2 = sld [smem:[#allocation38_spill]]  ;;  %s9969_s20 = smov %s7917_s21 }
 0x411   : > { %s9955_s10 = sld [smem:[#allocation37_spill]]  ;;  %s9973_s24 = smov %s7933_s13 }
 0x412   : > { %s9957_s7 = sld [smem:[#allocation36_spill]] }
 0x413   : > { %s9960_s3 = sld [smem:[#allocation35_spill]] }
 0x414   : > { %s9963_s5 = sld [smem:[#allocation34_spill]]  ;;  %s9967_s18 = smov %s9952_s12 }
 0x415   : > { %s9964_s8 = sld [smem:[#allocation31_spill]]  ;;  %s9968_s19 = smov %s9953_s22 }
 0x416   : > { %s9965_s0 = sld [smem:[#allocation32_spill]]  ;;  %s9970_s21 = smov %s9954_s2 }
 0x417   : > { %s9971_s22 = smov %s7925_s23  ;;  %s9972_s23 = smov %s9955_s10 }
 0x418   : > { %s9974_s13 = smov %s9957_s7  ;;  %s9975_s12 = smov %s7941_s11 }
 0x419   : > { %s9976_s11 = smov %s9960_s3  ;;  %s9977_s10 = smov %s7949_s9 }
 0x41a   : > { %s9978_s9 = smov %s9963_s5  ;;  %22 = sbr.rel (!%p9696_p12) target bundleno = 28 (0x1c), region = 644 }
 0x41c   : > { %s9979_s7 = smov %s9965_s0 }

</bundles_post_ra>
